<compile_context>
chip_gen: v7x
topology: tpu7x:2x2x1
jax: 0.10.0
libtpu: 0.0.40
codegen_flags: <defaults>
</compile_context>

<pallas_src>
import functools

import numpy as np
import jax
import jax.numpy as jnp
from jax import lax
from jax.experimental import pallas as pl
from jax.experimental.pallas import tpu as pltpu


# ---------------------------------------------------------------------------
# Bilinear align_corners=True coordinates (shape-only constants).
# ---------------------------------------------------------------------------
def _lerp_coords(out_size, in_size):
    if in_size == 1 or out_size == 1:
        z = np.zeros((out_size,), np.int32)
        return z, z.copy(), np.zeros((out_size,), np.float32)
    scale = (in_size - 1) / (out_size - 1)
    src = np.arange(out_size, dtype=np.float64) * scale
    i0 = np.clip(np.floor(src).astype(np.int64), 0, in_size - 1)
    i1 = np.minimum(i0 + 1, in_size - 1)
    frac = (src - i0).astype(np.float32)
    return i0.astype(np.int32), i1.astype(np.int32), frac


# ---------------------------------------------------------------------------
# VMEM-aware tiling.
# ---------------------------------------------------------------------------
def _tpu_vmem_capacity_bytes():
    try:
        info = pltpu.get_tpu_info()
        return int(getattr(info, "vmem_capacity_bytes", 64 * 1024 * 1024))
    except Exception:
        return 64 * 1024 * 1024       # conservative fallback (v7x per-TC VMEM)


def _fused_tile_vmem_bytes(tr, w, c1, c2, cout, cbytes):
    f32 = 4
    ins = ((tr * w * c1) + (2 * w * c1) + (tr * w * c2) + (2 * w * c2)
           + (c2 * c1) + (9 * c1 * cout)) * cbytes + (c1 + cout) * f32
    outs = tr * w * cout * cbytes + 2 * cout * f32
    scratch = (tr + 2) * (w + 2) * c1 * cbytes
    return 2 * (ins + outs) + scratch          # double-buffered I/O + scratch


def _row_tile(h, w, c1, c2, cout, cbytes, budget):
    divisors = [t for t in (64, 32, 16, 8) if h % t == 0 and h // t >= 2]
    for t in divisors:                          # largest tile that fits VMEM
        if _fused_tile_vmem_bytes(t, w, c1, c2, cout, cbytes) <= budget:
            return t
    if divisors:
        return divisors[-1]                     # smallest divisor (correctness)
    return h                                    # single tile fallback


# ---------------------------------------------------------------------------
# Fused kernel: recompute s window (upsample + 1x1 conv + b1) into a VMEM
# scratch (with halo rows), then 3x3 conv via K=3*C1 width-im2col dots,
# plus per-tile partial BatchNorm statistics.
# ---------------------------------------------------------------------------
def fused_s_conv3_kernel(up_ref, uph_ref, x_ref, xh_ref, w1_ref, b1_ref,
                         w3_ref, b3_ref, y_ref, st_ref, win_ref):
    tr = up_ref.shape[1]
    w = up_ref.shape[2]
    c1 = up_ref.shape[3]
    cout = y_ref.shape[3]

    w1 = w1_ref[...]                       # [C2, C1]  (compute dtype)
    b1 = b1_ref[...]                       # [1, C1]   (f32)

    def s_rows(x_rows, up_rows, nrows, gate):
        # x_rows [nrows, W, C2], up_rows [nrows, W, C1] -> padded [nrows, W+2, C1]
        x1 = jnp.dot(x_rows.reshape(nrows * w, -1), w1,
                     preferred_element_type=jnp.float32)
        s = x1 + up_rows.astype(jnp.float32).reshape(nrows * w, c1) + b1
        s = (s * gate).reshape(nrows, w, c1).astype(win_ref.dtype)
        zcol = jnp.zeros((nrows, 1, c1), win_ref.dtype)
        return jnp.concatenate([zcol, s, zcol], axis=1)   # "same"-conv columns

    # Boundary gates: the halo s row is the zero padding row of the 3x3 conv
    # at the top of tile 0 / the bottom of tile G-1.
    i = pl.program_id(1)
    top_gate = jnp.where(i > 0, 1.0, 0.0)
    bot_gate = jnp.where(i < pl.num_programs(1) - 1, 1.0, 0.0)

    win_ref[1:tr + 1, :, :] = s_rows(x_ref[0], up_ref[0], tr, 1.0)
    win_ref[0:1, :, :] = s_rows(xh_ref[0, 0:1], uph_ref[0, 0:1], 1, top_gate)
    win_ref[tr + 1:tr + 2, :, :] = s_rows(xh_ref[0, 1:2], uph_ref[0, 1:2], 1,
                                          bot_gate)

    # 3x3 conv: fold the 3 dx taps into the K dimension (3 dots, K = 3*C1).
    acc = None
    for dy in range(3):
        patches = jnp.concatenate(
            [win_ref[dy:dy + tr, dx:dx + w, :] for dx in range(3)], axis=-1)
        part = jnp.dot(patches.reshape(tr * w, 3 * c1), w3_ref[dy],
                       preferred_element_type=jnp.float32)
        acc = part if acc is None else acc + part
    y = acc + b3_ref[...]                                   # [TR*W, Cout] f32

    # Partial BatchNorm statistics (two-phase reduction, kept in f32).
    st_ref[0:1, 0:1, 0:1, :] = jnp.sum(y, axis=0).reshape(1, 1, 1, cout)
    st_ref[0:1, 0:1, 1:2, :] = jnp.sum(y * y, axis=0).reshape(1, 1, 1, cout)
    y_ref[...] = y.reshape(1, tr, w, cout).astype(y_ref.dtype)


# ---------------------------------------------------------------------------
# Kernel C: apply precomputed BatchNorm scale/shift + ReLU (pure FMA + max).
# ---------------------------------------------------------------------------
def bn_relu_kernel(y_ref, scale_ref, shift_ref, o_ref):
    y = y_ref[...].astype(jnp.float32)
    o_ref[...] = jnp.maximum(y * scale_ref[...] + shift_ref[...], 0.0)


# ---------------------------------------------------------------------------
# Wrapper.
# ---------------------------------------------------------------------------
def unet_block(up_p, x_p, params, *, compute_dtype=jnp.bfloat16, eps=1e-5):
    up_p = up_p.astype(jnp.float32)
    x_p = x_p.astype(jnp.float32)
    N, C1, H2, W2 = up_p.shape
    Nx, C2, H, W = x_p.shape
    assert Nx == N and H == 2 * H2 and W == 2 * W2
    Cout = params['w3'].shape[0]
    cbytes = jnp.dtype(compute_dtype).itemsize

    vmem_cap = _tpu_vmem_capacity_bytes()
    vmem_limit = int(min(int(vmem_cap * 0.75), 100 * 1024 * 1024))
    TR = _row_tile(H, W, C1, C2, Cout, cbytes, int(vmem_limit * 0.7))
    G = H // TR

    # NCHW -> NHWC (channels on the lane axis).
    # TODO(synk): hoist these transposes out of the per-block wrapper once the
    # surrounding network runs NHWC end-to-end.
    up_nhwc = jnp.transpose(up_p, (0, 2, 3, 1))                    # [N,H2,W2,C1]
    x_nhwc = jnp.transpose(x_p, (0, 2, 3, 1)).astype(compute_dtype)  # [N,H,W,C2]

    # Bilinear 2x upsample (align_corners=True) as separable gather + lerp in
    # the wrapper; stored once in compute_dtype.
    # TODO(synk): move the lerp fully in-kernel from the low-res map to cut
    # the remaining upsample HBM round trip.
    ri0, ri1, fr = _lerp_coords(H, H2)
    ci0, ci1, fc = _lerp_coords(W, W2)
    fr_ = jnp.asarray(fr)[None, :, None, None]
    fc_ = jnp.asarray(fc)[None, None, :, None]
    rows = up_nhwc[:, ri0] * (1.0 - fr_) + up_nhwc[:, ri1] * fr_    # [N,H,W2,C1]
    up_hr = (rows[:, :, ci0] * (1.0 - fc_) + rows[:, :, ci1] * fc_
             ).astype(compute_dtype)                                # [N,H,W,C1]

    # Tiny halo tensors: row above / below every row tile, interleaved so a
    # (1, 2, W, C) block with block-index i picks tile i's halo pair.
    g = np.arange(G)
    above = np.maximum(g * TR - 1, 0)
    below = np.minimum(g * TR + TR, H - 1)
    up_halo = jnp.stack([up_hr[:, above], up_hr[:, below]], axis=2
                        ).reshape(N, 2 * G, W, C1)
    x_halo = jnp.stack([x_nhwc[:, above], x_nhwc[:, below]], axis=2
                       ).reshape(N, 2 * G, W, C2)

    w1 = jnp.transpose(params['w1'][:, :, 0, 0], (1, 0)).astype(compute_dtype)
    b1 = params['b1'].reshape(1, C1).astype(jnp.float32)
    # w3t[dy, dx*C1 + ci, co] = w3[co, ci, dy, dx]
    w3t = jnp.transpose(params['w3'], (2, 3, 1, 0)).reshape(3, 3 * C1, Cout
                                                            ).astype(compute_dtype)
    b3 = params['b3'].reshape(1, Cout).astype(jnp.float32)

    cparams = pltpu.CompilerParams(
        dimension_semantics=("parallel", "parallel"),
        vmem_limit_bytes=vmem_limit)

    # ---- fused kernel: s window recompute + 3x3 conv + partial BN stats ----
    y, stats = pl.pallas_call(
        fused_s_conv3_kernel,
        grid=(N, G),
        in_specs=[
            pl.BlockSpec((1, TR, W, C1), lambda n, i: (n, i, 0, 0)),      # up_hr
            pl.BlockSpec((1, 2, W, C1), lambda n, i: (n, i, 0, 0)),       # up halo
            pl.BlockSpec((1, TR, W, C2), lambda n, i: (n, i, 0, 0)),      # x
            pl.BlockSpec((1, 2, W, C2), lambda n, i: (n, i, 0, 0)),       # x halo
            pl.BlockSpec((C2, C1), lambda n, i: (0, 0)),                  # w1
            pl.BlockSpec((1, C1), lambda n, i: (0, 0)),                   # b1
            pl.BlockSpec((3, 3 * C1, Cout), lambda n, i: (0, 0, 0)),      # w3
            pl.BlockSpec((1, Cout), lambda n, i: (0, 0)),                 # b3
        ],
        out_specs=(pl.BlockSpec((1, TR, W, Cout), lambda n, i: (n, i, 0, 0)),
                   pl.BlockSpec((1, 1, 2, Cout), lambda n, i: (n, i, 0, 0))),
        out_shape=(jax.ShapeDtypeStruct((N, H, W, Cout), compute_dtype),
                   jax.ShapeDtypeStruct((N, G, 2, Cout), jnp.float32)),
        scratch_shapes=[pltpu.VMEM((TR + 2, W + 2, C1), compute_dtype)],
        compiler_params=cparams,
    )(up_hr, up_halo, x_nhwc, x_halo, w1, b1, w3t, b3)

    # Finalize the two-phase BN reduction once (tiny [Cout] math, f32).
    # NOTE: var = E[y^2] - mu^2 from f32 partial sums; acceptable at BN scale
    # since y is conv output with O(1) magnitude, but revisit for huge N*H*W.
    tot = jnp.sum(stats, axis=(0, 1))                      # [2, Cout]
    inv_count = 1.0 / float(N * H * W)
    mu = tot[0] * inv_count
    var = jnp.maximum(tot[1] * inv_count - mu * mu, 0.0)
    scale_v = params['gamma'].astype(jnp.float32) * lax.rsqrt(var + eps)
    shift_v = params['beta'].astype(jnp.float32) - mu * scale_v
    scale = scale_v.reshape(1, Cout)
    shift = shift_v.reshape(1, Cout)

    # ---- kernel C: BatchNorm (precomputed scale/shift) + ReLU --------------
    out_nhwc = pl.pallas_call(
        bn_relu_kernel,
        grid=(N, G),
        in_specs=[pl.BlockSpec((1, TR, W, Cout), lambda n, i: (n, i, 0, 0)),
                  pl.BlockSpec((1, Cout), lambda n, i: (0, 0)),
                  pl.BlockSpec((1, Cout), lambda n, i: (0, 0))],
        out_specs=pl.BlockSpec((1, TR, W, Cout), lambda n, i: (n, i, 0, 0)),
        out_shape=jax.ShapeDtypeStruct((N, H, W, Cout), jnp.float32),
        compiler_params=cparams,
    )(y, scale, shift)

    return jnp.transpose(out_nhwc, (0, 3, 1, 2))           # back to NCHW


# ---------------------------------------------------------------------------
# Deterministic parameter init (matches the module's init scheme / shapes).
# ---------------------------------------------------------------------------
def init_params(key, up_in1, up_in2, up_out):
    k1, k2, k3, k4 = jax.random.split(key, 4)
    std3 = (2.0 / (up_in1 * 9 + up_out * 9)) ** 0.5
    w3 = std3 * jax.random.normal(k1, (up_out, up_in1, 3, 3), jnp.float32)
    bound3 = 1.0 / (up_in1 * 9) ** 0.5
    b3 = jax.random.uniform(k2, (up_out,), jnp.float32, -bound3, bound3)
    std1 = (2.0 / (up_in2 + up_in1)) ** 0.5
    w1 = std1 * jax.random.normal(k3, (up_in1, up_in2, 1, 1), jnp.float32)
    bound1 = 1.0 / up_in2 ** 0.5
    b1 = jax.random.uniform(k4, (up_in1,), jnp.float32, -bound1, bound1)
    gamma = jnp.ones((up_out,), jnp.float32)
    beta = jnp.zeros((up_out,), jnp.float32)
    return dict(w3=w3, b3=b3, w1=w1, b1=b1, gamma=gamma, beta=beta)


# ---------------------------------------------------------------------------
# Pure-JAX reference (XLA convs, independent BN) for a sanity check.
# ---------------------------------------------------------------------------
def unet_block_reference(up_p, x_p, params):
    N, C1, H2, W2 = up_p.shape
    H, W = 2 * H2, 2 * W2
    ri0, ri1, fr = _lerp_coords(H, H2)
    ci0, ci1, fc = _lerp_coords(W, W2)
    fr_ = jnp.asarray(fr)[None, None, :, None]
    fc_ = jnp.asarray(fc)[None, None, None, :]
    rows = up_p[:, :, ri0, :] * (1.0 - fr_) + up_p[:, :, ri1, :] * fr_
    up_hr = rows[:, :, :, ci0] * (1.0 - fc_) + rows[:, :, :, ci1] * fc_
    x1 = lax.conv_general_dilated(x_p, params['w1'], (1, 1), 'VALID',
                                  dimension_numbers=('NCHW', 'OIHW', 'NCHW'),
                                  precision=lax.Precision.HIGHEST)
    x1 = x1 + params['b1'][None, :, None, None]
    s = up_hr + x1
    y = lax.conv_general_dilated(s, params['w3'], (1, 1), ((1, 1), (1, 1)),
                                 dimension_numbers=('NCHW', 'OIHW', 'NCHW'),
                                 precision=lax.Precision.HIGHEST)
    y = y + params['b3'][None, :, None, None]
    mu = jnp.mean(y, axis=(0, 2, 3), keepdims=True)
    var = jnp.mean((y - mu) ** 2, axis=(0, 2, 3), keepdims=True)
    y = (y - mu) * lax.rsqrt(var + 1e-5)
    y = y * params['gamma'][None, :, None, None] + params['beta'][None, :, None, None]
    return jnp.maximum(y, 0.0)


if __name__ == "__main__":
    up_in1, up_in2, up_out = 4, 8, 8          # C1, C2, Cout
    N, H2, W2 = 2, 16, 8                      # low-res spatial
    H, W = 2 * H2, 2 * W2                     # high-res spatial (32 x 16)

    key = jax.random.PRNGKey(0)
    kp, ku, kx = jax.random.split(key, 3)
    params = init_params(kp, up_in1, up_in2, up_out)
    up_p = jax.random.normal(ku, (N, up_in1, H2, W2), jnp.float32)
    x_p = jax.random.normal(kx, (N, up_in2, H, W), jnp.float32)

    ref = unet_block_reference(up_p, x_p, params)

    # Exact path: f32 MXU operands / intermediates.
    fwd_f32 = jax.jit(functools.partial(unet_block, compute_dtype=jnp.float32))
    out_f32 = jax.block_until_ready(fwd_f32(up_p, x_p, params))
    assert out_f32.shape == (N, up_out, H, W), out_f32.shape
    err_f32 = float(jnp.max(jnp.abs(out_f32 - ref)))
    assert err_f32 < 2e-3, f"f32 path max abs error vs reference: {err_f32}"

    # Fast path (default): bf16 MXU operands + bf16 y intermediate,
    # f32 accumulation and f32 BN statistics.
    fwd_bf16 = jax.jit(unet_block)
    out_bf16 = jax.block_until_ready(fwd_bf16(up_p, x_p, params))
    assert out_bf16.shape == (N, up_out, H, W), out_bf16.shape
    err_bf16 = float(jnp.max(jnp.abs(out_bf16 - ref)))
    assert err_bf16 < 1e-1, f"bf16 path max abs error vs reference: {err_bf16}"

    print("KERNEL_OK")
</pallas_src>

<mosaic_0001>
module attributes {stable_mosaic.version = 11 : i64} {
  func.func @fused_s_conv3_kernel(%arg0: i32, %arg1: i32, %arg2: memref<1x16x16x4xf32, #tpu.memory_space<vmem>>, %arg3: memref<1x2x16x4xf32, #tpu.memory_space<vmem>>, %arg4: memref<1x16x16x8xf32, #tpu.memory_space<vmem>>, %arg5: memref<1x2x16x8xf32, #tpu.memory_space<vmem>>, %arg6: memref<8x4xf32, #tpu.memory_space<vmem>>, %arg7: memref<1x4xf32, #tpu.memory_space<vmem>>, %arg8: memref<3x12x8xf32, #tpu.memory_space<vmem>>, %arg9: memref<1x8xf32, #tpu.memory_space<vmem>>, %arg10: memref<1x16x16x8xf32, #tpu.memory_space<vmem>>, %arg11: memref<1x1x2x8xf32, #tpu.memory_space<vmem>>, %arg12: memref<18x18x4xf32, #tpu.memory_space<vmem>>) attributes {dimension_semantics = [#tpu.dimension_semantics<parallel>, #tpu.dimension_semantics<parallel>], iteration_bounds = array<i64: 2, 2>, scalar_prefetch = 0 : i64, scratch_operands = 1 : i64, tpu.core_type = #tpu.core_type<tc>, window_params = [{transform_indices = @transform_0, window_bounds = array<i64: 1, 16, 16, 4>}, {transform_indices = @transform_1, window_bounds = array<i64: 1, 2, 16, 4>}, {transform_indices = @transform_2, window_bounds = array<i64: 1, 16, 16, 8>}, {transform_indices = @transform_3, window_bounds = array<i64: 1, 2, 16, 8>}, {pipeline_mode = #tpu.pipeline_mode<synchronous>, transform_indices = @transform_4, window_bounds = array<i64: 8, 4>}, {pipeline_mode = #tpu.pipeline_mode<synchronous>, transform_indices = @transform_5, window_bounds = array<i64: 1, 4>}, {pipeline_mode = #tpu.pipeline_mode<synchronous>, transform_indices = @transform_6, window_bounds = array<i64: 3, 12, 8>}, {pipeline_mode = #tpu.pipeline_mode<synchronous>, transform_indices = @transform_7, window_bounds = array<i64: 1, 8>}, {transform_indices = @transform_8, window_bounds = array<i64: 1, 16, 16, 8>}, {transform_indices = @transform_9, window_bounds = array<i64: 1, 1, 2, 8>}]} {
    %c0 = arith.constant 0 : index
    %c0_0 = arith.constant 0 : index
    %0 = vector.load %arg6[%c0, %c0_0] : memref<8x4xf32, #tpu.memory_space<vmem>>, vector<8x4xf32>
    %c0_1 = arith.constant 0 : index
    %c0_2 = arith.constant 0 : index
    %1 = vector.load %arg7[%c0_1, %c0_2] : memref<1x4xf32, #tpu.memory_space<vmem>>, vector<1x4xf32>
    %c0_i32 = arith.constant 0 : i32
    %2 = arith.cmpi sgt, %arg1, %c0_i32 : i32
    %cst = arith.constant 1.000000e+00 : f32
    %cst_3 = arith.constant 0.000000e+00 : f32
    %3 = arith.select %2, %cst, %cst_3 : f32
    %c1_i32 = arith.constant 1 : i32
    %4 = arith.cmpi slt, %arg1, %c1_i32 : i32
    %cst_4 = arith.constant 1.000000e+00 : f32
    %cst_5 = arith.constant 0.000000e+00 : f32
    %5 = arith.select %4, %cst_4, %cst_5 : f32
    %c0_6 = arith.constant 0 : index
    %c0_7 = arith.constant 0 : index
    %c0_8 = arith.constant 0 : index
    %c0_9 = arith.constant 0 : index
    %6 = vector.load %arg4[%c0_6, %c0_7, %c0_8, %c0_9] : memref<1x16x16x8xf32, #tpu.memory_space<vmem>>, vector<1x16x16x8xf32>
    %7 = vector.shape_cast %6 : vector<1x16x16x8xf32> to vector<16x16x8xf32>
    %c0_10 = arith.constant 0 : index
    %c0_11 = arith.constant 0 : index
    %c0_12 = arith.constant 0 : index
    %c0_13 = arith.constant 0 : index
    %8 = vector.load %arg2[%c0_10, %c0_11, %c0_12, %c0_13] : memref<1x16x16x4xf32, #tpu.memory_space<vmem>>, vector<1x16x16x4xf32>
    %9 = vector.shape_cast %8 : vector<1x16x16x4xf32> to vector<16x16x4xf32>
    %10 = vector.shape_cast %7 : vector<16x16x8xf32> to vector<256x8xf32>
    %cst_14 = arith.constant dense<0.000000e+00> : vector<256x4xf32>
    %11 = tpu.matmul %10, %0, %cst_14 {dimension_numbers = #tpu.dot_dimension_numbers<[1], [0], [0], [1], [0, 0, 1, 1], [], []>} : vector<256x8xf32>, vector<8x4xf32>, vector<256x4xf32> -> vector<256x4xf32>
    %12 = vector.shape_cast %9 : vector<16x16x4xf32> to vector<256x4xf32>
    %13 = arith.addf %11, %12 : vector<256x4xf32>
    %14 = vector.broadcast %1 : vector<1x4xf32> to vector<256x4xf32>
    %15 = arith.addf %13, %14 : vector<256x4xf32>
    %cst_15 = arith.constant 1.000000e+00 : f32
    %16 = vector.broadcast %cst_15 : f32 to vector<256x4xf32>
    %17 = arith.mulf %15, %16 : vector<256x4xf32>
    %18 = vector.shape_cast %17 : vector<256x4xf32> to vector<16x16x4xf32>
    %cst_16 = arith.constant 0.000000e+00 : f32
    %19 = vector.broadcast %cst_16 : f32 to vector<16x1x4xf32>
    %20 = tpu.concatenate %19, %18, %19 in 1 : vector<16x1x4xf32>, vector<16x16x4xf32>, vector<16x1x4xf32> -> vector<16x18x4xf32>
    %c1 = arith.constant 1 : index
    %c0_17 = arith.constant 0 : index
    %c0_18 = arith.constant 0 : index
    %21 = vector.load %arg12[%c1, %c0_17, %c0_18] : memref<18x18x4xf32, #tpu.memory_space<vmem>>, vector<16x18x4xf32>
    tpu.vector_store %arg12[%c1, %c0_17, %c0_18], %20 {strides = array<i32>} : memref<18x18x4xf32, #tpu.memory_space<vmem>>, vector<16x18x4xf32>,
    %c0_19 = arith.constant 0 : index
    %c0_20 = arith.constant 0 : index
    %c0_21 = arith.constant 0 : index
    %c0_22 = arith.constant 0 : index
    %22 = vector.load %arg5[%c0_19, %c0_20, %c0_21, %c0_22] : memref<1x2x16x8xf32, #tpu.memory_space<vmem>>, vector<1x1x16x8xf32>
    %23 = vector.shape_cast %22 : vector<1x1x16x8xf32> to vector<1x16x8xf32>
    %c0_23 = arith.constant 0 : index
    %c0_24 = arith.constant 0 : index
    %c0_25 = arith.constant 0 : index
    %c0_26 = arith.constant 0 : index
    %24 = vector.load %arg3[%c0_23, %c0_24, %c0_25, %c0_26] : memref<1x2x16x4xf32, #tpu.memory_space<vmem>>, vector<1x1x16x4xf32>
    %25 = vector.shape_cast %24 : vector<1x1x16x4xf32> to vector<1x16x4xf32>
    %26 = vector.shape_cast %23 : vector<1x16x8xf32> to vector<16x8xf32>
    %cst_27 = arith.constant dense<0.000000e+00> : vector<16x4xf32>
    %27 = tpu.matmul %26, %0, %cst_27 {dimension_numbers = #tpu.dot_dimension_numbers<[1], [0], [0], [1], [0, 0, 1, 1], [], []>} : vector<16x8xf32>, vector<8x4xf32>, vector<16x4xf32> -> vector<16x4xf32>
    %28 = vector.shape_cast %25 : vector<1x16x4xf32> to vector<16x4xf32>
    %29 = arith.addf %27, %28 : vector<16x4xf32>
    %30 = vector.broadcast %1 : vector<1x4xf32> to vector<16x4xf32>
    %31 = arith.addf %29, %30 : vector<16x4xf32>
    %32 = vector.broadcast %3 : f32 to vector<16x4xf32>
    %33 = arith.mulf %31, %32 : vector<16x4xf32>
    %34 = vector.shape_cast %33 : vector<16x4xf32> to vector<1x16x4xf32>
    %cst_28 = arith.constant 0.000000e+00 : f32
    %35 = vector.broadcast %cst_28 : f32 to vector<1x1x4xf32>
    %36 = tpu.concatenate %35, %34, %35 in 1 : vector<1x1x4xf32>, vector<1x16x4xf32>, vector<1x1x4xf32> -> vector<1x18x4xf32>
    %c0_29 = arith.constant 0 : index
    %c0_30 = arith.constant 0 : index
    %c0_31 = arith.constant 0 : index
    %37 = vector.load %arg12[%c0_29, %c0_30, %c0_31] : memref<18x18x4xf32, #tpu.memory_space<vmem>>, vector<1x18x4xf32>
    tpu.vector_store %arg12[%c0_29, %c0_30, %c0_31], %36 {strides = array<i32>} : memref<18x18x4xf32, #tpu.memory_space<vmem>>, vector<1x18x4xf32>,
    %c0_32 = arith.constant 0 : index
    %c1_33 = arith.constant 1 : index
    %c0_34 = arith.constant 0 : index
    %c0_35 = arith.constant 0 : index
    %38 = vector.load %arg5[%c0_32, %c1_33, %c0_34, %c0_35] : memref<1x2x16x8xf32, #tpu.memory_space<vmem>>, vector<1x1x16x8xf32>
    %39 = vector.shape_cast %38 : vector<1x1x16x8xf32> to vector<1x16x8xf32>
    %c0_36 = arith.constant 0 : index
    %c1_37 = arith.constant 1 : index
    %c0_38 = arith.constant 0 : index
    %c0_39 = arith.constant 0 : index
    %40 = vector.load %arg3[%c0_36, %c1_37, %c0_38, %c0_39] : memref<1x2x16x4xf32, #tpu.memory_space<vmem>>, vector<1x1x16x4xf32>
    %41 = vector.shape_cast %40 : vector<1x1x16x4xf32> to vector<1x16x4xf32>
    %42 = vector.shape_cast %39 : vector<1x16x8xf32> to vector<16x8xf32>
    %cst_40 = arith.constant dense<0.000000e+00> : vector<16x4xf32>
    %43 = tpu.matmul %42, %0, %cst_40 {dimension_numbers = #tpu.dot_dimension_numbers<[1], [0], [0], [1], [0, 0, 1, 1], [], []>} : vector<16x8xf32>, vector<8x4xf32>, vector<16x4xf32> -> vector<16x4xf32>
    %44 = vector.shape_cast %41 : vector<1x16x4xf32> to vector<16x4xf32>
    %45 = arith.addf %43, %44 : vector<16x4xf32>
    %46 = vector.broadcast %1 : vector<1x4xf32> to vector<16x4xf32>
    %47 = arith.addf %45, %46 : vector<16x4xf32>
    %48 = vector.broadcast %5 : f32 to vector<16x4xf32>
    %49 = arith.mulf %47, %48 : vector<16x4xf32>
    %50 = vector.shape_cast %49 : vector<16x4xf32> to vector<1x16x4xf32>
    %cst_41 = arith.constant 0.000000e+00 : f32
    %51 = vector.broadcast %cst_41 : f32 to vector<1x1x4xf32>
    %52 = tpu.concatenate %51, %50, %51 in 1 : vector<1x1x4xf32>, vector<1x16x4xf32>, vector<1x1x4xf32> -> vector<1x18x4xf32>
    %c17 = arith.constant 17 : index
    %c0_42 = arith.constant 0 : index
    %c0_43 = arith.constant 0 : index
    %53 = vector.load %arg12[%c17, %c0_42, %c0_43] : memref<18x18x4xf32, #tpu.memory_space<vmem>>, vector<1x18x4xf32>
    tpu.vector_store %arg12[%c17, %c0_42, %c0_43], %52 {strides = array<i32>} : memref<18x18x4xf32, #tpu.memory_space<vmem>>, vector<1x18x4xf32>,
    %c0_44 = arith.constant 0 : index
    %c0_45 = arith.constant 0 : index
    %c0_46 = arith.constant 0 : index
    %54 = vector.load %arg12[%c0_44, %c0_45, %c0_46] : memref<18x18x4xf32, #tpu.memory_space<vmem>>, vector<16x16x4xf32>
    %c0_47 = arith.constant 0 : index
    %c1_48 = arith.constant 1 : index
    %c0_49 = arith.constant 0 : index
    %55 = vector.load %arg12[%c0_47, %c1_48, %c0_49] : memref<18x18x4xf32, #tpu.memory_space<vmem>>, vector<16x16x4xf32>
    %c0_50 = arith.constant 0 : index
    %c2 = arith.constant 2 : index
    %c0_51 = arith.constant 0 : index
    %56 = vector.load %arg12[%c0_50, %c2, %c0_51] : memref<18x18x4xf32, #tpu.memory_space<vmem>>, vector<16x16x4xf32>
    %57 = tpu.concatenate %54, %55, %56 in 2 : vector<16x16x4xf32>, vector<16x16x4xf32>, vector<16x16x4xf32> -> vector<16x16x12xf32>
    %58 = vector.shape_cast %57 : vector<16x16x12xf32> to vector<256x12xf32>
    %c0_52 = arith.constant 0 : index
    %c0_53 = arith.constant 0 : index
    %c0_54 = arith.constant 0 : index
    %59 = vector.load %arg8[%c0_52, %c0_53, %c0_54] : memref<3x12x8xf32, #tpu.memory_space<vmem>>, vector<1x12x8xf32>
    %60 = vector.shape_cast %59 : vector<1x12x8xf32> to vector<12x8xf32>
    %cst_55 = arith.constant dense<0.000000e+00> : vector<256x8xf32>
    %61 = tpu.matmul %58, %60, %cst_55 {dimension_numbers = #tpu.dot_dimension_numbers<[1], [0], [0], [1], [0, 0, 1, 1], [], []>} : vector<256x12xf32>, vector<12x8xf32>, vector<256x8xf32> -> vector<256x8xf32>
    %c1_56 = arith.constant 1 : index
    %c0_57 = arith.constant 0 : index
    %c0_58 = arith.constant 0 : index
    %62 = vector.load %arg12[%c1_56, %c0_57, %c0_58] : memref<18x18x4xf32, #tpu.memory_space<vmem>>, vector<16x16x4xf32>
    %c1_59 = arith.constant 1 : index
    %c1_60 = arith.constant 1 : index
    %c0_61 = arith.constant 0 : index
    %63 = vector.load %arg12[%c1_59, %c1_60, %c0_61] : memref<18x18x4xf32, #tpu.memory_space<vmem>>, vector<16x16x4xf32>
    %c1_62 = arith.constant 1 : index
    %c2_63 = arith.constant 2 : index
    %c0_64 = arith.constant 0 : index
    %64 = vector.load %arg12[%c1_62, %c2_63, %c0_64] : memref<18x18x4xf32, #tpu.memory_space<vmem>>, vector<16x16x4xf32>
    %65 = tpu.concatenate %62, %63, %64 in 2 : vector<16x16x4xf32>, vector<16x16x4xf32>, vector<16x16x4xf32> -> vector<16x16x12xf32>
    %66 = vector.shape_cast %65 : vector<16x16x12xf32> to vector<256x12xf32>
    %c1_65 = arith.constant 1 : index
    %c0_66 = arith.constant 0 : index
    %c0_67 = arith.constant 0 : index
    %67 = vector.load %arg8[%c1_65, %c0_66, %c0_67] : memref<3x12x8xf32, #tpu.memory_space<vmem>>, vector<1x12x8xf32>
    %68 = vector.shape_cast %67 : vector<1x12x8xf32> to vector<12x8xf32>
    %cst_68 = arith.constant dense<0.000000e+00> : vector<256x8xf32>
    %69 = tpu.matmul %66, %68, %cst_68 {dimension_numbers = #tpu.dot_dimension_numbers<[1], [0], [0], [1], [0, 0, 1, 1], [], []>} : vector<256x12xf32>, vector<12x8xf32>, vector<256x8xf32> -> vector<256x8xf32>
    %70 = arith.addf %61, %69 : vector<256x8xf32>
    %c2_69 = arith.constant 2 : index
    %c0_70 = arith.constant 0 : index
    %c0_71 = arith.constant 0 : index
    %71 = vector.load %arg12[%c2_69, %c0_70, %c0_71] : memref<18x18x4xf32, #tpu.memory_space<vmem>>, vector<16x16x4xf32>
    %c2_72 = arith.constant 2 : index
    %c1_73 = arith.constant 1 : index
    %c0_74 = arith.constant 0 : index
    %72 = vector.load %arg12[%c2_72, %c1_73, %c0_74] : memref<18x18x4xf32, #tpu.memory_space<vmem>>, vector<16x16x4xf32>
    %c2_75 = arith.constant 2 : index
    %c2_76 = arith.constant 2 : index
    %c0_77 = arith.constant 0 : index
    %73 = vector.load %arg12[%c2_75, %c2_76, %c0_77] : memref<18x18x4xf32, #tpu.memory_space<vmem>>, vector<16x16x4xf32>
    %74 = tpu.concatenate %71, %72, %73 in 2 : vector<16x16x4xf32>, vector<16x16x4xf32>, vector<16x16x4xf32> -> vector<16x16x12xf32>
    %75 = vector.shape_cast %74 : vector<16x16x12xf32> to vector<256x12xf32>
    %c2_78 = arith.constant 2 : index
    %c0_79 = arith.constant 0 : index
    %c0_80 = arith.constant 0 : index
    %76 = vector.load %arg8[%c2_78, %c0_79, %c0_80] : memref<3x12x8xf32, #tpu.memory_space<vmem>>, vector<1x12x8xf32>
    %77 = vector.shape_cast %76 : vector<1x12x8xf32> to vector<12x8xf32>
    %cst_81 = arith.constant dense<0.000000e+00> : vector<256x8xf32>
    %78 = tpu.matmul %75, %77, %cst_81 {dimension_numbers = #tpu.dot_dimension_numbers<[1], [0], [0], [1], [0, 0, 1, 1], [], []>} : vector<256x12xf32>, vector<12x8xf32>, vector<256x8xf32> -> vector<256x8xf32>
    %79 = arith.addf %70, %78 : vector<256x8xf32>
    %c0_82 = arith.constant 0 : index
    %c0_83 = arith.constant 0 : index
    %80 = vector.load %arg9[%c0_82, %c0_83] : memref<1x8xf32, #tpu.memory_space<vmem>>, vector<1x8xf32>
    %81 = vector.broadcast %80 : vector<1x8xf32> to vector<256x8xf32>
    %82 = arith.addf %79, %81 : vector<256x8xf32>
    %cst_84 = arith.constant dense<0.000000e+00> : vector<8xf32>
    %83 = vector.multi_reduction <add>, %82, %cst_84 [0] : vector<256x8xf32> to vector<8xf32>
    %84 = vector.shape_cast %83 : vector<8xf32> to vector<1x1x1x8xf32>
    %c0_85 = arith.constant 0 : index
    %c0_86 = arith.constant 0 : index
    %c0_87 = arith.constant 0 : index
    %c0_88 = arith.constant 0 : index
    %85 = vector.load %arg11[%c0_85, %c0_86, %c0_87, %c0_88] : memref<1x1x2x8xf32, #tpu.memory_space<vmem>>, vector<1x1x1x8xf32>
    tpu.vector_store %arg11[%c0_85, %c0_86, %c0_87, %c0_88], %84 {strides = array<i32>} : memref<1x1x2x8xf32, #tpu.memory_space<vmem>>, vector<1x1x1x8xf32>,
    %86 = arith.mulf %82, %82 : vector<256x8xf32>
    %cst_89 = arith.constant dense<0.000000e+00> : vector<8xf32>
    %87 = vector.multi_reduction <add>, %86, %cst_89 [0] : vector<256x8xf32> to vector<8xf32>
    %88 = vector.shape_cast %87 : vector<8xf32> to vector<1x1x1x8xf32>
    %c0_90 = arith.constant 0 : index
    %c0_91 = arith.constant 0 : index
    %c1_92 = arith.constant 1 : index
    %c0_93 = arith.constant 0 : index
    %89 = vector.load %arg11[%c0_90, %c0_91, %c1_92, %c0_93] : memref<1x1x2x8xf32, #tpu.memory_space<vmem>>, vector<1x1x1x8xf32>
    tpu.vector_store %arg11[%c0_90, %c0_91, %c1_92, %c0_93], %88 {strides = array<i32>} : memref<1x1x2x8xf32, #tpu.memory_space<vmem>>, vector<1x1x1x8xf32>,
    %90 = vector.shape_cast %82 : vector<256x8xf32> to vector<1x16x16x8xf32>
    %c0_94 = arith.constant 0 : index
    %c0_95 = arith.constant 0 : index
    %c0_96 = arith.constant 0 : index
    %c0_97 = arith.constant 0 : index
    %91 = vector.load %arg10[%c0_94, %c0_95, %c0_96, %c0_97] : memref<1x16x16x8xf32, #tpu.memory_space<vmem>>, vector<1x16x16x8xf32>
    tpu.vector_store %arg10[%c0_94, %c0_95, %c0_96, %c0_97], %90 {strides = array<i32>} : memref<1x16x16x8xf32, #tpu.memory_space<vmem>>, vector<1x16x16x8xf32>,
    return
  }
  func.func @transform_0(%arg0: i32, %arg1: i32) -> (i32, i32, i32, i32) {
    %c0_i32 = arith.constant 0 : i32
    %c0_i32_0 = arith.constant 0 : i32
    %c0_i32_1 = arith.constant 0 : i32
    return %arg0, %arg1, %c0_i32, %c0_i32_0 : i32, i32, i32, i32
  }
  func.func @transform_1(%arg0: i32, %arg1: i32) -> (i32, i32, i32, i32) {
    %c0_i32 = arith.constant 0 : i32
    %c0_i32_0 = arith.constant 0 : i32
    %c0_i32_1 = arith.constant 0 : i32
    return %arg0, %arg1, %c0_i32, %c0_i32_0 : i32, i32, i32, i32
  }
  func.func @transform_2(%arg0: i32, %arg1: i32) -> (i32, i32, i32, i32) {
    %c0_i32 = arith.constant 0 : i32
    %c0_i32_0 = arith.constant 0 : i32
    %c0_i32_1 = arith.constant 0 : i32
    return %arg0, %arg1, %c0_i32, %c0_i32_0 : i32, i32, i32, i32
  }
  func.func @transform_3(%arg0: i32, %arg1: i32) -> (i32, i32, i32, i32) {
    %c0_i32 = arith.constant 0 : i32
    %c0_i32_0 = arith.constant 0 : i32
    %c0_i32_1 = arith.constant 0 : i32
    return %arg0, %arg1, %c0_i32, %c0_i32_0 : i32, i32, i32, i32
  }
  func.func @transform_4(%arg0: i32, %arg1: i32) -> (i32, i32) {
    %c0_i32 = arith.constant 0 : i32
    %c0_i32_0 = arith.constant 0 : i32
    %c0_i32_1 = arith.constant 0 : i32
    return %c0_i32, %c0_i32_0 : i32, i32
  }
  func.func @transform_5(%arg0: i32, %arg1: i32) -> (i32, i32) {
    %c0_i32 = arith.constant 0 : i32
    %c0_i32_0 = arith.constant 0 : i32
    %c0_i32_1 = arith.constant 0 : i32
    return %c0_i32, %c0_i32_0 : i32, i32
  }
  func.func @transform_6(%arg0: i32, %arg1: i32) -> (i32, i32, i32) {
    %c0_i32 = arith.constant 0 : i32
    %c0_i32_0 = arith.constant 0 : i32
    %c0_i32_1 = arith.constant 0 : i32
    %c0_i32_2 = arith.constant 0 : i32
    return %c0_i32, %c0_i32_0, %c0_i32_1 : i32, i32, i32
  }
  func.func @transform_7(%arg0: i32, %arg1: i32) -> (i32, i32) {
    %c0_i32 = arith.constant 0 : i32
    %c0_i32_0 = arith.constant 0 : i32
    %c0_i32_1 = arith.constant 0 : i32
    return %c0_i32, %c0_i32_0 : i32, i32
  }
  func.func @transform_8(%arg0: i32, %arg1: i32) -> (i32, i32, i32, i32) {
    %c0_i32 = arith.constant 0 : i32
    %c0_i32_0 = arith.constant 0 : i32
    %c0_i32_1 = arith.constant 0 : i32
    return %arg0, %arg1, %c0_i32, %c0_i32_0 : i32, i32, i32, i32
  }
  func.func @transform_9(%arg0: i32, %arg1: i32) -> (i32, i32, i32, i32) {
    %c0_i32 = arith.constant 0 : i32
    %c0_i32_0 = arith.constant 0 : i32
    %c0_i32_1 = arith.constant 0 : i32
    return %arg0, %arg1, %c0_i32, %c0_i32_0 : i32, i32, i32, i32
  }
}

module attributes {stable_mosaic.version = 11 : i64} {
  func.func @bn_relu_kernel(%arg0: i32, %arg1: i32, %arg2: memref<1x16x16x8xf32, #tpu.memory_space<vmem>>, %arg3: memref<1x8xf32, #tpu.memory_space<vmem>>, %arg4: memref<1x8xf32, #tpu.memory_space<vmem>>, %arg5: memref<1x16x16x8xf32, #tpu.memory_space<vmem>>) attributes {dimension_semantics = [#tpu.dimension_semantics<parallel>, #tpu.dimension_semantics<parallel>], iteration_bounds = array<i64: 2, 2>, scalar_prefetch = 0 : i64, scratch_operands = 0 : i64, tpu.core_type = #tpu.core_type<tc>, window_params = [{transform_indices = @transform_0, window_bounds = array<i64: 1, 16, 16, 8>}, {pipeline_mode = #tpu.pipeline_mode<synchronous>, transform_indices = @transform_1, window_bounds = array<i64: 1, 8>}, {pipeline_mode = #tpu.pipeline_mode<synchronous>, transform_indices = @transform_2, window_bounds = array<i64: 1, 8>}, {transform_indices = @transform_3, window_bounds = array<i64: 1, 16, 16, 8>}]} {
    %c0 = arith.constant 0 : index
    %c0_0 = arith.constant 0 : index
    %c0_1 = arith.constant 0 : index
    %c0_2 = arith.constant 0 : index
    %0 = vector.load %arg2[%c0, %c0_0, %c0_1, %c0_2] : memref<1x16x16x8xf32, #tpu.memory_space<vmem>>, vector<1x16x16x8xf32>
    %c0_3 = arith.constant 0 : index
    %c0_4 = arith.constant 0 : index
    %1 = vector.load %arg3[%c0_3, %c0_4] : memref<1x8xf32, #tpu.memory_space<vmem>>, vector<1x8xf32>
    %2 = vector.shape_cast %1 : vector<1x8xf32> to vector<1x1x1x8xf32>
    %3 = vector.broadcast %2 : vector<1x1x1x8xf32> to vector<1x16x16x8xf32>
    %4 = arith.mulf %0, %3 : vector<1x16x16x8xf32>
    %c0_5 = arith.constant 0 : index
    %c0_6 = arith.constant 0 : index
    %5 = vector.load %arg4[%c0_5, %c0_6] : memref<1x8xf32, #tpu.memory_space<vmem>>, vector<1x8xf32>
    %6 = vector.shape_cast %5 : vector<1x8xf32> to vector<1x1x1x8xf32>
    %7 = vector.broadcast %6 : vector<1x1x1x8xf32> to vector<1x16x16x8xf32>
    %8 = arith.addf %4, %7 : vector<1x16x16x8xf32>
    %cst = arith.constant 0.000000e+00 : f32
    %9 = vector.broadcast %cst : f32 to vector<1x16x16x8xf32>
    %10 = arith.maximumf %8, %9 : vector<1x16x16x8xf32>
    %c0_7 = arith.constant 0 : index
    %c0_8 = arith.constant 0 : index
    %c0_9 = arith.constant 0 : index
    %c0_10 = arith.constant 0 : index
    %11 = vector.load %arg5[%c0_7, %c0_8, %c0_9, %c0_10] : memref<1x16x16x8xf32, #tpu.memory_space<vmem>>, vector<1x16x16x8xf32>
    tpu.vector_store %arg5[%c0_7, %c0_8, %c0_9, %c0_10], %10 {strides = array<i32>} : memref<1x16x16x8xf32, #tpu.memory_space<vmem>>, vector<1x16x16x8xf32>,
    return
  }
  func.func @transform_0(%arg0: i32, %arg1: i32) -> (i32, i32, i32, i32) {
    %c0_i32 = arith.constant 0 : i32
    %c0_i32_0 = arith.constant 0 : i32
    %c0_i32_1 = arith.constant 0 : i32
    return %arg0, %arg1, %c0_i32, %c0_i32_0 : i32, i32, i32, i32
  }
  func.func @transform_1(%arg0: i32, %arg1: i32) -> (i32, i32) {
    %c0_i32 = arith.constant 0 : i32
    %c0_i32_0 = arith.constant 0 : i32
    %c0_i32_1 = arith.constant 0 : i32
    return %c0_i32, %c0_i32_0 : i32, i32
  }
  func.func @transform_2(%arg0: i32, %arg1: i32) -> (i32, i32) {
    %c0_i32 = arith.constant 0 : i32
    %c0_i32_0 = arith.constant 0 : i32
    %c0_i32_1 = arith.constant 0 : i32
    return %c0_i32, %c0_i32_0 : i32, i32
  }
  func.func @transform_3(%arg0: i32, %arg1: i32) -> (i32, i32, i32, i32) {
    %c0_i32 = arith.constant 0 : i32
    %c0_i32_0 = arith.constant 0 : i32
    %c0_i32_1 = arith.constant 0 : i32
    return %arg0, %arg1, %c0_i32, %c0_i32_0 : i32, i32, i32, i32
  }
}

</mosaic_0001>

<bundles_post_ra>
// kernel: unet_block.3
= control target key start
LH: loop header
LB: loop body
LE: loop exit
PB: predicated region body
PF: predicated region fallthrough
CT: control target
= control target key end

     0   :  { %s606_s12 = smov 0   ;;  %s608_s13 = smov 0   ;;  %s831_s0 = inlined_call_operand.vmem [shape: f32[2,32,16,8], index: 0, kind: input, shape index: {}]   ;;  %s832_s1 = inlined_call_operand.vmem [shape: f32[1,8], index: 1, kind: input, shape index: {}]   ;;  %s833_s2 = inlined_call_operand.vmem [shape: f32[1,8], index: 2, kind: input, shape index: {}]   ;;  %s834_s3 = inlined_call_operand.vmem [shape: f32[2,32,16,8], index: 3, kind: output, shape index: {}]  }
   0x1   :  { %s610_s14 = smov 0   ;;  %s612_s15 = smov 0  }
   0x2   :  { %s614_s16 = smov 0  }
   0x3 LB: > { %s22_s17 = sadd.s32 1, %s576_s14  ;;  %s25_s18 = sadd.s32 1, %s580_s15  ;;  %s584_s16 = sphi %s614_s16, %s13_s16   ;;  %s580_s15 = sphi %s612_s15, %s838_s15   ;;  %s576_s14 = sphi %s610_s14, %s837_s14   ;;  %s572_s13 = sphi %s608_s13, %s836_s13   ;;  %s568_s12 = sphi %s606_s12, %s835_s12  }
   0x4   : > { %p23_p0 = scmp.ge.s32.totalorder %s22_s17, 2  ;;  %p493_p1 = scmp.ge.s32.totalorder %s584_s16, 1 }
   0x5   : > { %p159_p2 = scmp.lt.s32.totalorder %s584_s16, 5 }
   0x6   : > { %s840_s17 = smov (%p23_p0, %s22_s17), 0  ;;  %s842_s18 = smov (!%p23_p0, %s25_s18), %s580_s15 }
   0x7   : > { %p160_p3 = pnand %p493_p1, %p159_p2  ;;  %p27_p4 = scmp.ge.s32.totalorder %s842_s18, 2 }
   0x8   : > { %s494_s19 = sshll.u32 (!%p160_p3), %s568_s12, 4  ;;  %p194_p5 = scmp.lt.s32.totalorder (!%p160_p3), %s572_s13, 1  ;;  %v639_v0 = vld [vmem:[%s832_s1] ss:$0 sm:$0xff] (!%p160_p3)  ;;  %vm357_vm0 = vcmask (!%p160_p3), 64512  }
   0x9   : > { %s844_s18 = smov (%p27_p4, %s842_s18), 0  ;;  %163 = sbr.rel (%p160_p3) target bundleno = 51 (0x33), region = 32 }
   0xa   : > { %p196_p6 = scmp.lt.s32.totalorder (!%p160_p3), %s494_s19, 31  ;;  %v649_v1 = vld [vmem:[%s833_s2] ss:$0 sm:$0xff] (!%p160_p3) }
  0x10   : > { %s846_s13 = smov (!%p194_p5, %s572_s13), 1  ;;  %s848_s19 = smov (!%p196_p6, %s494_s19), 31 }
  0x11   : > { %s496_s20 = sshll.u32 %s846_s13, 6  ;;  %s495_s21 = sshll.u32 %s848_s19, 1 }
  0x12   : > { %s200_s22 = sadd.s32 %s496_s20, %s495_s21 }
  0x13   : > { %s497_s23 = sshll.u32 %s200_s22, 3 }
  0x14   : > { %s644_s28 = scalar_lea.vmem %s831_s0, %s497_s23  ;;  %s672_s6 = scalar_lea.vmem %s834_s3, %s497_s23 }
  0x15   : > { %v215_v2 = vld [vmem:[%s644_s28] sm:$0xff]  ;;  %v216_v3 = vld [vmem:[%s644_s28 + $0x8] sm:$0xff]  ;;  %v217_v4 = vld [vmem:[%s644_s28 + $0x10] sm:$0xff] }
  0x16   : > { %v254_v5 = vmul.f32 %v639_v0, %v215_v2  ;;  %v255_v6 = vmul.f32 %v639_v0, %v216_v3  ;;  %v256_v7 = vmul.f32 %v639_v0, %v217_v4  ;;  %v218_v8 = vld [vmem:[%s644_s28 + $0x18] sm:$0xff]  ;;  %v219_v9 = vld [vmem:[%s644_s28 + $0x20] sm:$0xff]  ;;  %v220_v10 = vld [vmem:[%s644_s28 + $0x28] sm:$0xff] }
  0x17   : > { %v257_v11 = vmul.f32 %v639_v0, %v218_v8  ;;  %v258_v12 = vmul.f32 %v639_v0, %v219_v9  ;;  %v259_v13 = vmul.f32 %v639_v0, %v220_v10  ;;  %v221_v14 = vld [vmem:[%s644_s28 + $0x30] sm:$0xff]  ;;  %v222_v15 = vld [vmem:[%s644_s28 + $0x38] sm:$0xff]  ;;  %v223_v24 = vld [vmem:[%s644_s28 + $0x40] sm:$0xff] }
  0x18   : > { %v293_v16 = vadd.f32 %v649_v1, %v254_v5  ;;  %v294_v17 = vadd.f32 %v649_v1, %v255_v6  ;;  %v295_v18 = vadd.f32 %v649_v1, %v256_v7  ;;  %v260_v19 = vmul.f32 %v639_v0, %v221_v14  ;;  %v224_v25 = vld [vmem:[%s644_s28 + $0x48] sm:$0xff]  ;;  %v225_v26 = vld [vmem:[%s644_s28 + $0x50] sm:$0xff]  ;;  %v226_v31 = vld [vmem:[%s644_s28 + $0x58] sm:$0xff] }
  0x19   : > { %v296_v20 = vadd.f32 %v649_v1, %v257_v11  ;;  %v297_v21 = vadd.f32 %v649_v1, %v258_v12  ;;  %v298_v22 = vadd.f32 %v649_v1, %v259_v13  ;;  %v261_v23 = vmul.f32 %v639_v0, %v222_v15  ;;  %v227_v32 = vld [vmem:[%s644_s28 + $0x60] sm:$0xff]  ;;  %v228_v33 = vld [vmem:[%s644_s28 + $0x68] sm:$0xff]  ;;  %v229_v38 = vld [vmem:[%s644_s28 + $0x70] sm:$0xff] }
  0x1a   : > { %v325_v27 = vmax.f32 %v293_v16, 0.0  ;;  %v326_v28 = vmax.f32 %v294_v17, 0.0  ;;  %v327_v29 = vmax.f32 %v295_v18, 0.0  ;;  %v299_v30 = vadd.f32 %v649_v1, %v260_v19  ;;  %v230_v43 = vld [vmem:[%s644_s28 + $0x78] sm:$0xff]  ;;  %v231_v56 = vld [vmem:[%s644_s28 + $0x80] sm:$0xff]  ;;  %v232_v57 = vld [vmem:[%s644_s28 + $0x88] sm:$0xff] }
  0x1b   : > { %v328_v34 = vmax.f32 %v296_v20, 0.0  ;;  %v329_v35 = vmax.f32 %v297_v21, 0.0  ;;  %v330_v36 = vmax.f32 %v298_v22, 0.0  ;;  %v300_v37 = vadd.f32 %v649_v1, %v261_v23  ;;  %v233_v58 = vld [vmem:[%s644_s28 + $0x90] sm:$0xff]  ;;  %v234_v63 = vld [vmem:[%s644_s28 + $0x98] sm:$0xff]  ;;  %v235_v2 = vld [vmem:[%s644_s28 + $0xa0] sm:$0xff] }
  0x1c   : > { %358 = vst.msk [vmem:[%s672_s6] sm:$0xff] %vm357_vm0, %v325_v27  ;;  %359 = vst.msk [vmem:[%s672_s6 + $0x8] sm:$0xff] %vm357_vm0, %v326_v28  ;;  %v331_v39 = vmax.f32 %v299_v30, 0.0  ;;  %v262_v40 = vmul.f32 %v639_v0, %v223_v24  ;;  %v263_v41 = vmul.f32 %v639_v0, %v224_v25  ;;  %v264_v42 = vmul.f32 %v639_v0, %v225_v26  ;;  %v236_v3 = vld [vmem:[%s644_s28 + $0xa8] sm:$0xff]  ;;  %v237_v8 = vld [vmem:[%s644_s28 + $0xb0] sm:$0xff] }
  0x1d   : > { %360 = vst.msk [vmem:[%s672_s6 + $0x10] sm:$0xff] %vm357_vm0, %v327_v29  ;;  %361 = vst.msk [vmem:[%s672_s6 + $0x18] sm:$0xff] %vm357_vm0, %v328_v34  ;;  %v332_v44 = vmax.f32 %v300_v37, 0.0  ;;  %v265_v45 = vmul.f32 %v639_v0, %v226_v31  ;;  %v266_v46 = vmul.f32 %v639_v0, %v227_v32  ;;  %v267_v47 = vmul.f32 %v639_v0, %v228_v33  ;;  %v238_v13 = vld [vmem:[%s644_s28 + $0xb8] sm:$0xff]  ;;  %v239_v26 = vld [vmem:[%s644_s28 + $0xc0] sm:$0xff] }
  0x1e   : > { %362 = vst.msk [vmem:[%s672_s6 + $0x20] sm:$0xff] %vm357_vm0, %v329_v35  ;;  %363 = vst.msk [vmem:[%s672_s6 + $0x28] sm:$0xff] %vm357_vm0, %v330_v36  ;;  %v301_v48 = vadd.f32 %v649_v1, %v262_v40  ;;  %v302_v49 = vadd.f32 %v649_v1, %v263_v41  ;;  %v303_v50 = vadd.f32 %v649_v1, %v264_v42  ;;  %v240_v27 = vld [vmem:[%s644_s28 + $0xc8] sm:$0xff]  ;;  %v241_v28 = vld [vmem:[%s644_s28 + $0xd0] sm:$0xff] }
  0x1f   : > { %364 = vst.msk [vmem:[%s672_s6 + $0x30] sm:$0xff] %vm357_vm0, %v331_v39  ;;  %v268_v51 = vmul.f32 %v639_v0, %v229_v38  ;;  %365 = vst.msk [vmem:[%s672_s6 + $0x38] sm:$0xff] %vm357_vm0, %v332_v44  ;;  %v304_v52 = vadd.f32 %v649_v1, %v265_v45  ;;  %v305_v53 = vadd.f32 %v649_v1, %v266_v46  ;;  %v242_v33 = vld [vmem:[%s644_s28 + $0xd8] sm:$0xff]  ;;  %v243_v34 = vld [vmem:[%s644_s28 + $0xe0] sm:$0xff] }
  0x20   : > { %v306_v54 = vadd.f32 %v649_v1, %v267_v47  ;;  %v269_v55 = vmul.f32 %v639_v0, %v230_v43  ;;  %v333_v59 = vmax.f32 %v301_v48, 0.0  ;;  %v334_v60 = vmax.f32 %v302_v49, 0.0  ;;  %v244_v35 = vld [vmem:[%s644_s28 + $0xe8] sm:$0xff]  ;;  %v245_v40 = vld [vmem:[%s644_s28 + $0xf0] sm:$0xff]  ;;  %v246_v45 = vld [vmem:[%s644_s28 + $0xf8] sm:$0xff] }
  0x21   : > { %v335_v61 = vmax.f32 %v303_v50, 0.0  ;;  %v307_v62 = vadd.f32 %v649_v1, %v268_v51  ;;  %v336_v4 = vmax.f32 %v304_v52, 0.0  ;;  %v337_v5 = vmax.f32 %v305_v53, 0.0 }
  0x22   : > { %v338_v6 = vmax.f32 %v306_v54, 0.0  ;;  %v308_v7 = vadd.f32 %v649_v1, %v269_v55  ;;  %366 = vst.msk [vmem:[%s672_s6 + $0x40] sm:$0xff] %vm357_vm0, %v333_v59  ;;  %367 = vst.msk [vmem:[%s672_s6 + $0x48] sm:$0xff] %vm357_vm0, %v334_v60  ;;  %v270_v10 = vmul.f32 %v639_v0, %v231_v56  ;;  %v271_v11 = vmul.f32 %v639_v0, %v232_v57 }
  0x23   : > { %368 = vst.msk [vmem:[%s672_s6 + $0x50] sm:$0xff] %vm357_vm0, %v335_v61  ;;  %v339_v9 = vmax.f32 %v307_v62, 0.0  ;;  %v272_v12 = vmul.f32 %v639_v0, %v233_v58  ;;  %369 = vst.msk [vmem:[%s672_s6 + $0x58] sm:$0xff] %vm357_vm0, %v336_v4  ;;  %v273_v15 = vmul.f32 %v639_v0, %v234_v63  ;;  %v274_v16 = vmul.f32 %v639_v0, %v235_v2 }
  0x24   : > { %370 = vst.msk [vmem:[%s672_s6 + $0x60] sm:$0xff] %vm357_vm0, %v337_v5  ;;  %371 = vst.msk [vmem:[%s672_s6 + $0x68] sm:$0xff] %vm357_vm0, %v338_v6  ;;  %v340_v14 = vmax.f32 %v308_v7, 0.0  ;;  %v275_v17 = vmul.f32 %v639_v0, %v236_v3  ;;  %v309_v18 = vadd.f32 %v649_v1, %v270_v10  ;;  %v310_v19 = vadd.f32 %v649_v1, %v271_v11 }
  0x25   : > { %372 = vst.msk [vmem:[%s672_s6 + $0x70] sm:$0xff] %vm357_vm0, %v339_v9  ;;  %v311_v20 = vadd.f32 %v649_v1, %v272_v12  ;;  %v276_v21 = vmul.f32 %v639_v0, %v237_v8  ;;  %v312_v22 = vadd.f32 %v649_v1, %v273_v15  ;;  %v313_v23 = vadd.f32 %v649_v1, %v274_v16 }
  0x26   : > { %373 = vst.msk [vmem:[%s672_s6 + $0x78] sm:$0xff] %vm357_vm0, %v340_v14  ;;  %v314_v24 = vadd.f32 %v649_v1, %v275_v17  ;;  %v277_v25 = vmul.f32 %v639_v0, %v238_v13  ;;  %v341_v29 = vmax.f32 %v309_v18, 0.0  ;;  %v342_v30 = vmax.f32 %v310_v19, 0.0 }
  0x27   : > { %v343_v31 = vmax.f32 %v311_v20, 0.0  ;;  %v315_v32 = vadd.f32 %v649_v1, %v276_v21  ;;  %v344_v36 = vmax.f32 %v312_v22, 0.0  ;;  %v345_v37 = vmax.f32 %v313_v23, 0.0 }
  0x28   : > { %v346_v38 = vmax.f32 %v314_v24, 0.0  ;;  %v316_v39 = vadd.f32 %v649_v1, %v277_v25  ;;  %374 = vst.msk [vmem:[%s672_s6 + $0x80] sm:$0xff] %vm357_vm0, %v341_v29  ;;  %375 = vst.msk [vmem:[%s672_s6 + $0x88] sm:$0xff] %vm357_vm0, %v342_v30  ;;  %v278_v42 = vmul.f32 %v639_v0, %v239_v26  ;;  %v279_v43 = vmul.f32 %v639_v0, %v240_v27 }
  0x29   : > { %376 = vst.msk [vmem:[%s672_s6 + $0x90] sm:$0xff] %vm357_vm0, %v343_v31  ;;  %v347_v41 = vmax.f32 %v315_v32, 0.0  ;;  %v280_v44 = vmul.f32 %v639_v0, %v241_v28  ;;  %377 = vst.msk [vmem:[%s672_s6 + $0x98] sm:$0xff] %vm357_vm0, %v344_v36  ;;  %v281_v47 = vmul.f32 %v639_v0, %v242_v33  ;;  %v282_v48 = vmul.f32 %v639_v0, %v243_v34 }
  0x2a   : > { %378 = vst.msk [vmem:[%s672_s6 + $0xa0] sm:$0xff] %vm357_vm0, %v345_v37  ;;  %379 = vst.msk [vmem:[%s672_s6 + $0xa8] sm:$0xff] %vm357_vm0, %v346_v38  ;;  %v348_v46 = vmax.f32 %v316_v39, 0.0  ;;  %v283_v49 = vmul.f32 %v639_v0, %v244_v35  ;;  %v317_v50 = vadd.f32 %v649_v1, %v278_v42  ;;  %v318_v51 = vadd.f32 %v649_v1, %v279_v43 }
  0x2b   : > { %380 = vst.msk [vmem:[%s672_s6 + $0xb0] sm:$0xff] %vm357_vm0, %v347_v41  ;;  %v319_v52 = vadd.f32 %v649_v1, %v280_v44  ;;  %v284_v53 = vmul.f32 %v639_v0, %v245_v40  ;;  %v320_v54 = vadd.f32 %v649_v1, %v281_v47  ;;  %v321_v55 = vadd.f32 %v649_v1, %v282_v48 }
  0x2c   : > { %381 = vst.msk [vmem:[%s672_s6 + $0xb8] sm:$0xff] %vm357_vm0, %v348_v46  ;;  %v322_v56 = vadd.f32 %v649_v1, %v283_v49  ;;  %v285_v57 = vmul.f32 %v639_v0, %v246_v45  ;;  %v349_v58 = vmax.f32 %v317_v50, 0.0  ;;  %v350_v59 = vmax.f32 %v318_v51, 0.0 }
  0x2d   : > { %v351_v60 = vmax.f32 %v319_v52, 0.0  ;;  %v323_v61 = vadd.f32 %v649_v1, %v284_v53  ;;  %v352_v62 = vmax.f32 %v320_v54, 0.0  ;;  %v353_v63 = vmax.f32 %v321_v55, 0.0 }
  0x2e   : > { %v354_v2 = vmax.f32 %v322_v56, 0.0  ;;  %v324_v3 = vadd.f32 %v649_v1, %v285_v57  ;;  %382 = vst.msk [vmem:[%s672_s6 + $0xc0] sm:$0xff] %vm357_vm0, %v349_v58  ;;  %383 = vst.msk [vmem:[%s672_s6 + $0xc8] sm:$0xff] %vm357_vm0, %v350_v59 }
  0x2f   : > { %384 = vst.msk [vmem:[%s672_s6 + $0xd0] sm:$0xff] %vm357_vm0, %v351_v60  ;;  %v355_v4 = vmax.f32 %v323_v61, 0.0  ;;  %385 = vst.msk [vmem:[%s672_s6 + $0xd8] sm:$0xff] %vm357_vm0, %v352_v62 }
  0x30   : > { %386 = vst.msk [vmem:[%s672_s6 + $0xe0] sm:$0xff] %vm357_vm0, %v353_v63  ;;  %387 = vst.msk [vmem:[%s672_s6 + $0xe8] sm:$0xff] %vm357_vm0, %v354_v2  ;;  %v356_v0 = vmax.f32 %v324_v3, 0.0 }
  0x31   : > { %388 = vst.msk [vmem:[%s672_s6 + $0xf0] sm:$0xff] %vm357_vm0, %v355_v4 }
  0x32   : > { %389 = vst.msk [vmem:[%s672_s6 + $0xf8] sm:$0xff] %vm357_vm0, %v356_v0 }
  0x33 PF: > { %s13_s16 = sadd.s32 1, %s584_s16   ;;  %s835_s12 = smov %s576_s14 }
  0x34   : > { %p10_p7 = scmp.ge.s32.totalorder %s13_s16, 6   ;;  %s836_s13 = smov %s580_s15 }
  0x35   : > { %s837_s14 = smov %s840_s17  ;;  %s838_s15 = smov %s844_s18 }
  0x36   :  { %12 = sbr.rel (!%p10_p7) target bundleno = 3 (0x3), region = 62 }

// kernel: unet_block.2
= control target key start
LH: loop header
LB: loop body
LE: loop exit
PB: predicated region body
PF: predicated region fallthrough
CT: control target
= control target key end

     0   :  { %s4835_s30 = smov 0   ;;  %s4837_s10 = smov 0   ;;  %s6562_s0 = inlined_call_operand.vmem [shape: f32[2,32,16,4], index: 0, kind: input, shape index: {}]   ;;  %s6563_s1 = inlined_call_operand.vmem [shape: f32[2,4,16,4], index: 1, kind: input, shape index: {}]   ;;  %s6564_s2 = inlined_call_operand.vmem [shape: f32[2,32,16,8], index: 2, kind: input, shape index: {}]   ;;  %s6565_s3 = inlined_call_operand.vmem [shape: f32[2,4,16,8], index: 3, kind: input, shape index: {}]   ;;  %s6566_s4 = inlined_call_operand.vmem [shape: f32[8,4], index: 4, kind: input, shape index: {}]   ;;  %s6567_s5 = inlined_call_operand.vmem [shape: f32[1,4], index: 5, kind: input, shape index: {}]   ;;  %s6568_s6 = inlined_call_operand.vmem [shape: f32[3,12,8], index: 6, kind: input, shape index: {}]   ;;  %s6569_s7 = inlined_call_operand.vmem [shape: f32[1,8], index: 7, kind: input, shape index: {}]   ;;  %s6570_s8 = inlined_call_operand.vmem [shape: f32[2,32,16,8], index: 8, kind: output, shape index: {0}]   ;;  %s6571_s9 = inlined_call_operand.vmem [shape: f32[2,2,2,8], index: 9, kind: output, shape index: {1}]  }
   0x1   :  { %s4839_s11 = smov 0   ;;  %s4841_s12 = smov 0  }
   0x2   :  { %s4843_s13 = smov 0  }
   0x3 LB: > { %s29_s14 = sadd.s32 1, %s4772_s11  ;;  %s32_s15 = sadd.s32 1, %s4776_s12  ;;  %s4780_s13 = sphi %s4843_s13, %s20_s13   ;;  %s4776_s12 = sphi %s4841_s12, %s6729_s12   ;;  %s4772_s11 = sphi %s4839_s11, %s6728_s11   ;;  %s4768_s10 = sphi %s4837_s10, %s6727_s10   ;;  %s4764_s30 = sphi %s4835_s30, %s6726_s30  }
   0x4   : > { %p30_p0 = scmp.ge.s32.totalorder %s29_s14, 2  ;;  %p4086_p1 = scmp.ge.s32.totalorder %s4780_s13, 1 }
   0x5   : > { %p368_p2 = scmp.lt.s32.totalorder %s4780_s13, 5 }
   0x6   : > { %s6731_s14 = smov (%p30_p0, %s29_s14), 0  ;;  %s6733_s15 = smov (!%p30_p0, %s32_s15), %s4776_s12 }
   0x7   : > { %p369_p3 = pnand %p4086_p1, %p368_p2  ;;  %p34_p4 = scmp.ge.s32.totalorder %s6733_s15, 2 }
   0x9   : > { %s6735_s15 = smov (%p34_p4, %s6733_s15), 0  ;;  %372 = sbr.rel (%p369_p3) target bundleno = 988 (0x3dc), region = 52 }
  0x10   : > { %v515_v0 = vld [vmem:[%s6566_s4] sm:$0xff]  ;;  %s4087_s18 = sshll.u32 %s4764_s30, 4  ;;  %p453_p5 = scmp.lt.s32.totalorder %s4768_s10, 1  ;;  %vm585_vm0 = vcmask 64512   ;;  %vm977_vm1 = vcmask 1040384   ;;  %vm1110_vm2 = vcmask 25600  }
  0x11   : > { %4397 = vmatprep.subr.mxu0 %v515_v0  ;;  %p455_p6 = scmp.lt.s32.totalorder %s4087_s18, 31  ;;  %4452 = vmatprep.subr.mxu1 %v515_v0  ;;  %s4091_s26 = sshll.u32 %s4764_s30, 1  ;;  %v4973_v37 = vld [vmem:[%s6567_s5] ss:$0 sm:$0xff]  ;;  %vm1107_vm3 = vcmask 31744   ;;  %vm2300_vm4 = vcmask 1043456  }
  0x12   : > { %4398 = vmatpush3.msra.mxu0 %v515_v0  ;;  %s6737_s10 = smov (!%p453_p5, %s4768_s10), 1  ;;  %4453 = vmatpush3.msra.mxu1 %v515_v0  ;;  %p466_p7 = scmp.lt.s32.totalorder %s4091_s26, 3  ;;  %vm4783_vm5 = vmmov 1   ;;  %vm2203_vm7 = vcmask 97280   ;;  %vm3737_vm8 = vcmask 57344  }
  0x13   : > { %s6739_s18 = smov (!%p455_p6, %s4087_s18), 31  ;;  %4447 = vmatprep.subr.mxu0 %v515_v0  ;;  %s4089_s19 = sshll.u32 %s6737_s10, 6  ;;  %vm5021_vm6 = vmpackc.low %vm2300_vm4, %vm4783_vm5 }
  0x14   : > { %s4088_s20 = sshll.u32 %s6739_s18, 1  ;;  %s6741_s26 = smov (!%p466_p7, %s4091_s26), 3 }
  0x15   : > { %s459_s21 = sadd.s32 %s4089_s19, %s4088_s20  ;;  %s4092_s27 = sshll.u32 %s6741_s26, 1 }
  0x16   : > { %s4874_s22 = sshll.u32 %s459_s21, 3  ;;  %s4093_s28 = sshll.u32 %s6737_s10, 3 }
  0x17   : > { %s4880_s25 = scalar_lea.vmem %s6564_s2, %s4874_s22  ;;  %s4948_s29 = sadd.s32 %s4093_s28, %s4092_s27 }
  0x18   : > { %v521_v1 = vld [vmem:[%s4880_s25] sm:$0xff]  ;;  %v522_v2 = vld [vmem:[%s4880_s25 + $0x8] sm:$0xff]  ;;  %v523_v3 = vld [vmem:[%s4880_s25 + $0x10] sm:$0xff]  ;;  %s4094_s16 = sshll.u32 %s4948_s29, 3  ;;  %s4966_s23 = scalar_lea.vmem %s6562_s0, %s4874_s22 }
  0x19   : > { %4399 = vmatprep.mubr.msk.f32.mxu0 %vm585_vm0, %v521_v1  ;;  %v524_v4 = vld [vmem:[%s4880_s25 + $0x18] sm:$0xff]  ;;  %v525_v5 = vld [vmem:[%s4880_s25 + $0x20] sm:$0xff]  ;;  %v526_v6 = vld [vmem:[%s4880_s25 + $0x28] sm:$0xff]  ;;  %s4956_s19 = scalar_lea.vmem %s6565_s3, %s4094_s16  ;;  %s4782_s18 = smov 4  }
  0x1a   : > { %4400 = vmatmul.mubr.msk.f32.vlgmr.msra.gmra.mrb[0].mxu0 %vm585_vm0, %v522_v2  ;;  %v527_v7 = vld [vmem:[%s4880_s25 + $0x30] sm:$0xff]  ;;  %v528_v8 = vld [vmem:[%s4880_s25 + $0x38] sm:$0xff]  ;;  %v529_v9 = vld [vmem:[%s4880_s25 + $0x40] sm:$0xff]  ;;  %s4784_s20 = smov 8   ;;  %s5218_s24 = scalar_lea.vmem %s6563_s1, %s4094_s16 }
  0x1b   : > { %4402 = vmatprep.mubr.msk.f32.mxu0 %vm585_vm0, %v523_v3  ;;  %4448 = vmatpush3.msra.mxu0 %v515_v0  ;;  %v530_v10 = vld [vmem:[%s4880_s25 + $0x48] sm:$0xff]  ;;  %v531_v11 = vld [vmem:[%s4880_s25 + $0x50] sm:$0xff]  ;;  %v532_v12 = vld [vmem:[%s4880_s25 + $0x58] sm:$0xff]  ;;  %p517_p8 = scmp.gt.s32.totalorder %s4764_s30, 0  ;;  %p509_p9 = scmp.lt.s32.totalorder %s4764_s30, 1 }
  0x1c   : > { %v533_v13 = vld [vmem:[%s4880_s25 + $0x60] sm:$0xff]  ;;  %v534_v14 = vld [vmem:[%s4880_s25 + $0x68] sm:$0xff]  ;;  %v535_v15 = vld [vmem:[%s4880_s25 + $0x70] sm:$0xff] }
  0x1d   : > { %v536_v16 = vld [vmem:[%s4880_s25 + $0x78] sm:$0xff]  ;;  %v537_v17 = vld [vmem:[%s4880_s25 + $0x80] sm:$0xff]  ;;  %v538_v18 = vld [vmem:[%s4880_s25 + $0x88] sm:$0xff]  ;;  %s518_s29 = scalar_select %p517_p8, 1.0, 0.0 }
  0x1e   : > { %4403 = vmatmul.mubr.msk.f32.gmra.mrb[2].mxu0 %vm585_vm0, %v524_v4  ;;  %v539_v19 = vld [vmem:[%s4880_s25 + $0x90] sm:$0xff]  ;;  %v540_v20 = vld [vmem:[%s4880_s25 + $0x98] sm:$0xff]  ;;  %v541_v21 = vld [vmem:[%s4880_s25 + $0xa0] sm:$0xff]  ;;  %s520_s16 = scalar_select %p509_p9, 1.0, 0.0 }
  0x1f   : > { %4405 = vmatprep.mubr.msk.f32.mxu0 %vm585_vm0, %v525_v5  ;;  %v542_v22 = vld [vmem:[%s4880_s25 + $0xa8] sm:$0xff]  ;;  %v543_v23 = vld [vmem:[%s4880_s25 + $0xb0] sm:$0xff]  ;;  %v544_v24 = vld [vmem:[%s4880_s25 + $0xb8] sm:$0xff]  ;;  %s6743_s30 = smov (!%p509_p9, %s4764_s30), 1 }
  0x20   : > { %v545_v25 = vld [vmem:[%s4880_s25 + $0xc0] sm:$0xff]  ;;  %v546_v26 = vld [vmem:[%s4880_s25 + $0xc8] sm:$0xff]  ;;  %v547_v27 = vld [vmem:[%s4880_s25 + $0xd0] sm:$0xff] }
  0x21   : > { %v548_v28 = vld [vmem:[%s4880_s25 + $0xd8] sm:$0xff]  ;;  %v549_v29 = vld [vmem:[%s4880_s25 + $0xe0] sm:$0xff]  ;;  %v550_v30 = vld [vmem:[%s4880_s25 + $0xe8] sm:$0xff] }
  0x22   : > { %4406 = vmatmul.mubr.msk.f32.gmra.mrb[4].mxu0 %vm585_vm0, %v526_v6  ;;  %v551_v31 = vld [vmem:[%s4880_s25 + $0xf0] sm:$0xff]  ;;  %v552_v32 = vld [vmem:[%s4880_s25 + $0xf8] sm:$0xff]  ;;  %v1157_v33 = vld [vmem:[%s4956_s19] sm:$0xff]  ;;  %s6340_s25 = scalar_lea.vmem %s6570_s8, %s4874_s22  ;;  %s4107_s22 = sshll.u32 %s6737_s10, 1 }
  0x23   : > { %4408 = vmatprep.mubr.msk.f32.mxu0 %vm585_vm0, %v527_v7  ;;  %v1158_v34 = vld [vmem:[%s4956_s19 + $0x8] sm:$0xff]  ;;  %v553_v36 = vld [vmem:[%s4966_s23] sm:$0xff]  ;;  %v556_v42 = vld [vmem:[%s4966_s23 + $0x18] sm:$0xff]  ;;  %s512_s26 = sadd.s32 %s4107_s22, %s6743_s30 }
  0x24   : > { %v554_v35 = vld [vmem:[%s4966_s23 + $0x8] sm:$0xff]  ;;  %v555_v44 = vld [vmem:[%s4966_s23 + $0x10] sm:$0xff]  ;;  %v557_v55 = vld [vmem:[%s4966_s23 + $0x20] sm:$0xff]  ;;  %s4108_s27 = sshll.u32 %s512_s26, 1 }
  0x25   : > { %v558_v52 = vld [vmem:[%s4966_s23 + $0x28] sm:$0xff]  ;;  %v560_v1 = vld [vmem:[%s4966_s23 + $0x38] sm:$0xff]  ;;  %v559_v4 = vld [vmem:[%s4966_s23 + $0x30] sm:$0xff] }
  0x26   : > { %4409 = vmatmul.mubr.msk.f32.gmra.mrb[6].mxu0 %vm585_vm0, %v528_v8 }
  0x27   : > { %4411 = vmatprep.mubr.msk.f32.mxu0 %vm585_vm0, %v529_v9 }
  0x2a   : > { %4412 = vmatmul.mubr.msk.f32.gmra.mrb[8].mxu0 %vm585_vm0, %v530_v10 }
  0x2b   : > { %4414 = vmatprep.mubr.msk.f32.mxu0 %vm585_vm0, %v531_v11 }
  0x2e   : > { %4415 = vmatmul.mubr.msk.f32.gmra.mrb[10].mxu0 %vm585_vm0, %v532_v12 }
  0x2f   : > { %4417 = vmatprep.mubr.msk.f32.mxu0 %vm585_vm0, %v533_v13 }
  0x32   : > { %4418 = vmatmul.mubr.msk.f32.gmra.mrb[12].mxu0 %vm585_vm0, %v534_v14  ;;  %v562_v14 = vld [vmem:[%s4966_s23 + $0x48] sm:$0xff] }
  0x33   : > { %4420 = vmatprep.mubr.msk.f32.mxu0 %vm585_vm0, %v535_v15 }
  0x36   : > { %4421 = vmatmul.mubr.msk.f32.gmra.mrb[14].mxu0 %vm585_vm0, %v536_v16 }
  0x37   : > { %4423 = vmatprep.mubr.msk.f32.mxu0 %vm585_vm0, %v537_v17  ;;  %v561_v17 = vld [vmem:[%s4966_s23 + $0x40] sm:$0xff] }
  0x3a   : > { %4424 = vmatmul.mubr.msk.f32.gmra.mrb[16].mxu0 %vm585_vm0, %v538_v18  ;;  %v4150_v18 = vld [vmem:[%s6568_s6 + $0x10] sm:$0xff] }
  0x3b   : > { %4426 = vmatprep.mubr.msk.f32.mxu0 %vm585_vm0, %v539_v19  ;;  %v4151_v19 = vld [vmem:[%s6568_s6 + $0x18] sm:$0xf] }
  0x3e   : > { %4427 = vmatmul.mubr.msk.f32.gmra.mrb[18].mxu0 %vm585_vm0, %v540_v20 }
  0x3f   : > { %4429 = vmatprep.mubr.msk.f32.mxu0 %vm585_vm0, %v541_v21 }
  0x42   : > { %4430 = vmatmul.mubr.msk.f32.gmra.mrb[20].mxu0 %vm585_vm0, %v542_v22 }
  0x43   : > { %4432 = vmatprep.mubr.msk.f32.mxu0 %vm585_vm0, %v543_v23 }
  0x46   : > { %4433 = vmatmul.mubr.msk.f32.gmra.mrb[22].mxu0 %vm585_vm0, %v544_v24 }
  0x47   : > { %4435 = vmatprep.mubr.msk.f32.mxu0 %vm585_vm0, %v545_v25 }
  0x4a   : > { %4436 = vmatmul.mubr.msk.f32.gmra.mrb[24].mxu0 %vm585_vm0, %v546_v26 }
  0x4b   : > { %4438 = vmatprep.mubr.msk.f32.mxu0 %vm585_vm0, %v547_v27 }
  0x4e   : > { %4439 = vmatmul.mubr.msk.f32.gmra.mrb[26].mxu0 %vm585_vm0, %v548_v28 }
  0x4f   : > { %4441 = vmatprep.mubr.msk.f32.mxu0 %vm585_vm0, %v549_v29  ;;  %v4613_v29 = vpack.c.bf16 %v4151_v19, %v4150_v18 }
  0x51   : > { %4615 = vmatprep.subr.msk.bf16.mxu0 %vm5021_vm6, %v4613_v29 }
  0x52   : > { %4442 = vmatmul.mubr.msk.f32.gmra.mrb[28].mxu0 %vm585_vm0, %v550_v30 }
  0x53   : > { %4444 = vmatprep.mubr.msk.f32.mxu0 %vm585_vm0, %v551_v31 }
  0x56   : > { %4445 = vmatmul.mubr.msk.f32.gmra.mrb[30].mxu0 %vm585_vm0, %v552_v32  ;;  %v564_v32 = vld [vmem:[%s4966_s23 + $0x58] sm:$0xff] }
  0x57   : > { %4449 = vmatprep.mubr.msk.f32.mxu0 %vm585_vm0, %v1157_v33 }
  0x5a   : > { %4450 = vmatmul.mubr.msk.f32.vlgmr.msra.gmra.mrb[32].mxu0 %vm585_vm0, %v1158_v34 }
  0x5b   : > { %4618 = vmatpush3.bf16.msk.msra.mxu0 %vm5021_vm6, %v4613_v29 }
  0xed   : > { %v4401_v38 = vpop.f32.mrb[0].mxu0 }
  0xee   : > { %v754_v39 = vadd.f32 %v4401_v38, %v554_v35  ;;  %v748_v40 = vpop.f32.mrb[1].mxu0 }
  0xef   : > { %v749_v41 = vadd.f32 %v748_v40, %v553_v36  ;;  %v563_v36 = vld [vmem:[%s4966_s23 + $0x50] sm:$0xff] }
  0xf0   : > { %v914_v43 = vadd.f32 %v4973_v37, %v754_v39 }
  0xf1   : > { %v913_v45 = vadd.f32 %v4973_v37, %v749_v41  ;;  %v4404_v46 = vpop.f32.mrb[2].mxu0 }
  0xf2   : > { %v979_v47 = vrot.slane %v914_v43, 7  ;;  %v764_v48 = vadd.f32 %v4404_v46, %v556_v42  ;;  %v758_v49 = vpop.f32.mrb[3].mxu0 }
  0xf3   : > { %v978_v50 = vrot.slane %v913_v45, 7  ;;  %v759_v51 = vadd.f32 %v758_v49, %v555_v44  ;;  %v566_v49 = vld [vmem:[%s4966_s23 + $0x68] sm:$0xff] }
  0xf4   : > { %v1090_v53 = vsel %vm977_vm1, %v979_v47, 0.0  ;;  %v916_v54 = vadd.f32 %v4973_v37, %v764_v48 }
  0xf5   : > { %1111 = vst.msk [vmem:[#allocation2 + $0x28] sm:$0x3] %vm1110_vm2, %v1090_v53  ;;  %v980_v56 = vsel %vm977_vm1, %v978_v50, %v979_v47  ;;  %v1074_v57 = vsel %vm977_vm1, 0.0, %v978_v50  ;;  %v915_v58 = vadd.f32 %v4973_v37, %v759_v51  ;;  %v4407_v59 = vpop.f32.mrb[4].mxu0 }
  0xf6   : > { %1108 = vst.msk [vmem:[#allocation2 + $0x18] sm:$0xff] %vm1107_vm3, %v1074_v57  ;;  %1109 = vst.msk [vmem:[#allocation2 + $0x20] sm:$0xff] %vm1107_vm3, %v980_v56  ;;  %v982_v60 = vrot.slane %v916_v54, 7  ;;  %v774_v61 = vadd.f32 %v4407_v59, %v558_v52  ;;  %v768_v62 = vpop.f32.mrb[5].mxu0  ;;  %v565_v52 = vld [vmem:[%s4966_s23 + $0x60] sm:$0xff] }
  0xf7   : > { %v981_v63 = vrot.slane %v915_v58, 7  ;;  %v769_v0 = vadd.f32 %v768_v62, %v557_v55 }
  0xf8   : > { %v1091_v2 = vsel %vm977_vm1, %v982_v60, 0.0  ;;  %v918_v3 = vadd.f32 %v4973_v37, %v774_v61  ;;  %v4145_v61 = vld [vmem:[%s4956_s19 + $0x18] sm:$0xff] }
  0xf9   : > { %1114 = vst.msk [vmem:[#allocation2 + $0x40] sm:$0x3] %vm1110_vm2, %v1091_v2  ;;  %v983_v5 = vsel %vm977_vm1, %v981_v63, %v982_v60  ;;  %v1075_v6 = vsel %vm977_vm1, 0.0, %v981_v63  ;;  %v917_v7 = vadd.f32 %v4973_v37, %v769_v0  ;;  %v4410_v8 = vpop.f32.mrb[6].mxu0  ;;  %v4144_v60 = vld [vmem:[%s4956_s19 + $0x10] sm:$0xff]  ;;  %s514_s19 = scalar_lea.vmem %s6571_s9, %s4108_s27 }
  0xfa   : > { %1112 = vst.msk [vmem:[#allocation2 + $0x30] sm:$0xff] %vm1107_vm3, %v1075_v6  ;;  %1113 = vst.msk [vmem:[#allocation2 + $0x38] sm:$0xff] %vm1107_vm3, %v983_v5  ;;  %v985_v9 = vrot.slane %v918_v3, 7  ;;  %v784_v10 = vadd.f32 %v4410_v8, %v560_v1  ;;  %v778_v11 = vpop.f32.mrb[7].mxu0  ;;  %4454 = vmatprep.mubr.msk.f32.mxu1 %vm585_vm0, %v4144_v60  ;;  %v568_v1 = vld [vmem:[%s4966_s23 + $0x78] sm:$0xff] }
  0xfb   : > { %v984_v12 = vrot.slane %v917_v7, 7  ;;  %v779_v13 = vadd.f32 %v778_v11, %v559_v4  ;;  %4455 = vmatmul.mubr.msk.f32.vlgmr.msra.gmra.mrb[0].mxu1 %vm585_vm0, %v4145_v61  ;;  %v567_v11 = vld [vmem:[%s4966_s23 + $0x70] sm:$0xff] }
  0xfc   : > { %v1092_v15 = vsel %vm977_vm1, %v985_v9, 0.0  ;;  %v920_v16 = vadd.f32 %v4973_v37, %v784_v10 }
  0xfd   : > { %v5009_v20 = vld [vmem:[#allocation2 + $0x21] sm:$0xff]  ;;  %v1400_v21 = vld [vmem:[#allocation2 + $0x19] sm:$0xff]  ;;  %1117 = vst.msk [vmem:[#allocation2 + $0x58] sm:$0x3] %vm1110_vm2, %v1092_v15  ;;  %v986_v22 = vsel %vm977_vm1, %v984_v12, %v985_v9  ;;  %v1076_v23 = vsel %vm977_vm1, 0.0, %v984_v12  ;;  %v919_v24 = vadd.f32 %v4973_v37, %v779_v13  ;;  %v4413_v25 = vpop.f32.mrb[8].mxu0 }
  0xfe   : > { %1500 = vrot.lane.b32.xlu1 %v5009_v20, %s4782_s18  ;;  %1498 = vrot.lane.b32.xlu0 %v1400_v21, %s4782_s18  ;;  %1115 = vst.msk [vmem:[#allocation2 + $0x48] sm:$0xff] %vm1107_vm3, %v1076_v23  ;;  %1116 = vst.msk [vmem:[#allocation2 + $0x50] sm:$0xff] %vm1107_vm3, %v986_v22  ;;  %v988_v26 = vrot.slane %v920_v16, 7  ;;  %v794_v27 = vadd.f32 %v4413_v25, %v562_v14  ;;  %v788_v28 = vpop.f32.mrb[9].mxu0  ;;  %v5030_v38 = vld [vmem:[#allocation2 + $0x22] sm:$0xff]  ;;  %v1432_v39 = vld [vmem:[#allocation2 + $0x1a] sm:$0xff] }
  0xff   : > { %v987_v30 = vrot.slane %v919_v24, 7  ;;  %v789_v31 = vadd.f32 %v788_v28, %v561_v17 }
 0x100   : > { %v1093_v34 = vsel %vm977_vm1, %v988_v26, 0.0  ;;  %v922_v35 = vadd.f32 %v4973_v37, %v794_v27  ;;  %v570_v27 = vld [vmem:[%s4966_s23 + $0x88] sm:$0xff] }
 0x101   : > { %1120 = vst.msk [vmem:[#allocation2 + $0x70] sm:$0x3] %vm1110_vm2, %v1093_v34  ;;  %v989_v40 = vsel %vm977_vm1, %v987_v30, %v988_v26  ;;  %v1077_v41 = vsel %vm977_vm1, 0.0, %v987_v30  ;;  %v921_v42 = vadd.f32 %v4973_v37, %v789_v31  ;;  %v4416_v43 = vpop.f32.mrb[10].mxu0  ;;  %v1403_v62 = vld [vmem:[#allocation2 + $0x39] sm:$0xff]  ;;  %v2886_v23 = vld [vmem:[#allocation2 + $0x31] sm:$0xff] }
 0x102   : > { %1628 = vrot.lane.b32.xlu1 %v5030_v38, %s4784_s20  ;;  %1626 = vrot.lane.b32.xlu0 %v1432_v39, %s4784_s20  ;;  %1118 = vst.msk [vmem:[#allocation2 + $0x60] sm:$0xff] %vm1107_vm3, %v1077_v41  ;;  %1119 = vst.msk [vmem:[#allocation2 + $0x68] sm:$0xff] %vm1107_vm3, %v989_v40  ;;  %v991_v44 = vrot.slane %v922_v35, 7  ;;  %v804_v45 = vadd.f32 %v4416_v43, %v564_v32  ;;  %v798_v46 = vpop.f32.mrb[11].mxu0  ;;  %v1435_v16 = vld [vmem:[#allocation2 + $0x3a] sm:$0xff]  ;;  %v2918_v26 = vld [vmem:[#allocation2 + $0x32] sm:$0xff] }
 0x103   : > { %v990_v47 = vrot.slane %v921_v42, 7  ;;  %v799_v48 = vadd.f32 %v798_v46, %v563_v36  ;;  %v569_v34 = vld [vmem:[%s4966_s23 + $0x80] sm:$0xff]  ;;  %v572_v46 = vld [vmem:[%s4966_s23 + $0x98] sm:$0xff] }
 0x104   : > { %v1094_v50 = vsel %vm977_vm1, %v991_v44, 0.0  ;;  %v924_v51 = vadd.f32 %v4973_v37, %v804_v45 }
 0x105   : > { %1123 = vst.msk [vmem:[#allocation2 + $0x88] sm:$0x3] %vm1110_vm2, %v1094_v50  ;;  %v992_v53 = vsel %vm977_vm1, %v990_v47, %v991_v44  ;;  %v1078_v54 = vsel %vm977_vm1, 0.0, %v990_v47  ;;  %v923_v55 = vadd.f32 %v4973_v37, %v799_v48  ;;  %v4419_v56 = vpop.f32.mrb[12].mxu0  ;;  %v1405_v29 = vld [vmem:[#allocation2 + $0x51] sm:$0xff]  ;;  %v2888_v44 = vld [vmem:[#allocation2 + $0x49] sm:$0xff] }
 0x106   : > { %2040 = vrot.lane.b32.xlu1 %v1432_v39, %s4784_s20  ;;  %1912 = vrot.lane.b32.xlu0 %v1400_v21, %s4782_s18  ;;  %1121 = vst.msk [vmem:[#allocation2 + $0x78] sm:$0xff] %vm1107_vm3, %v1078_v54  ;;  %1122 = vst.msk [vmem:[#allocation2 + $0x80] sm:$0xff] %vm1107_vm3, %v992_v53  ;;  %v994_v57 = vrot.slane %v924_v51, 7  ;;  %v814_v58 = vadd.f32 %v4419_v56, %v566_v49  ;;  %v808_v59 = vpop.f32.mrb[13].mxu0  ;;  %v1437_v39 = vld [vmem:[#allocation2 + $0x52] sm:$0xff]  ;;  %v2920_v45 = vld [vmem:[#allocation2 + $0x4a] sm:$0xff] }
 0x107   : > { %v993_v63 = vrot.slane %v923_v55, 7  ;;  %v809_v0 = vadd.f32 %v808_v59, %v565_v52  ;;  %v571_v50 = vld [vmem:[%s4966_s23 + $0x90] sm:$0xff] }
 0x108   : > { %v1095_v2 = vsel %vm977_vm1, %v994_v57, 0.0  ;;  %v926_v3 = vadd.f32 %v4973_v37, %v814_v58  ;;  %v574_v58 = vld [vmem:[%s4966_s23 + $0xa8] sm:$0xff] }
 0x109   : > { %1126 = vst.msk [vmem:[#allocation2 + $0xa0] sm:$0x3] %vm1110_vm2, %v1095_v2  ;;  %v995_v4 = vsel %vm977_vm1, %v993_v63, %v994_v57  ;;  %v1079_v5 = vsel %vm977_vm1, 0.0, %v993_v63  ;;  %v925_v6 = vadd.f32 %v4973_v37, %v809_v0  ;;  %v4422_v7 = vpop.f32.mrb[14].mxu0  ;;  %v5122_v53 = vld [vmem:[#allocation2 + $0x69] sm:$0xff]  ;;  %v573_v2 = vld [vmem:[%s4966_s23 + $0xa0] sm:$0xff] }
 0x10a   : > { %1504 = vrot.lane.b32.xlu1 %v1403_v62, %s4782_s18  ;;  %1914 = vrot.lane.b32.xlu0 %v5009_v20, %s4782_s18  ;;  %1124 = vst.msk [vmem:[#allocation2 + $0x90] sm:$0xff] %vm1107_vm3, %v1079_v5  ;;  %1125 = vst.msk [vmem:[#allocation2 + $0x98] sm:$0xff] %vm1107_vm3, %v995_v4  ;;  %v997_v8 = vrot.slane %v926_v3, 7  ;;  %v824_v9 = vadd.f32 %v4422_v7, %v568_v1  ;;  %v818_v10 = vpop.f32.mrb[15].mxu0  ;;  %v5133_v63 = vld [vmem:[#allocation2 + $0x6a] sm:$0xff] }
 0x10b   : > { %v996_v12 = vrot.slane %v925_v6, 7  ;;  %v819_v13 = vadd.f32 %v818_v10, %v567_v11  ;;  %v2890_v6 = vld [vmem:[#allocation2 + $0x61] sm:$0xff] }
 0x10c   : > { %v1096_v14 = vsel %vm977_vm1, %v997_v8, 0.0  ;;  %v928_v15 = vadd.f32 %v4973_v37, %v824_v9  ;;  %v576_v9 = vld [vmem:[%s4966_s23 + $0xb8] sm:$0xff] }
 0x10d   : > { %1129 = vst.msk [vmem:[#allocation2 + $0xb8] sm:$0x3] %vm1110_vm2, %v1096_v14  ;;  %v998_v17 = vsel %vm977_vm1, %v996_v12, %v997_v8  ;;  %v1080_v18 = vsel %vm977_vm1, 0.0, %v996_v12  ;;  %v927_v19 = vadd.f32 %v4973_v37, %v819_v13  ;;  %v4425_v28 = vpop.f32.mrb[16].mxu0  ;;  %v2922_v13 = vld [vmem:[#allocation2 + $0x62] sm:$0xff] }
 0x10e   : > { %1632 = vrot.lane.b32.xlu1 %v1435_v16, %s4784_s20  ;;  %2042 = vrot.lane.b32.xlu0 %v5030_v38, %s4784_s20  ;;  %1127 = vst.msk [vmem:[#allocation2 + $0xa8] sm:$0xff] %vm1107_vm3, %v1080_v18  ;;  %1128 = vst.msk [vmem:[#allocation2 + $0xb0] sm:$0xff] %vm1107_vm3, %v998_v17  ;;  %v1000_v20 = vrot.slane %v928_v15, 7  ;;  %v834_v30 = vadd.f32 %v4425_v28, %v570_v27  ;;  %v828_v32 = vpop.f32.mrb[17].mxu0 }
 0x10f   : > { %v999_v21 = vrot.slane %v927_v19, 7  ;;  %v829_v35 = vadd.f32 %v828_v32, %v569_v34 }
 0x110   : > { %v1097_v22 = vsel %vm977_vm1, %v1000_v20, 0.0  ;;  %v930_v31 = vadd.f32 %v4973_v37, %v834_v30 }
 0x111   : > { %1132 = vst.msk [vmem:[#allocation2 + $0xd0] sm:$0x3] %vm1110_vm2, %v1097_v22  ;;  %v1001_v24 = vsel %vm977_vm1, %v999_v21, %v1000_v20  ;;  %v1081_v25 = vsel %vm977_vm1, 0.0, %v999_v21  ;;  %v929_v38 = vadd.f32 %v4973_v37, %v829_v35  ;;  %v4428_v47 = vpop.f32.mrb[18].mxu0 }
 0x112   : > { %2982 = vrot.lane.b32.xlu1 %v2886_v23, %s4782_s18  ;;  %1502 = vrot.lane.b32.xlu0 %v2886_v23, %s4782_s18  ;;  %1130 = vst.msk [vmem:[#allocation2 + $0xc0] sm:$0xff] %vm1107_vm3, %v1081_v25  ;;  %1131 = vst.msk [vmem:[#allocation2 + $0xc8] sm:$0xff] %vm1107_vm3, %v1001_v24  ;;  %v1003_v36 = vrot.slane %v930_v31, 7  ;;  %v844_v48 = vadd.f32 %v4428_v47, %v572_v46  ;;  %v838_v49 = vpop.f32.mrb[19].mxu0  ;;  %v5171_v31 = vld [vmem:[#allocation2 + $0x81] sm:$0xff]  ;;  %v579_v46 = vld [vmem:[%s4966_s23 + $0xd0] sm:$0xff] }
 0x113   : > { %v1002_v41 = vrot.slane %v929_v38, 7  ;;  %v839_v52 = vadd.f32 %v838_v49, %v571_v50  ;;  %v580_v38 = vld [vmem:[%s4966_s23 + $0xd8] sm:$0xff] }
 0x114   : > { %v1098_v40 = vsel %vm977_vm1, %v1003_v36, 0.0  ;;  %v932_v51 = vadd.f32 %v4973_v37, %v844_v48 }
 0x115   : > { %1135 = vst.msk [vmem:[#allocation2 + $0xe8] sm:$0x3] %vm1110_vm2, %v1098_v40  ;;  %v1004_v42 = vsel %vm977_vm1, %v1002_v41, %v1003_v36  ;;  %v1082_v43 = vsel %vm977_vm1, 0.0, %v1002_v41  ;;  %v931_v55 = vadd.f32 %v4973_v37, %v839_v52  ;;  %v4431_v59 = vpop.f32.mrb[20].mxu0  ;;  %v582_v52 = vld [vmem:[%s4966_s23 + $0xe8] sm:$0xff] }
 0x116   : > { %3110 = vrot.lane.b32.xlu1 %v2918_v26, %s4784_s20  ;;  %1630 = vrot.lane.b32.xlu0 %v2918_v26, %s4784_s20  ;;  %1133 = vst.msk [vmem:[#allocation2 + $0xd8] sm:$0xff] %vm1107_vm3, %v1082_v43  ;;  %1134 = vst.msk [vmem:[#allocation2 + $0xe0] sm:$0xff] %vm1107_vm3, %v1004_v42  ;;  %v1006_v54 = vrot.slane %v932_v51, 7  ;;  %v854_v60 = vadd.f32 %v4431_v59, %v574_v58  ;;  %v848_v1 = vpop.f32.mrb[21].mxu0  ;;  %v2892_v51 = vld [vmem:[#allocation2 + $0x79] sm:$0xff] }
 0x117   : > { %v1005_v57 = vrot.slane %v931_v55, 7  ;;  %v849_v3 = vadd.f32 %v848_v1, %v573_v2 }
 0x118   : > { %v1099_v56 = vsel %vm977_vm1, %v1006_v54, 0.0  ;;  %v934_v0 = vadd.f32 %v4973_v37, %v854_v60 }
 0x119   : > { %1138 = vst.msk [vmem:[#allocation2 + $0x100] sm:$0x3] %vm1110_vm2, %v1099_v56  ;;  %v1007_v61 = vsel %vm977_vm1, %v1005_v57, %v1006_v54  ;;  %v933_v5 = vadd.f32 %v4973_v37, %v849_v3  ;;  %v4434_v12 = vpop.f32.mrb[22].mxu0  ;;  %v581_v56 = vld [vmem:[%s4966_s23 + $0xe0] sm:$0xff]  ;;  %v583_v3 = vld [vmem:[%s4966_s23 + $0xf0] sm:$0xff] }
 0x11a   : > { %3112 = vrot.lane.b32.xlu1 %v1435_v16, %s4784_s20  ;;  %2984 = vrot.lane.b32.xlu0 %v1403_v62, %s4782_s18  ;;  %1137 = vst.msk [vmem:[#allocation2 + $0xf8] sm:$0xff] %vm1107_vm3, %v1007_v61  ;;  %v1009_v4 = vrot.slane %v934_v0, 7  ;;  %v864_v14 = vadd.f32 %v4434_v12, %v576_v9  ;;  %v858_v15 = vpop.f32.mrb[23].mxu0  ;;  %v584_v0 = vld [vmem:[%s4966_s23 + $0xf8] sm:$0xff] }
 0x11b   : > { %v1008_v8 = vrot.slane %v933_v5, 7 }
 0x11c   : > { %v1100_v7 = vsel %vm977_vm1, %v1009_v4, 0.0  ;;  %v936_v18 = vadd.f32 %v4973_v37, %v864_v14  ;;  %v1160_v14 = vld [vmem:[%s5218_s24 + $0x8] sm:$0xff] }
 0x11d   : > { %1141 = vst.msk [vmem:[#allocation2 + $0x118] sm:$0x3] %vm1110_vm2, %v1100_v7  ;;  %v1010_v10 = vsel %vm977_vm1, %v1008_v8, %v1009_v4  ;;  %v1084_v11 = vsel %vm977_vm1, 0.0, %v1008_v8 }
 0x11e   : > { %2044 = vrot.lane.b32.xlu1 %v2918_v26, %s4784_s20  ;;  %1916 = vrot.lane.b32.xlu0 %v2886_v23, %s4782_s18  ;;  %1139 = vst.msk [vmem:[#allocation2 + $0x108] sm:$0xff] %vm1107_vm3, %v1084_v11  ;;  %1140 = vst.msk [vmem:[#allocation2 + $0x110] sm:$0xff] %vm1107_vm3, %v1010_v10  ;;  %v1012_v20 = vrot.slane %v936_v18, 7  ;;  %v578_v23 = vld [vmem:[%s4966_s23 + $0xc8] sm:$0xff]  ;;  %v4437_v26 = vpop.f32.mrb[24].mxu0 }
 0x11f   : > { %v874_v27 = vadd.f32 %v4437_v26, %v578_v23  ;;  %v868_v28 = vpop.f32.mrb[25].mxu0 }
 0x120   : > { %v1101_v22 = vsel %vm977_vm1, %v1012_v20, 0.0 }
 0x121   : > { %1144 = vst.msk [vmem:[#allocation2 + $0x130] sm:$0x3] %vm1110_vm2, %v1101_v22  ;;  %v938_v32 = vadd.f32 %v4973_v37, %v874_v27  ;;  %v4440_v40 = vpop.f32.mrb[26].mxu0  ;;  %v1244_v22 = vstv %s518_s29  ;;  %v1411_v27 = vld [vmem:[#allocation2 + $0x99] sm:$0xff] }
 0x122   : > { %1508 = vrot.lane.b32.xlu1 %v1405_v29, %s4782_s18  ;;  %1918 = vrot.lane.b32.xlu0 %v1403_v62, %s4782_s18  ;;  %v1083_v62 = vsel %vm977_vm1, 0.0, %v1005_v57  ;;  %v884_v43 = vadd.f32 %v4440_v40, %v580_v38  ;;  %v2894_v40 = vld [vmem:[#allocation2 + $0x91] sm:$0xff] }
 0x123   : > { %1136 = vst.msk [vmem:[#allocation2 + $0xf0] sm:$0xff] %vm1107_vm3, %v1083_v62  ;;  %v1015_v35 = vrot.slane %v938_v32, 7  ;;  %v2924_v62 = vld [vmem:[#allocation2 + $0x7a] sm:$0xff] }
 0x124   : > { %v940_v47 = vadd.f32 %v4973_v37, %v884_v43  ;;  %v2926_v43 = vld [vmem:[#allocation2 + $0x92] sm:$0xff] }
 0x126   : > { %1636 = vrot.lane.b32.xlu1 %v1437_v39, %s4784_s20  ;;  %2046 = vrot.lane.b32.xlu0 %v1435_v16, %s4784_s20  ;;  %v575_v16 = vld [vmem:[%s4966_s23 + $0xb0] sm:$0xff]  ;;  %v1018_v49 = vrot.slane %v940_v47, 7 }
 0x127   : > { %v859_v17 = vadd.f32 %v858_v15, %v575_v16 }
 0x129   : > { %v935_v19 = vadd.f32 %v4973_v37, %v859_v17  ;;  %v1159_v17 = vld [vmem:[%s5218_s24] sm:$0xff] }
 0x12a   : > { %2986 = vrot.lane.b32.xlu1 %v2888_v44, %s4782_s18  ;;  %1506 = vrot.lane.b32.xlu0 %v2888_v44, %s4782_s18 }
 0x12b   : > { %v1011_v21 = vrot.slane %v935_v19, 7 }
 0x12d   : > { %v1013_v24 = vsel %vm977_vm1, %v1011_v21, %v1012_v20  ;;  %v1085_v25 = vsel %vm977_vm1, 0.0, %v1011_v21 }
 0x12e   : > { %3114 = vrot.lane.b32.xlu1 %v2920_v45, %s4784_s20  ;;  %1634 = vrot.lane.b32.xlu0 %v2920_v45, %s4784_s20  ;;  %1142 = vst.msk [vmem:[#allocation2 + $0x120] sm:$0xff] %vm1107_vm3, %v1085_v25  ;;  %1143 = vst.msk [vmem:[#allocation2 + $0x128] sm:$0xff] %vm1107_vm3, %v1013_v24 }
 0x132   : > { %3116 = vrot.lane.b32.xlu1 %v1437_v39, %s4784_s20  ;;  %2988 = vrot.lane.b32.xlu0 %v1405_v29, %s4782_s18 }
 0x136   : > { %2048 = vrot.lane.b32.xlu1 %v2920_v45, %s4784_s20  ;;  %1920 = vrot.lane.b32.xlu0 %v2888_v44, %s4782_s18  ;;  %v5184_v44 = vld [vmem:[#allocation2 + $0x82] sm:$0xff]  ;;  %v878_v45 = vpop.f32.mrb[27].mxu0 }
 0x137   : > { %v879_v48 = vadd.f32 %v878_v45, %v579_v46  ;;  %v4443_v55 = vpop.f32.mrb[28].mxu0 }
 0x138   : > { %v894_v57 = vadd.f32 %v4443_v55, %v582_v52  ;;  %v888_v58 = vpop.f32.mrb[29].mxu0  ;;  %v1413_v52 = vld [vmem:[#allocation2 + $0xb1] sm:$0xff] }
 0x139   : > { %v939_v50 = vadd.f32 %v4973_v37, %v879_v48  ;;  %v889_v61 = vadd.f32 %v888_v58, %v581_v56  ;;  %v4446_v2 = vpop.f32.mrb[30].mxu0 }
 0x13a   : > { %1512 = vrot.lane.b32.xlu1 %v5122_v53, %s4782_s18  ;;  %1922 = vrot.lane.b32.xlu0 %v1405_v29, %s4782_s18  ;;  %v577_v29 = vld [vmem:[%s4966_s23 + $0xc0] sm:$0xff]  ;;  %v904_v5 = vadd.f32 %v4446_v2, %v584_v0  ;;  %v5307_v2 = vld [vmem:[#allocation2 + $0x30] sm:$0xff] }
 0x13b   : > { %v869_v30 = vadd.f32 %v868_v28, %v577_v29  ;;  %v1017_v54 = vrot.slane %v939_v50, 7  ;;  %v941_v1 = vadd.f32 %v4973_v37, %v889_v61 }
 0x13c   : > { %v944_v10 = vadd.f32 %v4973_v37, %v904_v5 }
 0x13d   : > { %v937_v34 = vadd.f32 %v4973_v37, %v869_v30  ;;  %v1019_v59 = vsel %vm977_vm1, %v1017_v54, %v1018_v49  ;;  %v1087_v60 = vsel %vm977_vm1, 0.0, %v1017_v54  ;;  %v1020_v7 = vrot.slane %v941_v1, 7  ;;  %v2928_v1 = vld [vmem:[#allocation2 + $0xaa] sm:$0xff] }
 0x13e   : > { %1640 = vrot.lane.b32.xlu1 %v5133_v63, %s4784_s20  ;;  %2050 = vrot.lane.b32.xlu0 %v1437_v39, %s4784_s20  ;;  %v1102_v39 = vsel %vm977_vm1, %v1015_v35, 0.0  ;;  %1148 = vst.msk [vmem:[#allocation2 + $0x150] sm:$0xff] %vm1107_vm3, %v1087_v60  ;;  %1149 = vst.msk [vmem:[#allocation2 + $0x158] sm:$0xff] %vm1107_vm3, %v1019_v59  ;;  %v1024_v15 = vrot.slane %v944_v10, 7  ;;  %v1445_v59 = vld [vmem:[#allocation2 + $0xb2] sm:$0xff]  ;;  %v1415_v10 = vld [vmem:[#allocation2 + $0xc9] sm:$0xff] }
 0x13f   : > { %v1014_v36 = vrot.slane %v937_v34, 7  ;;  %1147 = vst.msk [vmem:[#allocation2 + $0x148] sm:$0x3] %vm1110_vm2, %v1102_v39  ;;  %v1088_v12 = vsel %vm977_vm1, 0.0, %v1020_v7 }
 0x140   : > { %1151 = vst.msk [vmem:[#allocation2 + $0x168] sm:$0xff] %vm1107_vm3, %v1088_v12  ;;  %v1105_v21 = vsel %vm977_vm1, %v1024_v15, 0.0 }
 0x141   : > { %v1016_v41 = vsel %vm977_vm1, %v1014_v36, %v1015_v35  ;;  %v1086_v42 = vsel %vm977_vm1, 0.0, %v1014_v36  ;;  %1156 = vst.msk [vmem:[#allocation2 + $0x190] sm:$0x3] %vm1110_vm2, %v1105_v21  ;;  %v1443_v36 = vld [vmem:[#allocation2 + $0x9a] sm:$0xff] }
 0x142   : > { %2990 = vrot.lane.b32.xlu1 %v2890_v6, %s4782_s18  ;;  %1510 = vrot.lane.b32.xlu0 %v2890_v6, %s4782_s18  ;;  %1145 = vst.msk [vmem:[#allocation2 + $0x138] sm:$0xff] %vm1107_vm3, %v1086_v42  ;;  %1146 = vst.msk [vmem:[#allocation2 + $0x140] sm:$0xff] %vm1107_vm3, %v1016_v41 }
 0x146   : > { %3118 = vrot.lane.b32.xlu1 %v2922_v13, %s4784_s20  ;;  %1638 = vrot.lane.b32.xlu0 %v2922_v13, %s4784_s20 }
 0x14a   : > { %3120 = vrot.lane.b32.xlu1 %v5133_v63, %s4784_s20  ;;  %2992 = vrot.lane.b32.xlu0 %v5122_v53, %s4782_s18 }
 0x14e   : > { %2052 = vrot.lane.b32.xlu1 %v2922_v13, %s4784_s20  ;;  %1924 = vrot.lane.b32.xlu0 %v2890_v6, %s4782_s18  ;;  %v898_v6 = vpop.f32.mrb[31].mxu0 }
 0x14f   : > { %v899_v8 = vadd.f32 %v898_v6, %v583_v3  ;;  %v4451_v16 = vpop.f32.mrb[32].mxu0 }
 0x150   : > { %v1239_v19 = vadd.f32 %v4451_v16, %v1160_v14  ;;  %v1233_v20 = vpop.f32.mrb[33].mxu0 }
 0x151   : > { %v943_v13 = vadd.f32 %v4973_v37, %v899_v8  ;;  %v1234_v23 = vadd.f32 %v1233_v20, %v1159_v17  ;;  %v1447_v17 = vld [vmem:[#allocation2 + $0xca] sm:$0xff]  ;;  %v2898_v20 = vld [vmem:[#allocation2 + $0xc1] sm:$0xff] }
 0x152   : > { %1516 = vrot.lane.b32.xlu1 %v5171_v31, %s4782_s18  ;;  %1926 = vrot.lane.b32.xlu0 %v5122_v53, %s4782_s18  ;;  %v1103_v53 = vsel %vm977_vm1, %v1018_v49, 0.0  ;;  %v1243_v26 = vadd.f32 %v4973_v37, %v1239_v19 }
 0x153   : > { %1150 = vst.msk [vmem:[#allocation2 + $0x160] sm:$0x3] %vm1110_vm2, %v1103_v53  ;;  %v1023_v18 = vrot.slane %v943_v13, 7  ;;  %v1242_v28 = vadd.f32 %v4973_v37, %v1234_v23  ;;  %v2930_v23 = vld [vmem:[#allocation2 + $0xc2] sm:$0xff] }
 0x154   : > { %v1246_v29 = vmul.f32 %v1244_v22, %v1243_v26 }
 0x155   : > { %v1025_v24 = vsel %vm977_vm1, %v1023_v18, %v1024_v15  ;;  %v1089_v25 = vsel %vm977_vm1, 0.0, %v1023_v18  ;;  %v1245_v30 = vmul.f32 %v1244_v22, %v1242_v28 }
 0x156   : > { %1644 = vrot.lane.b32.xlu1 %v5184_v44, %s4784_s20  ;;  %2054 = vrot.lane.b32.xlu0 %v5133_v63, %s4784_s20  ;;  %v942_v63 = vadd.f32 %v4973_v37, %v894_v57  ;;  %1154 = vst.msk [vmem:[#allocation2 + $0x180] sm:$0xff] %vm1107_vm3, %v1089_v25  ;;  %1155 = vst.msk [vmem:[#allocation2 + $0x188] sm:$0xff] %vm1107_vm3, %v1025_v24  ;;  %v1250_v32 = vrot.slane %v1246_v29, 7  ;;  %v5347_v24 = vld [vmem:[#allocation2 + $0x48] sm:$0xff] }
 0x157   : > { %v1249_v34 = vrot.slane %v1245_v30, 7 }
 0x158   : > { %v1021_v4 = vrot.slane %v942_v63, 7  ;;  %v1256_v35 = vsel %vm977_vm1, %v1250_v32, 0.0 }
 0x159   : > { %1259 = vst.msk [vmem:[#allocation2 + $0x10] sm:$0x3] %vm1110_vm2, %v1256_v35  ;;  %v1251_v38 = vsel %vm977_vm1, %v1249_v34, %v1250_v32  ;;  %v1255_v39 = vsel %vm977_vm1, 0.0, %v1249_v34  ;;  %v5359_v32 = vld [vmem:[#allocation2 + $0x50] sm:$0xff]  ;;  %v5361_v34 = vld [vmem:[#allocation2 + $0xe1] sm:$0xff] }
 0x15a   : > { %2994 = vrot.lane.b32.xlu1 %v2892_v51, %s4782_s18  ;;  %1514 = vrot.lane.b32.xlu0 %v2892_v51, %s4782_s18  ;;  %v1104_v9 = vsel %vm977_vm1, %v1021_v4, 0.0  ;;  %v1022_v11 = vsel %vm977_vm1, %v1020_v7, %v1021_v4  ;;  %1257 = vst.msk [vmem:[#allocation2] sm:$0xff] %vm1107_vm3, %v1255_v39  ;;  %1258 = vst.msk [vmem:[#allocation2 + $0x8] sm:$0xff] %vm1107_vm3, %v1251_v38 }
 0x15b   : > { %1153 = vst.msk [vmem:[#allocation2 + $0x178] sm:$0x3] %vm1110_vm2, %v1104_v9  ;;  %v5319_v9 = vld [vmem:[#allocation2 + $0x38] sm:$0xff] }
 0x15c   : > { %1152 = vst.msk [vmem:[#allocation2 + $0x170] sm:$0xff] %vm1107_vm3, %v1022_v11 }
 0x15e   : > { %3122 = vrot.lane.b32.xlu1 %v2924_v62, %s4784_s20  ;;  %1642 = vrot.lane.b32.xlu0 %v2924_v62, %s4784_s20 }
 0x162   : > { %3124 = vrot.lane.b32.xlu1 %v5184_v44, %s4784_s20  ;;  %2996 = vrot.lane.b32.xlu0 %v5171_v31, %s4782_s18 }
 0x166   : > { %2056 = vrot.lane.b32.xlu1 %v2924_v62, %s4784_s20  ;;  %1928 = vrot.lane.b32.xlu0 %v2892_v51, %s4782_s18  ;;  %v5279_v51 = vld [vmem:[#allocation2 + $0x20] sm:$0xff]  ;;  %v2896_v62 = vld [vmem:[#allocation2 + $0xa9] sm:$0xff] }
 0x16a   : > { %1520 = vrot.lane.b32.xlu1 %v1411_v27, %s4782_s18  ;;  %1930 = vrot.lane.b32.xlu0 %v5171_v31, %s4782_s18 }
 0x16e   : > { %1648 = vrot.lane.b32.xlu1 %v1443_v36, %s4784_s20  ;;  %2058 = vrot.lane.b32.xlu0 %v5184_v44, %s4784_s20  ;;  %v5267_v44 = vld [vmem:[#allocation2 + $0x18] sm:$0xff] }
 0x170   : > { %v5255_v37 = vpop.permute.xlu1 %1500  ;;  %v5257_v31 = vpop.permute.xlu0 %1498 }
 0x172   : > { %2998 = vrot.lane.b32.xlu1 %v2894_v40, %s4782_s18  ;;  %1518 = vrot.lane.b32.xlu0 %v2894_v40, %s4782_s18 }
 0x174   : > { %v5261_v41 = vpop.permute.xlu1 %1628  ;;  %v5263_v42 = vpop.permute.xlu0 %1626 }
 0x176   : > { %3126 = vrot.lane.b32.xlu1 %v2926_v43, %s4784_s20  ;;  %1646 = vrot.lane.b32.xlu0 %v2926_v43, %s4784_s20 }
 0x178   : > { %v2041_v45 = vpop.permute.xlu1 %2040  ;;  %v1913_v46 = vpop.permute.xlu0 %1912 }
 0x179   : > { %v2136_v47 = vsel %vm1107_vm3, %v5267_v44, %v1913_v46 }
 0x17a   : > { %3128 = vrot.lane.b32.xlu1 %v1443_v36, %s4784_s20  ;;  %3000 = vrot.lane.b32.xlu0 %v1411_v27, %s4782_s18  ;;  %v2168_v48 = vsel %vm585_vm0, %v2136_v47, %v2041_v45  ;;  %v5376_v45 = vld [vmem:[#allocation2 + $0xe2] sm:$0xff] }
 0x17b   : > { %4461 = vmatprep.mubr.msk.f32.mxu0 %vm2203_vm7, %v2168_v48  ;;  %v5385_v48 = vld [vmem:[#allocation2 + $0xd9] sm:$0xff] }
 0x17c   : > { %v5275_v49 = vpop.permute.xlu1 %1504  ;;  %v1915_v50 = vpop.permute.xlu0 %1914 }
 0x17d   : > { %v2137_v53 = vsel %vm1107_vm3, %v5279_v51, %v1915_v50 }
 0x17e   : > { %2060 = vrot.lane.b32.xlu1 %v2926_v43, %s4784_s20  ;;  %1932 = vrot.lane.b32.xlu0 %v2894_v40, %s4782_s18 }
 0x180   : > { %v5283_v54 = vpop.permute.xlu1 %1632  ;;  %v2043_v55 = vpop.permute.xlu0 %2042 }
 0x181   : > { %v2169_v56 = vsel %vm585_vm0, %v2137_v53, %v2043_v55  ;;  %v5395_v53 = vld [vmem:[#allocation2 + $0xda] sm:$0xff] }
 0x182   : > { %1524 = vrot.lane.b32.xlu1 %v1413_v52, %s4782_s18  ;;  %1934 = vrot.lane.b32.xlu0 %v1411_v27, %s4782_s18  ;;  %v5401_v55 = vld [vmem:[#allocation2 + $0x60] sm:$0xff] }
 0x183   : > { %4462 = vmatmul.mubr.msk.f32.vlgmr.msra.gmra.mrb[34].mxu0 %vm2203_vm7, %v2169_v56 }
 0x184   : > { %v5289_v57 = vpop.permute.xlu1 %2982  ;;  %v5291_v58 = vpop.permute.xlu0 %1502 }
 0x185   : > { %6596 = vst [vmem:[#allocation3_spill] sm:$0xff] %v5289_v57  ;;  %v1722_v33 = vsel %vm1107_vm3, %v5307_v2, %v5291_v58  ;;  %v1723_v58 = vsel %vm1107_vm3, %v5319_v9, %v5275_v49 }
 0x186   : > { %1652 = vrot.lane.b32.xlu1 %v1445_v59, %s4784_s20  ;;  %2062 = vrot.lane.b32.xlu0 %v1443_v36, %s4784_s20 }
 0x188   : > { %v5295_v60 = vpop.permute.xlu1 %3110  ;;  %v5297_v61 = vpop.permute.xlu0 %1630 }
 0x189   : > { %6597 = vst [vmem:[#allocation4_spill] sm:$0xff] %v5295_v60 }
 0x18a   : > { %3002 = vrot.lane.b32.xlu1 %v2896_v62, %s4782_s18  ;;  %1522 = vrot.lane.b32.xlu0 %v2896_v62, %s4782_s18 }
 0x18c   : > { %v5301_v63 = vpop.permute.xlu1 %3112  ;;  %v5303_v0 = vpop.permute.xlu0 %2984 }
 0x18d   : > { %6598 = vst [vmem:[#allocation5_spill] sm:$0xff] %v5301_v63  ;;  %6599 = vst [vmem:[#allocation6_spill] sm:$0xff] %v5303_v0 }
 0x18e   : > { %3130 = vrot.lane.b32.xlu1 %v2928_v1, %s4784_s20  ;;  %1650 = vrot.lane.b32.xlu0 %v2928_v1, %s4784_s20 }
 0x190   : > { %v2045_v3 = vpop.permute.xlu1 %2044  ;;  %v1917_v4 = vpop.permute.xlu0 %1916 }
 0x191   : > { %v2138_v5 = vsel %vm1107_vm3, %v5307_v2, %v1917_v4  ;;  %v5413_v4 = vld [vmem:[#allocation2 + $0xf1] sm:$0xff] }
 0x192   : > { %3132 = vrot.lane.b32.xlu1 %v1445_v59, %s4784_s20  ;;  %3004 = vrot.lane.b32.xlu0 %v1413_v52, %s4782_s18  ;;  %v2170_v6 = vsel %vm585_vm0, %v2138_v5, %v2045_v3  ;;  %v5411_v3 = vld [vmem:[#allocation2 + $0xf9] sm:$0xff] }
 0x193   : > { %4464 = vmatprep.mubr.msk.f32.mxu0 %vm2203_vm7, %v2170_v6 }
 0x194   : > { %v5315_v7 = vpop.permute.xlu1 %1508  ;;  %v1919_v8 = vpop.permute.xlu0 %1918 }
 0x195   : > { %v2139_v11 = vsel %vm1107_vm3, %v5319_v9, %v1919_v8  ;;  %v5421_v8 = vld [vmem:[#allocation2 + $0x68] sm:$0xff] }
 0x196   : > { %2064 = vrot.lane.b32.xlu1 %v2928_v1, %s4784_s20  ;;  %1936 = vrot.lane.b32.xlu0 %v2896_v62, %s4782_s18 }
 0x198   : > { %v5323_v12 = vpop.permute.xlu1 %1636  ;;  %v2047_v13 = vpop.permute.xlu0 %2046 }
 0x199   : > { %v2171_v14 = vsel %vm585_vm0, %v2139_v11, %v2047_v13 }
 0x19a   : > { %1528 = vrot.lane.b32.xlu1 %v1415_v10, %s4782_s18  ;;  %1938 = vrot.lane.b32.xlu0 %v1413_v52, %s4782_s18 }
 0x19b   : > { %4465 = vmatmul.mubr.msk.f32.gmra.mrb[36].mxu0 %vm2203_vm7, %v2171_v14 }
 0x19c   : > { %v5329_v15 = vpop.permute.xlu1 %2986  ;;  %v5331_v16 = vpop.permute.xlu0 %1506 }
 0x19d   : > { %6600 = vst [vmem:[#allocation7_spill] sm:$0xff] %v5329_v15  ;;  %v5505_v15 = vld [vmem:[#allocation2 + $0x80] sm:$0xff] }
 0x19e   : > { %1656 = vrot.lane.b32.xlu1 %v1447_v17, %s4784_s20  ;;  %2066 = vrot.lane.b32.xlu0 %v1445_v59, %s4784_s20  ;;  %6619 = vst [vmem:[#allocation26_spill] sm:$0xff] %v5505_v15 }
 0x1a0   : > { %v5335_v18 = vpop.permute.xlu1 %3114  ;;  %v5337_v19 = vpop.permute.xlu0 %1634 }
 0x1a1   : > { %6601 = vst [vmem:[#allocation8_spill] sm:$0xff] %v5335_v18 }
 0x1a2   : > { %3006 = vrot.lane.b32.xlu1 %v2898_v20, %s4782_s18  ;;  %1526 = vrot.lane.b32.xlu0 %v2898_v20, %s4782_s18 }
 0x1a4   : > { %v5341_v21 = vpop.permute.xlu1 %3116  ;;  %v5343_v22 = vpop.permute.xlu0 %2988 }
 0x1a5   : > { %6602 = vst [vmem:[#allocation9_spill] sm:$0xff] %v5341_v21  ;;  %6603 = vst [vmem:[#allocation10_spill] sm:$0xff] %v5343_v22 }
 0x1a6   : > { %3134 = vrot.lane.b32.xlu1 %v2930_v23, %s4784_s20  ;;  %1654 = vrot.lane.b32.xlu0 %v2930_v23, %s4784_s20 }
 0x1a8   : > { %v2049_v25 = vpop.permute.xlu1 %2048  ;;  %v1921_v26 = vpop.permute.xlu0 %1920 }
 0x1a9   : > { %v2140_v27 = vsel %vm1107_vm3, %v5347_v24, %v1921_v26 }
 0x1aa   : > { %3136 = vrot.lane.b32.xlu1 %v1447_v17, %s4784_s20  ;;  %3008 = vrot.lane.b32.xlu0 %v1415_v10, %s4782_s18  ;;  %v2172_v28 = vsel %vm585_vm0, %v2140_v27, %v2049_v25  ;;  %v5439_v25 = vld [vmem:[#allocation2 + $0x109] sm:$0xff] }
 0x1ab   : > { %4467 = vmatprep.mubr.msk.f32.mxu0 %vm2203_vm7, %v2172_v28 }
 0x1ac   : > { %v5355_v29 = vpop.permute.xlu1 %1512  ;;  %v1923_v30 = vpop.permute.xlu0 %1922 }
 0x1ad   : > { %v2141_v35 = vsel %vm1107_vm3, %v5359_v32, %v1923_v30 }
 0x1ae   : > { %2068 = vrot.lane.b32.xlu1 %v2930_v23, %s4784_s20  ;;  %1940 = vrot.lane.b32.xlu0 %v2898_v20, %s4782_s18  ;;  %v5430_v20 = vld [vmem:[#allocation2 + $0xf2] sm:$0xff] }
 0x1af   : > { %v5437_v23 = vld [vmem:[#allocation2 + $0x111] sm:$0xff] }
 0x1b0   : > { %v5365_v36 = vpop.permute.xlu1 %1640  ;;  %v2051_v38 = vpop.permute.xlu0 %2050 }
 0x1b1   : > { %6604 = vst [vmem:[#allocation11_spill] sm:$0xff] %v5365_v36  ;;  %v2173_v39 = vsel %vm585_vm0, %v2141_v35, %v2051_v38  ;;  %v5453_v35 = vld [vmem:[#allocation2 + $0x112] sm:$0xff]  ;;  %v5455_v38 = vld [vmem:[#allocation2 + $0x10a] sm:$0xff] }
 0x1b2   : > { %1532 = vrot.lane.b32.xlu1 %v5361_v34, %s4782_s18  ;;  %1942 = vrot.lane.b32.xlu0 %v1415_v10, %s4782_s18  ;;  %v1431_v36 = vld [vmem:[#allocation2 + $0xa] sm:$0xff] }
 0x1b3   : > { %4468 = vmatmul.mubr.msk.f32.gmra.mrb[38].mxu0 %vm2203_vm7, %v2173_v39  ;;  %v5461_v39 = vld [vmem:[#allocation2 + $0x129] sm:$0xff] }
 0x1b4   : > { %v5372_v40 = vpop.permute.xlu1 %2990  ;;  %v5374_v43 = vpop.permute.xlu0 %1510 }
 0x1b5   : > { %6605 = vst [vmem:[#allocation12_spill] sm:$0xff] %v5372_v40 }
 0x1b6   : > { %1660 = vrot.lane.b32.xlu1 %v5376_v45, %s4784_s20  ;;  %2070 = vrot.lane.b32.xlu0 %v1447_v17, %s4784_s20  ;;  %v5428_v17 = vld [vmem:[#allocation2 + $0xfa] sm:$0xff] }
 0x1b8   : > { %v5381_v46 = vpop.permute.xlu1 %3118  ;;  %v5383_v47 = vpop.permute.xlu0 %1638 }
 0x1b9   : > { %6606 = vst [vmem:[#allocation13_spill] sm:$0xff] %v5381_v46 }
 0x1ba   : > { %3010 = vrot.lane.b32.xlu1 %v5385_v48, %s4782_s18  ;;  %1530 = vrot.lane.b32.xlu0 %v5385_v48, %s4782_s18 }
 0x1bc   : > { %v5391_v50 = vpop.permute.xlu1 %3120  ;;  %v5393_v52 = vpop.permute.xlu0 %2992 }
 0x1bd   : > { %6607 = vst [vmem:[#allocation14_spill] sm:$0xff] %v5391_v50  ;;  %6608 = vst [vmem:[#allocation15_spill] sm:$0xff] %v5393_v52  ;;  %v5489_v50 = vld [vmem:[#allocation2 + $0x141] sm:$0xff]  ;;  %v4146_v52 = vld [vmem:[%s5218_s24 + $0x10] sm:$0xff] }
 0x1be   : > { %3138 = vrot.lane.b32.xlu1 %v5395_v53, %s4784_s20  ;;  %1658 = vrot.lane.b32.xlu0 %v5395_v53, %s4784_s20 }
 0x1c0   : > { %v2053_v56 = vpop.permute.xlu1 %2052  ;;  %v1925_v59 = vpop.permute.xlu0 %1924 }
 0x1c1   : > { %v2142_v62 = vsel %vm1107_vm3, %v5401_v55, %v1925_v59 }
 0x1c2   : > { %3140 = vrot.lane.b32.xlu1 %v5376_v45, %s4784_s20  ;;  %3012 = vrot.lane.b32.xlu0 %v5361_v34, %s4782_s18  ;;  %v2174_v1 = vsel %vm585_vm0, %v2142_v62, %v2053_v56  ;;  %v5463_v56 = vld [vmem:[#allocation2 + $0x121] sm:$0xff] }
 0x1c3   : > { %4470 = vmatprep.mubr.msk.f32.mxu0 %vm2203_vm7, %v2174_v1  ;;  %v5473_v1 = vld [vmem:[#allocation2 + $0x78] sm:$0xff] }
 0x1c4   : > { %v5415_v5 = vpop.permute.xlu1 %1516  ;;  %v1927_v6 = vpop.permute.xlu0 %1926  ;;  %6617 = vst [vmem:[#allocation24_spill] sm:$0xff] %v5473_v1 }
 0x1c5   : > { %6609 = vst [vmem:[#allocation16_spill] sm:$0xff] %v5415_v5  ;;  %v2143_v10 = vsel %vm1107_vm3, %v5421_v8, %v1927_v6 }
 0x1c6   : > { %1536 = vrot.lane.b32.xlu1 %v5411_v3, %s4782_s18  ;;  %1534 = vrot.lane.b32.xlu0 %v5413_v4, %s4782_s18 }
 0x1c8   : > { %v5425_v11 = vpop.permute.xlu1 %1644  ;;  %v2055_v13 = vpop.permute.xlu0 %2054 }
 0x1c9   : > { %6610 = vst [vmem:[#allocation17_spill] sm:$0xff] %v5425_v11  ;;  %v2175_v14 = vsel %vm585_vm0, %v2143_v10, %v2055_v13  ;;  %v5514_v11 = vld [vmem:[#allocation2 + $0x13a] sm:$0xff] }
 0x1ca   : > { %1664 = vrot.lane.b32.xlu1 %v5428_v17, %s4784_s20  ;;  %1662 = vrot.lane.b32.xlu0 %v5430_v20, %s4784_s20 }
 0x1cb   : > { %4471 = vmatmul.mubr.msk.f32.gmra.mrb[40].mxu0 %vm2203_vm7, %v2175_v14  ;;  %v5477_v14 = vld [vmem:[#allocation2 + $0x12a] sm:$0xff] }
 0x1cc   : > { %v5441_v26 = vpop.permute.xlu1 %2994  ;;  %v5443_v27 = vpop.permute.xlu0 %1514 }
 0x1cd   : > { %6611 = vst [vmem:[#allocation18_spill] sm:$0xff] %v5441_v26  ;;  %6612 = vst [vmem:[#allocation19_spill] sm:$0xff] %v5443_v27  ;;  %v5491_v26 = vld [vmem:[#allocation2 + $0x139] sm:$0xff] }
 0x1ce   : > { %1540 = vrot.lane.b32.xlu1 %v5437_v23, %s4782_s18  ;;  %1538 = vrot.lane.b32.xlu0 %v5439_v25, %s4782_s18 }
 0x1d0   : > { %v5449_v28 = vpop.permute.xlu1 %3122  ;;  %v5451_v30 = vpop.permute.xlu0 %1642 }
 0x1d1   : > { %6613 = vst [vmem:[#allocation20_spill] sm:$0xff] %v5449_v28  ;;  %6614 = vst [vmem:[#allocation21_spill] sm:$0xff] %v5451_v30 }
 0x1d2   : > { %1668 = vrot.lane.b32.xlu1 %v5453_v35, %s4784_s20  ;;  %1666 = vrot.lane.b32.xlu0 %v5455_v38, %s4784_s20 }
 0x1d4   : > { %v5465_v59 = vpop.permute.xlu1 %3124  ;;  %v5467_v62 = vpop.permute.xlu0 %2996 }
 0x1d5   : > { %6615 = vst [vmem:[#allocation22_spill] sm:$0xff] %v5465_v59  ;;  %6616 = vst [vmem:[#allocation23_spill] sm:$0xff] %v5467_v62  ;;  %v5479_v59 = vld [vmem:[#allocation2 + $0x122] sm:$0xff]  ;;  %v4147_v62 = vld [vmem:[%s5218_s24 + $0x18] sm:$0xff] }
 0x1d6   : > { %1544 = vrot.lane.b32.xlu1 %v5461_v39, %s4782_s18  ;;  %1542 = vrot.lane.b32.xlu0 %v5463_v56, %s4782_s18 }
 0x1d8   : > { %v2057_v6 = vpop.permute.xlu1 %2056  ;;  %v1929_v10 = vpop.permute.xlu0 %1928 }
 0x1d9   : > { %v2144_v13 = vsel %vm1107_vm3, %v5473_v1, %v1929_v10  ;;  %v4456_v10 = vpop.f32.mrb[0].mxu1  ;;  %v5603_v1 = vld [vmem:[#allocation2 + $0x98] sm:$0xff] }
 0x1da   : > { %1672 = vrot.lane.b32.xlu1 %v5477_v14, %s4784_s20  ;;  %1670 = vrot.lane.b32.xlu0 %v5479_v59, %s4784_s20  ;;  %v2176_v28 = vsel %vm585_vm0, %v2144_v13, %v2057_v6  ;;  %v1344_v40 = vadd.f32 %v4456_v10, %v4147_v62  ;;  %v1338_v22 = vpop.f32.mrb[1].mxu1  ;;  %v1349_v13 = vstv %s520_s16 }
 0x1db   : > { %4473 = vmatprep.mubr.msk.f32.mxu0 %vm2203_vm7, %v2176_v28  ;;  %v4738_v28 = vld [vmem:[%s6567_s5] ss:$0 sm:$0xff]  ;;  %v1339_v18 = vadd.f32 %v4146_v52, %v1338_v22  ;;  %v5523_v52 = vld [vmem:[#allocation2 + $0x151] sm:$0xff] }
 0x1dc   : > { %v5494_v46 = vpop.permute.xlu1 %1520  ;;  %v1931_v21 = vpop.permute.xlu0 %1930  ;;  %v1348_v6 = vadd.f32 %v4738_v28, %v1344_v40 }
 0x1dd   : > { %6618 = vst [vmem:[#allocation25_spill] sm:$0xff] %v5494_v46  ;;  %v2145_v63 = vsel %vm1107_vm3, %v5505_v15, %v1931_v21  ;;  %v1347_v60 = vadd.f32 %v4738_v28, %v1339_v18  ;;  %v5512_v46 = vld [vmem:[#allocation2 + $0x142] sm:$0xff]  ;;  %v5521_v21 = vld [vmem:[#allocation2 + $0x159] sm:$0xff] }
 0x1de   : > { %1548 = vrot.lane.b32.xlu1 %v5489_v50, %s4782_s18  ;;  %1546 = vrot.lane.b32.xlu0 %v5491_v26, %s4782_s18  ;;  %v1351_v0 = vmul.f32 %v1349_v13, %v1348_v6  ;;  %v4219_v15 = vld [vmem:[%s6568_s6 + $0x28] sm:$0xf] }
 0x1df   : > { %v1350_v40 = vmul.f32 %v1349_v13, %v1347_v60 }
 0x1e0   : > { %v5509_v62 = vpop.permute.xlu1 %1648  ;;  %v2059_v10 = vpop.permute.xlu0 %2058  ;;  %v1355_v22 = vrot.slane %v1351_v0, 7 }
 0x1e1   : > { %6620 = vst [vmem:[#allocation27_spill] sm:$0xff] %v5509_v62  ;;  %v2177_v57 = vsel %vm585_vm0, %v2145_v63, %v2059_v10  ;;  %v1354_v6 = vrot.slane %v1350_v40, 7  ;;  %v5543_v10 = vld [vmem:[#allocation2 + $0x15a] sm:$0xff]  ;;  %v5545_v40 = vld [vmem:[#allocation2 + $0x152] sm:$0xff] }
 0x1e2   : > { %1676 = vrot.lane.b32.xlu1 %v5512_v46, %s4784_s20  ;;  %1674 = vrot.lane.b32.xlu0 %v5514_v11, %s4784_s20  ;;  %v1361_v28 = vsel %vm977_vm1, %v1355_v22, 0.0 }
 0x1e3   : > { %4474 = vmatmul.mubr.msk.f32.gmra.mrb[42].mxu0 %vm2203_vm7, %v2177_v57  ;;  %1365 = vst.msk [vmem:[#allocation2 + $0x1a8] sm:$0x3] %vm1110_vm2, %v1361_v28  ;;  %v1356_v57 = vsel %vm977_vm1, %v1354_v6, %v1355_v22  ;;  %v1360_v60 = vsel %vm977_vm1, 0.0, %v1354_v6  ;;  %v1782_v6 = vld [vmem:[%s6568_s6] sm:$0xff] }
 0x1e4   : > { %v5525_v18 = vpop.permute.xlu1 %2998  ;;  %v5527_v63 = vpop.permute.xlu0 %1518  ;;  %1363 = vst.msk [vmem:[#allocation2 + $0x198] sm:$0xff] %vm1107_vm3, %v1360_v60  ;;  %1364 = vst.msk [vmem:[#allocation2 + $0x1a0] sm:$0xff] %vm1107_vm3, %v1356_v57  ;;  %v1783_v57 = vld [vmem:[%s6568_s6 + $0x8] sm:$0xf]  ;;  %v5561_v60 = vld [vmem:[#allocation2 + $0x171] sm:$0xff] }
 0x1e5   : > { %6621 = vst [vmem:[#allocation28_spill] sm:$0xff] %v5525_v18  ;;  %6622 = vst [vmem:[#allocation29_spill] sm:$0xff] %v5527_v63  ;;  %v4619_v18 = vpack.c.bf16 %v1783_v57, %v1782_v6  ;;  %v5579_v57 = vld [vmem:[#allocation2 + $0x16a] sm:$0xff]  ;;  %v4218_v63 = vld [vmem:[%s6568_s6 + $0x20] sm:$0xff] }
 0x1e6   : > { %1552 = vrot.lane.b32.xlu1 %v5521_v21, %s4782_s18  ;;  %1550 = vrot.lane.b32.xlu0 %v5523_v52, %s4782_s18  ;;  %v5592_v5 = vpack.c.bf16 %v4219_v15, %v4218_v63 }
 0x1e7   : > { %4621 = vmatprep.subr.msk.bf16.mxu1 %vm5021_vm6, %v4619_v18 }
 0x1e8   : > { %v5539_v0 = vpop.permute.xlu1 %3126  ;;  %v5541_v13 = vpop.permute.xlu0 %1646  ;;  %4624 = vmatpush3.bf16.msk.msra.mxu1 %vm5021_vm6, %v4619_v18 }
 0x1e9   : > { %6623 = vst [vmem:[#allocation30_spill] sm:$0xff] %v5539_v0  ;;  %6624 = vst [vmem:[#allocation31_spill] sm:$0xff] %v5541_v13  ;;  %v5563_v0 = vld [vmem:[#allocation2 + $0x169] sm:$0xff]  ;;  %v5573_v13 = vld [vmem:[#allocation2 + $0x172] sm:$0xff]  ;;  %4627 = vmatprep.subr.msk.bf16.mxu1 %vm5021_vm6, %v5592_v5 }
 0x1ea   : > { %1680 = vrot.lane.b32.xlu1 %v5543_v10, %s4784_s20  ;;  %1678 = vrot.lane.b32.xlu0 %v5545_v40, %s4784_s20 }
 0x1ec   : > { %v5551_v22 = vpop.permute.xlu1 %3128  ;;  %v5553_v28 = vpop.permute.xlu0 %3000 }
 0x1ed   : > { %6625 = vst [vmem:[#allocation32_spill] sm:$0xff] %v5551_v22  ;;  %6626 = vst [vmem:[#allocation33_spill] sm:$0xff] %v5553_v28  ;;  %v5571_v22 = vld [vmem:[#allocation2 + $0x90] sm:$0xff] }
 0x1ee   : > { %1556 = vrot.lane.b32.xlu1 %v5561_v60, %s4782_s18  ;;  %1554 = vrot.lane.b32.xlu0 %v5563_v0, %s4782_s18  ;;  %6627 = vst [vmem:[#allocation34_spill] sm:$0xff] %v5571_v22 }
 0x1f0   : > { %v2061_v28 = vpop.permute.xlu1 %2060  ;;  %v1933_v62 = vpop.permute.xlu0 %1932 }
 0x1f1   : > { %v2146_v6 = vsel %vm1107_vm3, %v5571_v22, %v1933_v62  ;;  %v1398_v62 = vld [vmem:[#allocation2 + $0x1] sm:$0xff] }
 0x1f2   : > { %1684 = vrot.lane.b32.xlu1 %v5573_v13, %s4784_s20  ;;  %1682 = vrot.lane.b32.xlu0 %v5579_v57, %s4784_s20  ;;  %v2178_v18 = vsel %vm585_vm0, %v2146_v6, %v2061_v28 }
 0x1f3   : > { %4476 = vmatprep.mubr.msk.f32.mxu0 %vm2203_vm7, %v2178_v18  ;;  %v1430_v18 = vld [vmem:[#allocation2 + $0x2] sm:$0xff] }
 0x1f4   : > { %v5595_v22 = vpop.permute.xlu1 %1524  ;;  %v1935_v30 = vpop.permute.xlu0 %1934 }
 0x1f5   : > { %6628 = vst [vmem:[#allocation35_spill] sm:$0xff] %v5595_v22  ;;  %v2147_v15 = vsel %vm1107_vm3, %v5603_v1, %v1935_v30  ;;  %v1399_v22 = vld [vmem:[#allocation2 + $0x9] sm:$0xff] }
 0x1f6   : > { %3014 = vrot.lane.b32.xlu1 %v5413_v4, %s4782_s18  ;;  %1494 = vrot.lane.b32.xlu0 %v1398_v62, %s4782_s18 }
 0x1f8   : > { %v5607_v63 = vpop.permute.xlu1 %1652  ;;  %v2063_v28 = vpop.permute.xlu0 %2062 }
 0x1f9   : > { %v2179_v6 = vsel %vm585_vm0, %v2147_v15, %v2063_v28 }
 0x1fa   : > { %1622 = vrot.lane.b32.xlu1 %v1430_v18, %s4784_s20  ;;  %1496 = vrot.lane.b32.xlu0 %v1399_v22, %s4782_s18 }
 0x1fb   : > { %4477 = vmatmul.mubr.msk.f32.gmra.mrb[44].mxu0 %vm2203_vm7, %v2179_v6 }
 0x1fc   : > { %v5613_v27 = vpop.permute.xlu1 %3002  ;;  %v5615_v62 = vpop.permute.xlu0 %1522 }
 0x1fd   : > { %6629 = vst [vmem:[#allocation36_spill] sm:$0xff] %v5613_v27 }
 0x1fe   : > { %1624 = vrot.lane.b32.xlu1 %v1431_v36, %s4784_s20  ;;  %1944 = vrot.lane.b32.xlu0 %v5385_v48, %s4782_s18  ;;  %v5636_v36 = vld [vmem:[#allocation2 + $0xa8] sm:$0xff] }
 0x200   : > { %v5620_v30 = vpop.permute.xlu1 %3130  ;;  %v5622_v15 = vpop.permute.xlu0 %1650 }
 0x201   : > { %6630 = vst [vmem:[#allocation37_spill] sm:$0xff] %v5620_v30 }
 0x202   : > { %2072 = vrot.lane.b32.xlu1 %v5395_v53, %s4784_s20  ;;  %1946 = vrot.lane.b32.xlu0 %v5361_v34, %s4782_s18 }
 0x204   : > { %v5628_v22 = vpop.permute.xlu1 %3132  ;;  %v5630_v28 = vpop.permute.xlu0 %3004 }
 0x205   : > { %6631 = vst [vmem:[#allocation38_spill] sm:$0xff] %v5628_v22  ;;  %6632 = vst [vmem:[#allocation39_spill] sm:$0xff] %v5630_v28 }
 0x206   : > { %3142 = vrot.lane.b32.xlu1 %v5430_v20, %s4784_s20  ;;  %3016 = vrot.lane.b32.xlu0 %v5411_v3, %s4782_s18 }
 0x208   : > { %v2065_v48 = vpop.permute.xlu1 %2064  ;;  %v1937_v6 = vpop.permute.xlu0 %1936 }
 0x209   : > { %v2148_v53 = vsel %vm1107_vm3, %v5636_v36, %v1937_v6  ;;  %v5652_v6 = vld [vmem:[#allocation2 + $0xb0] sm:$0xff] }
 0x20a   : > { %3144 = vrot.lane.b32.xlu1 %v5428_v17, %s4784_s20  ;;  %2074 = vrot.lane.b32.xlu0 %v5376_v45, %s4784_s20  ;;  %v2180_v34 = vsel %vm585_vm0, %v2148_v53, %v2065_v48 }
 0x20b   : > { %4479 = vmatprep.mubr.msk.f32.mxu0 %vm2203_vm7, %v2180_v34  ;;  %v5688_v34 = vld [vmem:[#allocation2 + $0xc0] sm:$0xff] }
 0x20c   : > { %v5646_v18 = vpop.permute.xlu1 %1528  ;;  %v1939_v22 = vpop.permute.xlu0 %1938 }
 0x20d   : > { %v2149_v28 = vsel %vm1107_vm3, %v5652_v6, %v1939_v22 }
 0x20e   : > { %3018 = vrot.lane.b32.xlu1 %v5439_v25, %s4782_s18  ;;  %1948 = vrot.lane.b32.xlu0 %v5413_v4, %s4782_s18 }
 0x210   : > { %v5656_v30 = vpop.permute.xlu1 %1656  ;;  %v2067_v45 = vpop.permute.xlu0 %2066 }
 0x211   : > { %v2181_v48 = vsel %vm585_vm0, %v2149_v28, %v2067_v45 }
 0x212   : > { %2076 = vrot.lane.b32.xlu1 %v5430_v20, %s4784_s20  ;;  %1950 = vrot.lane.b32.xlu0 %v5411_v3, %s4782_s18 }
 0x213   : > { %4480 = vmatmul.mubr.msk.f32.gmra.mrb[46].mxu0 %vm2203_vm7, %v2181_v48 }
 0x214   : > { %v5664_v53 = vpop.permute.xlu1 %3006  ;;  %v5666_v4 = vpop.permute.xlu0 %1526 }
 0x215   : > { %6633 = vst [vmem:[#allocation40_spill] sm:$0xff] %v5664_v53 }
 0x216   : > { %3146 = vrot.lane.b32.xlu1 %v5455_v38, %s4784_s20  ;;  %3020 = vrot.lane.b32.xlu0 %v5437_v23, %s4782_s18 }
 0x218   : > { %v5672_v22 = vpop.permute.xlu1 %3134  ;;  %v5674_v28 = vpop.permute.xlu0 %1654 }
 0x219   : > { %6634 = vst [vmem:[#allocation41_spill] sm:$0xff] %v5672_v22 }
 0x21a   : > { %3148 = vrot.lane.b32.xlu1 %v5453_v35, %s4784_s20  ;;  %2078 = vrot.lane.b32.xlu0 %v5428_v17, %s4784_s20 }
 0x21c   : > { %v5680_v3 = vpop.permute.xlu1 %3136  ;;  %v5682_v20 = vpop.permute.xlu0 %3008 }
 0x21d   : > { %6635 = vst [vmem:[#allocation42_spill] sm:$0xff] %v5680_v3  ;;  %6636 = vst [vmem:[#allocation43_spill] sm:$0xff] %v5682_v20 }
 0x21e   : > { %3022 = vrot.lane.b32.xlu1 %v5463_v56, %s4782_s18  ;;  %1952 = vrot.lane.b32.xlu0 %v5439_v25, %s4782_s18 }
 0x220   : > { %v2069_v45 = vpop.permute.xlu1 %2068  ;;  %v1941_v48 = vpop.permute.xlu0 %1940 }
 0x221   : > { %v2150_v22 = vsel %vm1107_vm3, %v5688_v34, %v1941_v48  ;;  %v5704_v48 = vld [vmem:[#allocation2 + $0xc8] sm:$0xff] }
 0x222   : > { %2080 = vrot.lane.b32.xlu1 %v5455_v38, %s4784_s20  ;;  %1954 = vrot.lane.b32.xlu0 %v5437_v23, %s4782_s18  ;;  %v2182_v17 = vsel %vm585_vm0, %v2150_v22, %v2069_v45 }
 0x223   : > { %4482 = vmatprep.mubr.msk.f32.mxu0 %vm2203_vm7, %v2182_v17 }
 0x224   : > { %v5698_v3 = vpop.permute.xlu1 %1532  ;;  %v1943_v25 = vpop.permute.xlu0 %1942 }
 0x225   : > { %6637 = vst [vmem:[#allocation44_spill] sm:$0xff] %v5698_v3  ;;  %v2151_v38 = vsel %vm1107_vm3, %v5704_v48, %v1943_v25  ;;  %v5720_v25 = vld [vmem:[#allocation2 + $0xd8] sm:$0xff] }
 0x226   : > { %3150 = vrot.lane.b32.xlu1 %v5479_v59, %s4784_s20  ;;  %3024 = vrot.lane.b32.xlu0 %v5461_v39, %s4782_s18 }
 0x228   : > { %v5708_v20 = vpop.permute.xlu1 %1660  ;;  %v2071_v23 = vpop.permute.xlu0 %2070 }
 0x229   : > { %6638 = vst [vmem:[#allocation45_spill] sm:$0xff] %v5708_v20  ;;  %v2183_v22 = vsel %vm585_vm0, %v2151_v38, %v2071_v23 }
 0x22a   : > { %3152 = vrot.lane.b32.xlu1 %v5477_v14, %s4784_s20  ;;  %2082 = vrot.lane.b32.xlu0 %v5453_v35, %s4784_s20 }
 0x22b   : > { %4483 = vmatmul.mubr.msk.f32.gmra.mrb[48].mxu0 %vm2203_vm7, %v2183_v22 }
 0x22c   : > { %v3011_v45 = vpop.permute.xlu1 %3010  ;;  %v1531_v17 = vpop.permute.xlu0 %1530 }
 0x22d   : > { %v3220_v38 = vsel %vm1107_vm3, %v5720_v25, %v3011_v45  ;;  %v1736_v23 = vsel %vm1107_vm3, %v5720_v25, %v1531_v17 }
 0x22e   : > { %3026 = vrot.lane.b32.xlu1 %v5491_v26, %s4782_s18  ;;  %1956 = vrot.lane.b32.xlu0 %v5463_v56, %s4782_s18  ;;  %v5736_v56 = vld [vmem:[#allocation2 + $0xe0] sm:$0xff] }
 0x230   : > { %v3139_v53 = vpop.permute.xlu1 %3138  ;;  %v1659_v35 = vpop.permute.xlu0 %1658 }
 0x231   : > { %v5727_v22 = vsel %vm585_vm0, %v3220_v38, %v3139_v53  ;;  %v5730_v27 = vsel %vm585_vm0, %v1736_v23, %v1659_v35 }
 0x232   : > { %6639 = vst [vmem:[#allocation46_spill] sm:$0xff] %v5727_v22  ;;  %2084 = vrot.lane.b32.xlu1 %v5479_v59, %s4784_s20  ;;  %1958 = vrot.lane.b32.xlu0 %v5461_v39, %s4782_s18  ;;  %v5751_v39 = vld [vmem:[#allocation2 + $0xf8] sm:$0xff] }
 0x234   : > { %v3141_v45 = vpop.permute.xlu1 %3140  ;;  %v3013_v20 = vpop.permute.xlu0 %3012 }
 0x235   : > { %v3221_v17 = vsel %vm1107_vm3, %v5736_v56, %v3013_v20  ;;  %v5753_v20 = vld [vmem:[#allocation2 + $0xf0] sm:$0xff] }
 0x236   : > { %3154 = vrot.lane.b32.xlu1 %v5514_v11, %s4784_s20  ;;  %3028 = vrot.lane.b32.xlu0 %v5489_v50, %s4782_s18  ;;  %v5745_v53 = vsel %vm585_vm0, %v3221_v17, %v3141_v45 }
 0x237   : > { %6640 = vst [vmem:[#allocation47_spill] sm:$0xff] %v5745_v53 }
 0x238   : > { %v1537_v59 = vpop.permute.xlu1 %1536  ;;  %v1535_v38 = vpop.permute.xlu0 %1534 }
 0x239   : > { %v1739_v23 = vsel %vm1107_vm3, %v5751_v39, %v1537_v59  ;;  %v1738_v35 = vsel %vm1107_vm3, %v5753_v20, %v1535_v38  ;;  %v5773_v59 = vld [vmem:[#allocation2 + $0x110] sm:$0xff]  ;;  %v5775_v38 = vld [vmem:[#allocation2 + $0x108] sm:$0xff] }
 0x23a   : > { %3156 = vrot.lane.b32.xlu1 %v5512_v46, %s4784_s20  ;;  %2086 = vrot.lane.b32.xlu0 %v5477_v14, %s4784_s20 }
 0x23c   : > { %v1665_v45 = vpop.permute.xlu1 %1664  ;;  %v1663_v17 = vpop.permute.xlu0 %1662 }
 0x23d   : > { %v5760_v53 = vsel %vm585_vm0, %v1739_v23, %v1665_v45  ;;  %v5763_v22 = vsel %vm585_vm0, %v1738_v35, %v1663_v17 }
 0x23e   : > { %6641 = vst [vmem:[#allocation48_spill] sm:$0xff] %v5760_v53  ;;  %6642 = vst [vmem:[#allocation49_spill] sm:$0xff] %v5763_v22  ;;  %3030 = vrot.lane.b32.xlu1 %v5523_v52, %s4782_s18  ;;  %1960 = vrot.lane.b32.xlu0 %v5491_v26, %s4782_s18 }
 0x240   : > { %v1541_v14 = vpop.permute.xlu1 %1540  ;;  %v1539_v3 = vpop.permute.xlu0 %1538 }
 0x241   : > { %v1741_v23 = vsel %vm1107_vm3, %v5773_v59, %v1541_v14  ;;  %v1740_v35 = vsel %vm1107_vm3, %v5775_v38, %v1539_v3  ;;  %v5795_v3 = vld [vmem:[#allocation2 + $0x128] sm:$0xff]  ;;  %v5797_v14 = vld [vmem:[#allocation2 + $0x120] sm:$0xff] }
 0x242   : > { %2088 = vrot.lane.b32.xlu1 %v5514_v11, %s4784_s20  ;;  %1962 = vrot.lane.b32.xlu0 %v5489_v50, %s4782_s18  ;;  %6645 = vst [vmem:[#allocation52_spill] sm:$0xff] %v5795_v3  ;;  %6646 = vst [vmem:[#allocation53_spill] sm:$0xff] %v5797_v14 }
 0x244   : > { %v1669_v45 = vpop.permute.xlu1 %1668  ;;  %v1667_v26 = vpop.permute.xlu0 %1666 }
 0x245   : > { %v5782_v17 = vsel %vm585_vm0, %v1741_v23, %v1669_v45  ;;  %v5785_v11 = vsel %vm585_vm0, %v1740_v35, %v1667_v26 }
 0x246   : > { %6643 = vst [vmem:[#allocation50_spill] sm:$0xff] %v5782_v17  ;;  %6644 = vst [vmem:[#allocation51_spill] sm:$0xff] %v5785_v11  ;;  %3158 = vrot.lane.b32.xlu1 %v5545_v40, %s4784_s20  ;;  %3032 = vrot.lane.b32.xlu0 %v5521_v21, %s4782_s18 }
 0x248   : > { %v1545_v50 = vpop.permute.xlu1 %1544  ;;  %v1543_v53 = vpop.permute.xlu0 %1542 }
 0x249   : > { %v1743_v23 = vsel %vm1107_vm3, %v5795_v3, %v1545_v50  ;;  %v1742_v35 = vsel %vm1107_vm3, %v5797_v14, %v1543_v53  ;;  %v5817_v53 = vld [vmem:[#allocation2 + $0x140] sm:$0xff]  ;;  %v5819_v50 = vld [vmem:[#allocation2 + $0x138] sm:$0xff] }
 0x24a   : > { %3160 = vrot.lane.b32.xlu1 %v5543_v10, %s4784_s20  ;;  %2090 = vrot.lane.b32.xlu0 %v5512_v46, %s4784_s20  ;;  %6647 = vst [vmem:[#allocation54_spill] sm:$0xff] %v5817_v53  ;;  %6648 = vst [vmem:[#allocation55_spill] sm:$0xff] %v5819_v50 }
 0x24c   : > { %v1673_v45 = vpop.permute.xlu1 %1672  ;;  %v1671_v26 = vpop.permute.xlu0 %1670 }
 0x24d   : > { %v5804_v17 = vsel %vm585_vm0, %v1743_v23, %v1673_v45  ;;  %v5807_v11 = vsel %vm585_vm0, %v1742_v35, %v1671_v26 }
 0x24e   : > { %3034 = vrot.lane.b32.xlu1 %v5563_v0, %s4782_s18  ;;  %1964 = vrot.lane.b32.xlu0 %v5523_v52, %s4782_s18 }
 0x250   : > { %v1549_v46 = vpop.permute.xlu1 %1548  ;;  %v1547_v22 = vpop.permute.xlu0 %1546 }
 0x251   : > { %v1745_v23 = vsel %vm1107_vm3, %v5817_v53, %v1549_v46  ;;  %v1744_v35 = vsel %vm1107_vm3, %v5819_v50, %v1547_v22 }
 0x252   : > { %2092 = vrot.lane.b32.xlu1 %v5545_v40, %s4784_s20  ;;  %1966 = vrot.lane.b32.xlu0 %v5521_v21, %s4782_s18 }
 0x254   : > { %v1677_v45 = vpop.permute.xlu1 %1676  ;;  %v1675_v52 = vpop.permute.xlu0 %1674 }
 0x255   : > { %v5826_v26 = vsel %vm585_vm0, %v1745_v23, %v1677_v45  ;;  %v5829_v40 = vsel %vm585_vm0, %v1744_v35, %v1675_v52  ;;  %v5843_v23 = vld [vmem:[#allocation2 + $0x158] sm:$0xff]  ;;  %v5845_v35 = vld [vmem:[#allocation2 + $0x150] sm:$0xff] }
 0x256   : > { %6649 = vst [vmem:[#allocation56_spill] sm:$0xff] %v5826_v26  ;;  %6650 = vst [vmem:[#allocation57_spill] sm:$0xff] %v5829_v40  ;;  %v5831_v3 = vpop.f32.mrb[34].mxu0  ;;  %3162 = vrot.lane.b32.xlu1 %v5579_v57, %s4784_s20  ;;  %3036 = vrot.lane.b32.xlu0 %v5561_v60, %s4782_s18  ;;  %v2914_v26 = vld [vmem:[#allocation2 + $0x181] sm:$0xff] }
 0x257   : > { %6651 = vst [vmem:[#allocation58_spill] sm:$0xff] %v5831_v3  ;;  %v5837_v21 = vpop.f32.mrb[35].mxu0  ;;  %6653 = vst [vmem:[#allocation60_spill] sm:$0xff] %v5843_v23 }
 0x258   : > { %6652 = vst [vmem:[#allocation59_spill] sm:$0xff] %v5837_v21  ;;  %v1553_v46 = vpop.permute.xlu1 %1552  ;;  %v1551_v22 = vpop.permute.xlu0 %1550  ;;  %6654 = vst [vmem:[#allocation61_spill] sm:$0xff] %v5845_v35 }
 0x259   : > { %v1747_v45 = vsel %vm1107_vm3, %v5843_v23, %v1553_v46  ;;  %v1746_v52 = vsel %vm1107_vm3, %v5845_v35, %v1551_v22  ;;  %v5864_v46 = vld [vmem:[#allocation2 + $0x170] sm:$0xff]  ;;  %v2946_v23 = vld [vmem:[#allocation2 + $0x182] sm:$0xff] }
 0x25a   : > { %3164 = vrot.lane.b32.xlu1 %v5573_v13, %s4784_s20  ;;  %2094 = vrot.lane.b32.xlu0 %v5543_v10, %s4784_s20  ;;  %6657 = vst [vmem:[#allocation64_spill] sm:$0xff] %v5864_v46 }
 0x25c   : > { %v1681_v3 = vpop.permute.xlu1 %1680  ;;  %v1679_v21 = vpop.permute.xlu0 %1678 }
 0x25d   : > { %v5852_v53 = vsel %vm585_vm0, %v1747_v45, %v1681_v3  ;;  %v5855_v50 = vsel %vm585_vm0, %v1746_v52, %v1679_v21  ;;  %v5866_v3 = vld [vmem:[#allocation2 + $0x168] sm:$0xff] }
 0x25e   : > { %6655 = vst [vmem:[#allocation62_spill] sm:$0xff] %v5852_v53  ;;  %6656 = vst [vmem:[#allocation63_spill] sm:$0xff] %v5855_v50  ;;  %3038 = vrot.lane.b32.xlu1 %v2914_v26, %s4782_s18  ;;  %1968 = vrot.lane.b32.xlu0 %v5563_v0, %s4782_s18 }
 0x25f   : > { %6658 = vst [vmem:[#allocation65_spill] sm:$0xff] %v5866_v3 }
 0x260   : > { %v1557_v10 = vpop.permute.xlu1 %1556  ;;  %v1555_v40 = vpop.permute.xlu0 %1554 }
 0x261   : > { %v1749_v21 = vsel %vm1107_vm3, %v5864_v46, %v1557_v10  ;;  %v1748_v22 = vsel %vm1107_vm3, %v5866_v3, %v1555_v40  ;;  %v2947_v10 = vld [vmem:[#allocation2 + $0x18a] sm:$0xff]  ;;  %v1366_v40 = vld [vmem:[#allocation2] sm:$0xff] }
 0x262   : > { %2096 = vrot.lane.b32.xlu1 %v5579_v57, %s4784_s20  ;;  %1970 = vrot.lane.b32.xlu0 %v5561_v60, %s4782_s18  ;;  %v2915_v60 = vld [vmem:[#allocation2 + $0x189] sm:$0xff] }
 0x264   : > { %v1685_v45 = vpop.permute.xlu1 %1684  ;;  %v1683_v0 = vpop.permute.xlu0 %1682 }
 0x265   : > { %v5873_v52 = vsel %vm585_vm0, %v1749_v21, %v1685_v45  ;;  %v5876_v57 = vsel %vm585_vm0, %v1748_v22, %v1683_v0  ;;  %v2916_v21 = vld [vmem:[#allocation2 + $0x199] sm:$0xff] }
 0x266   : > { %6659 = vst [vmem:[#allocation66_spill] sm:$0xff] %v5873_v52  ;;  %6660 = vst [vmem:[#allocation67_spill] sm:$0xff] %v5876_v57  ;;  %3166 = vrot.lane.b32.xlu1 %v2946_v23, %s4784_s20  ;;  %3040 = vrot.lane.b32.xlu0 %v2915_v60, %s4782_s18  ;;  %v1367_v52 = vld [vmem:[#allocation2 + $0x8] sm:$0xff] }
 0x268   : > { %v3015_v35 = vpop.permute.xlu1 %3014  ;;  %v1495_v53 = vpop.permute.xlu0 %1494 }
 0x269   : > { %v1718_v45 = vsel %vm1107_vm3, %v1366_v40, %v1495_v53  ;;  %v1720_v40 = vsel %vm1107_vm3, %v5267_v44, %v5257_v31  ;;  %v1721_v44 = vsel %vm1107_vm3, %v5279_v51, %v5255_v37  ;;  %v3222_v37 = vsel %vm1107_vm3, %v5753_v20, %v3015_v35 }
 0x26a   : > { %3168 = vrot.lane.b32.xlu1 %v2947_v10, %s4784_s20  ;;  %2098 = vrot.lane.b32.xlu0 %v5573_v13, %s4784_s20 }
 0x26c   : > { %v1623_v22 = vpop.permute.xlu1 %1622  ;;  %v1497_v0 = vpop.permute.xlu0 %1496 }
 0x26d   : > { %v1750_v46 = vsel %vm585_vm0, %v1718_v45, %v1623_v22  ;;  %v1719_v13 = vsel %vm1107_vm3, %v1367_v52, %v1497_v0  ;;  %v2917_v52 = vld [vmem:[#allocation2 + $0x1a1] sm:$0xff]  ;;  %v1726_v45 = vsel %vm1107_vm3, %v5401_v55, %v5374_v43  ;;  %v6663_v43 = vld [vmem:[#allocation24_spill] sm:$0xff] }
 0x26e   : > { %v5885_v3 = vpop.f32.mrb[36].mxu0  ;;  %3042 = vrot.lane.b32.xlu1 %v2916_v21, %s4782_s18  ;;  %1972 = vrot.lane.b32.xlu0 %v2914_v26, %s4782_s18  ;;  %v1752_v26 = vsel %vm585_vm0, %v1720_v40, %v5263_v42  ;;  %v2948_v42 = vld [vmem:[#allocation2 + $0x19a] sm:$0xff]  ;;  %v1758_v22 = vsel %vm585_vm0, %v1726_v45, %v5383_v47  ;;  %v6662_v40 = vld [vmem:[#allocation19_spill] sm:$0xff] }
 0x26f   : > { %v5889_v57 = vpop.f32.mrb[37].mxu0  ;;  %4513 = vmatprep.mubr.msk.f32.mxu1 %vm2203_vm7, %v1750_v46 }
 0x270   : > { %v1625_v50 = vpop.permute.xlu1 %1624  ;;  %v1945_v14 = vpop.permute.xlu0 %1944 }
 0x271   : > { %v1751_v53 = vsel %vm585_vm0, %v1719_v13, %v1625_v50  ;;  %v2152_v46 = vsel %vm1107_vm3, %v5720_v25, %v1945_v14  ;;  %v2949_v25 = vld [vmem:[#allocation2 + $0x1a2] sm:$0xff]  ;;  %v1724_v14 = vsel %vm1107_vm3, %v5347_v24, %v5331_v16  ;;  %v1725_v16 = vsel %vm1107_vm3, %v5359_v32, %v5315_v7 }
 0x272   : > { %2100 = vrot.lane.b32.xlu1 %v2946_v23, %s4784_s20  ;;  %1974 = vrot.lane.b32.xlu0 %v2915_v60, %s4782_s18  ;;  %v1753_v60 = vsel %vm585_vm0, %v1721_v44, %v5261_v41  ;;  %v1756_v35 = vsel %vm585_vm0, %v1724_v14, %v5337_v19  ;;  %v1727_v13 = vsel %vm1107_vm3, %v5421_v8, %v5355_v29  ;;  %v6665_v29 = vld [vmem:[#allocation16_spill] sm:$0xff] }
 0x273   : > { %4514 = vmatmul.mubr.msk.f32.vlgmr.msra.gmra.mrb[2].mxu1 %vm2203_vm7, %v1751_v53 }
 0x274   : > { %4630 = vmatpush3.bf16.msk.msra.mxu1 %vm5021_vm6, %v5592_v5  ;;  %4516 = vmatprep.mubr.msk.f32.mxu1 %vm2203_vm7, %v1752_v26  ;;  %v2073_v50 = vpop.permute.xlu1 %2072  ;;  %v1947_v31 = vpop.permute.xlu0 %1946  ;;  %v1754_v5 = vsel %vm585_vm0, %v1722_v33, %v5297_v61  ;;  %v1755_v61 = vsel %vm585_vm0, %v1723_v58, %v5283_v54  ;;  %v1728_v26 = vsel %vm1107_vm3, %v6663_v43, %v6662_v40 }
 0x275   : > { %v2184_v23 = vsel %vm585_vm0, %v2152_v46, %v2073_v50  ;;  %v2153_v49 = vsel %vm1107_vm3, %v5736_v56, %v1947_v31  ;;  %v6664_v46 = vld [vmem:[#allocation21_spill] sm:$0xff] }
 0x276   : > { %3170 = vrot.lane.b32.xlu1 %v2948_v42, %s4784_s20  ;;  %3044 = vrot.lane.b32.xlu0 %v2917_v52, %s4782_s18  ;;  %v1760_v47 = vsel %vm585_vm0, %v1728_v26, %v6664_v46 }
 0x277   : > { %4485 = vmatprep.mubr.msk.f32.mxu0 %vm2203_vm7, %v2184_v23  ;;  %4517 = vmatmul.mubr.msk.f32.gmra.mrb[4].mxu1 %vm2203_vm7, %v1753_v60  ;;  %v6666_v23 = vld [vmem:[#allocation26_spill] sm:$0xff]  ;;  %v6667_v60 = vld [vmem:[#allocation17_spill] sm:$0xff] }
 0x278   : > { %4519 = vmatprep.mubr.msk.f32.mxu1 %vm2203_vm7, %v1754_v5  ;;  %v3143_v41 = vpop.permute.xlu1 %3142  ;;  %v3017_v51 = vpop.permute.xlu0 %3016  ;;  %v1729_v42 = vsel %vm1107_vm3, %v6666_v23, %v6665_v29  ;;  %v6668_v5 = vld [vmem:[#allocation29_spill] sm:$0xff] }
 0x279   : > { %v5930_v2 = vsel %vm585_vm0, %v3222_v37, %v3143_v41  ;;  %v3223_v9 = vsel %vm1107_vm3, %v5751_v39, %v3017_v51  ;;  %v1761_v33 = vsel %vm585_vm0, %v1729_v42, %v6667_v60  ;;  %v6669_v37 = vld [vmem:[#allocation34_spill] sm:$0xff]  ;;  %v6678_v60 = vld [vmem:[#allocation51_spill] sm:$0xff] }
 0x27a   : > { %3172 = vrot.lane.b32.xlu1 %v2949_v25, %s4784_s20  ;;  %2102 = vrot.lane.b32.xlu0 %v2947_v10, %s4784_s20  ;;  %v1757_v10 = vsel %vm585_vm0, %v1725_v16, %v5323_v12  ;;  %v6661_v12 = vld [vmem:[#allocation11_spill] sm:$0xff]  ;;  %v1730_v41 = vsel %vm1107_vm3, %v6669_v37, %v6668_v5 }
 0x27b   : > { %4520 = vmatmul.mubr.msk.f32.gmra.mrb[6].mxu1 %vm2203_vm7, %v1755_v61  ;;  %v1759_v53 = vsel %vm585_vm0, %v1727_v13, %v6661_v12  ;;  %v6673_v13 = vld [vmem:[#allocation35_spill] sm:$0xff] }
 0x27c   : > { %4522 = vmatprep.mubr.msk.f32.mxu1 %vm2203_vm7, %v1756_v35  ;;  %v3145_v54 = vpop.permute.xlu1 %3144  ;;  %v2075_v21 = vpop.permute.xlu0 %2074  ;;  %v1733_v12 = vsel %vm1107_vm3, %v5652_v6, %v6673_v13  ;;  %v6686_v13 = vld [vmem:[#allocation67_spill] sm:$0xff] }
 0x27d   : > { %v5951_v24 = vsel %vm585_vm0, %v3223_v9, %v3145_v54  ;;  %v2185_v19 = vsel %vm585_vm0, %v2153_v49, %v2075_v21  ;;  %v6671_v49 = vld [vmem:[#allocation25_spill] sm:$0xff]  ;;  %v6672_v21 = vld [vmem:[#allocation27_spill] sm:$0xff] }
 0x27e   : > { %4486 = vmatmul.mubr.msk.f32.gmra.mrb[50].mxu0 %vm2203_vm7, %v2185_v19  ;;  %v1731_v9 = vsel %vm1107_vm3, %v5603_v1, %v6671_v49  ;;  %v1732_v19 = vsel %vm1107_vm3, %v5636_v36, %v5615_v62 }
 0x27f   : > { %4523 = vmatmul.mubr.msk.f32.gmra.mrb[8].mxu1 %vm2203_vm7, %v1757_v10  ;;  %v1763_v16 = vsel %vm585_vm0, %v1731_v9, %v6672_v21  ;;  %v1764_v10 = vsel %vm585_vm0, %v1732_v19, %v5622_v15  ;;  %v6681_v9 = vld [vmem:[#allocation57_spill] sm:$0xff] }
 0x280   : > { %4525 = vmatprep.mubr.msk.f32.mxu1 %vm2203_vm7, %v1758_v22  ;;  %v3019_v7 = vpop.permute.xlu1 %3018  ;;  %v1949_v0 = vpop.permute.xlu0 %1948 }
 0x281   : > { %v2154_v50 = vsel %vm1107_vm3, %v5753_v20, %v1949_v0  ;;  %v6670_v20 = vld [vmem:[#allocation31_spill] sm:$0xff]  ;;  %v3224_v61 = vsel %vm1107_vm3, %v5775_v38, %v3019_v7 }
 0x282   : > { %v1762_v58 = vsel %vm585_vm0, %v1730_v41, %v6670_v20 }
 0x283   : > { %4526 = vmatmul.mubr.msk.f32.gmra.mrb[10].mxu1 %vm2203_vm7, %v1759_v53  ;;  %v1765_v53 = vsel %vm585_vm0, %v1733_v12, %v5607_v63  ;;  %v1735_v63 = vsel %vm1107_vm3, %v5704_v48, %v5646_v18  ;;  %v6675_v18 = vld [vmem:[#allocation45_spill] sm:$0xff] }
 0x284   : > { %4528 = vmatprep.mubr.msk.f32.mxu1 %vm2203_vm7, %v1760_v47  ;;  %v2077_v31 = vpop.permute.xlu1 %2076  ;;  %v1951_v44 = vpop.permute.xlu0 %1950  ;;  %v1767_v47 = vsel %vm585_vm0, %v1735_v63, %v5656_v30  ;;  %v6676_v30 = vld [vmem:[#allocation49_spill] sm:$0xff]  ;;  %v6688_v63 = vld [vmem:[#allocation4_spill] sm:$0xff] }
 0x285   : > { %v2186_v52 = vsel %vm585_vm0, %v2154_v50, %v2077_v31  ;;  %v2155_v45 = vsel %vm1107_vm3, %v5751_v39, %v1951_v44  ;;  %v1734_v39 = vsel %vm1107_vm3, %v5688_v34, %v5666_v4  ;;  %v6674_v31 = vld [vmem:[#allocation44_spill] sm:$0xff] }
 0x286   : > { %v5987_v51 = vpop.f32.mrb[38].mxu0  ;;  %4488 = vmatprep.mubr.msk.f32.mxu0 %vm2203_vm7, %v2186_v52  ;;  %v1766_v40 = vsel %vm585_vm0, %v1734_v39, %v5674_v28  ;;  %v1737_v44 = vsel %vm1107_vm3, %v5736_v56, %v6674_v31  ;;  %v6677_v52 = vld [vmem:[#allocation48_spill] sm:$0xff]  ;;  %v4739_v39 = vld [vmem:[#allocation2 + $0x30] sm:$0xff]  ;;  %v6690_v31 = vld [vmem:[#allocation66_spill] sm:$0xff] }
 0x287   : > { %v5992_v25 = vpop.f32.mrb[39].mxu0  ;;  %4529 = vmatmul.mubr.msk.f32.gmra.mrb[12].mxu1 %vm2203_vm7, %v1761_v33  ;;  %v1769_v42 = vsel %vm585_vm0, %v1737_v44, %v6675_v18  ;;  %v6691_v18 = vld [vmem:[#allocation5_spill] sm:$0xff] }
 0x288   : > { %4531 = vmatprep.mubr.msk.f32.mxu1 %vm2203_vm7, %v1762_v58  ;;  %v3147_v14 = vpop.permute.xlu1 %3146  ;;  %v3021_v35 = vpop.permute.xlu0 %3020 }
 0x289   : > { %v6002_v54 = vsel %vm585_vm0, %v3224_v61, %v3147_v14  ;;  %v3225_v22 = vsel %vm1107_vm3, %v5773_v59, %v3021_v35  ;;  %v6679_v61 = vld [vmem:[#allocation50_spill] sm:$0xff]  ;;  %v6680_v35 = vld [vmem:[#allocation53_spill] sm:$0xff] }
 0x28b   : > { %4532 = vmatmul.mubr.msk.f32.gmra.mrb[14].mxu1 %vm2203_vm7, %v1763_v16 }
 0x28c   : > { %4534 = vmatprep.mubr.msk.f32.mxu1 %vm2203_vm7, %v1764_v10  ;;  %v3149_v7 = vpop.permute.xlu1 %3148  ;;  %v2079_v0 = vpop.permute.xlu0 %2078  ;;  %v6682_v10 = vld [vmem:[#allocation56_spill] sm:$0xff] }
 0x28d   : > { %v6021_v62 = vsel %vm585_vm0, %v3225_v22, %v3149_v7  ;;  %v2187_v15 = vsel %vm585_vm0, %v2155_v45, %v2079_v0  ;;  %v6684_v22 = vld [vmem:[#allocation62_spill] sm:$0xff]  ;;  %v6685_v7 = vld [vmem:[#allocation52_spill] sm:$0xff] }
 0x28e   : > { %4489 = vmatmul.mubr.msk.f32.gmra.mrb[52].mxu0 %vm2203_vm7, %v2187_v15 }
 0x28f   : > { %4535 = vmatmul.mubr.msk.f32.gmra.mrb[16].mxu1 %vm2203_vm7, %v1765_v53 }
 0x290   : > { %4537 = vmatprep.mubr.msk.f32.mxu1 %vm2203_vm7, %v1766_v40  ;;  %v6034_v26 = vpop.permute.xlu1 %3022  ;;  %v1953_v46 = vpop.permute.xlu0 %1952  ;;  %v6687_v40 = vld [vmem:[#allocation3_spill] sm:$0xff] }
 0x291   : > { %v2156_v4 = vsel %vm1107_vm3, %v5775_v38, %v1953_v46  ;;  %v3206_v46 = vsel %vm1107_vm3, %v4739_v39, %v6687_v40 }
 0x293   : > { %4538 = vmatmul.mubr.msk.f32.gmra.mrb[18].mxu1 %vm2203_vm7, %v1767_v47  ;;  %v3238_v47 = vsel %vm585_vm0, %v3206_v46, %v6688_v63  ;;  %v6700_v46 = vld [vmem:[#allocation18_spill] sm:$0xff] }
 0x294   : > { %4540 = vmatprep.mubr.msk.f32.mxu1 %vm2203_vm7, %v5730_v27  ;;  %v2081_v28 = vpop.permute.xlu1 %2080  ;;  %v1955_v50 = vpop.permute.xlu0 %1954  ;;  %v3212_v63 = vsel %vm1107_vm3, %v6663_v43, %v6700_v46 }
 0x295   : > { %v2188_v29 = vsel %vm585_vm0, %v2156_v4, %v2081_v28  ;;  %v2157_v56 = vsel %vm1107_vm3, %v5773_v59, %v1955_v50  ;;  %v4740_v4 = vld [vmem:[#allocation2 + $0x38] sm:$0xff]  ;;  %v6689_v28 = vld [vmem:[#allocation6_spill] sm:$0xff] }
 0x296   : > { %4491 = vmatprep.mubr.msk.f32.mxu0 %vm2203_vm7, %v2188_v29  ;;  %v3207_v50 = vsel %vm1107_vm3, %v4740_v4, %v6689_v28  ;;  %v6702_v28 = vld [vmem:[#allocation20_spill] sm:$0xff] }
 0x297   : > { %4541 = vmatmul.mubr.msk.f32.gmra.mrb[20].mxu1 %vm2203_vm7, %v1769_v42  ;;  %v3239_v42 = vsel %vm585_vm0, %v3207_v50, %v6691_v18  ;;  %v6703_v50 = vld [vmem:[#allocation23_spill] sm:$0xff] }
 0x298   : > { %4543 = vmatprep.mubr.msk.f32.mxu1 %vm2203_vm7, %v6676_v30  ;;  %v6056_v38 = vpop.permute.xlu1 %3150  ;;  %v6058_v27 = vpop.permute.xlu0 %3024  ;;  %v4741_v30 = vld [vmem:[#allocation2 + $0x48] sm:$0xff] }
 0x29b   : > { %4544 = vmatmul.mubr.msk.f32.gmra.mrb[22].mxu1 %vm2203_vm7, %v6677_v52  ;;  %v6692_v52 = vld [vmem:[#allocation7_spill] sm:$0xff] }
 0x29c   : > { %4546 = vmatprep.mubr.msk.f32.mxu1 %vm2203_vm7, %v6678_v60  ;;  %v6066_v33 = vpop.permute.xlu1 %3152  ;;  %v2083_v5 = vpop.permute.xlu0 %2082  ;;  %v6693_v60 = vld [vmem:[#allocation8_spill] sm:$0xff] }
 0x29d   : > { %v2189_v41 = vsel %vm585_vm0, %v2157_v56, %v2083_v5  ;;  %v3208_v56 = vsel %vm1107_vm3, %v4741_v30, %v6692_v52  ;;  %v6705_v52 = vld [vmem:[#allocation28_spill] sm:$0xff] }
 0x29e   : > { %v6069_v20 = vpop.f32.mrb[40].mxu0  ;;  %4492 = vmatmul.mubr.msk.f32.gmra.mrb[54].mxu0 %vm2203_vm7, %v2189_v41  ;;  %v3240_v5 = vsel %vm585_vm0, %v3208_v56, %v6693_v60  ;;  %v6694_v41 = vld [vmem:[#allocation10_spill] sm:$0xff]  ;;  %v3214_v56 = vsel %vm1107_vm3, %v6669_v37, %v6705_v52  ;;  %v6709_v37 = vld [vmem:[#allocation36_spill] sm:$0xff] }
 0x29f   : > { %v6072_v58 = vpop.f32.mrb[41].mxu0  ;;  %4547 = vmatmul.mubr.msk.f32.gmra.mrb[24].mxu1 %vm2203_vm7, %v6679_v61  ;;  %v3209_v61 = vsel %vm1107_vm3, %v5359_v32, %v6694_v41  ;;  %v6697_v32 = vld [vmem:[#allocation9_spill] sm:$0xff]  ;;  %v6706_v60 = vld [vmem:[#allocation22_spill] sm:$0xff]  ;;  %v6719_v52 = vld [vmem:[#allocation60_spill] sm:$0xff] }
 0x2a0   : > { %4549 = vmatprep.mubr.msk.f32.mxu1 %vm2203_vm7, %v5807_v11  ;;  %v6078_v59 = vpop.permute.xlu1 %3026  ;;  %v1957_v14 = vpop.permute.xlu0 %1956  ;;  %v6683_v11 = vld [vmem:[#allocation63_spill] sm:$0xff] }
 0x2a1   : > { %v2158_v49 = vsel %vm1107_vm3, %v6680_v35, %v1957_v14  ;;  %v6695_v14 = vld [vmem:[#allocation55_spill] sm:$0xff] }
 0x2a3   : > { %4550 = vmatmul.mubr.msk.f32.gmra.mrb[26].mxu1 %vm2203_vm7, %v5804_v17 }
 0x2a4   : > { %4552 = vmatprep.mubr.msk.f32.mxu1 %vm2203_vm7, %v6681_v9  ;;  %v2085_v21 = vpop.permute.xlu1 %2084  ;;  %v1959_v16 = vpop.permute.xlu0 %1958 }
 0x2a5   : > { %v2190_v19 = vsel %vm585_vm0, %v2158_v49, %v2085_v21  ;;  %v2159_v0 = vsel %vm1107_vm3, %v6685_v7, %v1959_v16 }
 0x2a6   : > { %4494 = vmatprep.mubr.msk.f32.mxu0 %vm2203_vm7, %v2190_v19  ;;  %v6696_v19 = vld [vmem:[#allocation12_spill] sm:$0xff] }
 0x2a7   : > { %4553 = vmatmul.mubr.msk.f32.gmra.mrb[28].mxu1 %vm2203_vm7, %v6682_v10  ;;  %v3210_v10 = vsel %vm1107_vm3, %v5401_v55, %v6696_v19  ;;  %v6710_v19 = vld [vmem:[#allocation32_spill] sm:$0xff] }
 0x2a8   : > { %4555 = vmatprep.mubr.msk.f32.mxu1 %vm2203_vm7, %v6683_v11  ;;  %v6092_v45 = vpop.permute.xlu1 %3154  ;;  %v6094_v17 = vpop.permute.xlu0 %3028 }
 0x2ab   : > { %4556 = vmatmul.mubr.msk.f32.gmra.mrb[30].mxu1 %vm2203_vm7, %v6684_v22  ;;  %v3241_v22 = vsel %vm585_vm0, %v3209_v61, %v6697_v32  ;;  %v6708_v61 = vld [vmem:[#allocation33_spill] sm:$0xff] }
 0x2ac   : > { %4558 = vmatprep.mubr.msk.f32.mxu1 %vm2203_vm7, %v6686_v13  ;;  %v6102_v12 = vpop.permute.xlu1 %3156  ;;  %v2087_v15 = vpop.permute.xlu0 %2086  ;;  %v6711_v32 = vld [vmem:[#allocation37_spill] sm:$0xff] }
 0x2ad   : > { %v2191_v53 = vsel %vm585_vm0, %v2159_v0, %v2087_v15  ;;  %v6698_v0 = vld [vmem:[#allocation13_spill] sm:$0xff]  ;;  %v6699_v15 = vld [vmem:[#allocation15_spill] sm:$0xff] }
 0x2ae   : > { %4495 = vmatmul.mubr.msk.f32.gmra.mrb[56].mxu0 %vm2203_vm7, %v2191_v53  ;;  %v3242_v13 = vsel %vm585_vm0, %v3210_v10, %v6698_v0  ;;  %v3211_v53 = vsel %vm1107_vm3, %v5421_v8, %v6699_v15  ;;  %v3244_v8 = vsel %vm585_vm0, %v3212_v63, %v6702_v28  ;;  %v6712_v0 = vld [vmem:[#allocation39_spill] sm:$0xff]  ;;  %v6714_v63 = vld [vmem:[#allocation40_spill] sm:$0xff]  ;;  %v6716_v28 = vld [vmem:[#allocation41_spill] sm:$0xff] }
 0x2af   : > { %4559 = vmatmul.mubr.msk.f32.gmra.mrb[32].mxu1 %vm2203_vm7, %v6690_v31  ;;  %v3213_v31 = vsel %vm1107_vm3, %v6666_v23, %v6703_v50  ;;  %v6717_v50 = vld [vmem:[#allocation43_spill] sm:$0xff] }
 0x2b0   : > { %4565 = vmatprep.mubr.msk.f32.mxu1 %vm2203_vm7, %v3238_v47  ;;  %v6115_v44 = vpop.permute.xlu1 %3030  ;;  %v1961_v29 = vpop.permute.xlu0 %1960  ;;  %v6701_v47 = vld [vmem:[#allocation14_spill] sm:$0xff]  ;;  %v3245_v23 = vsel %vm585_vm0, %v3213_v31, %v6706_v60  ;;  %v3219_v31 = vsel %vm1107_vm3, %v5704_v48, %v6717_v50 }
 0x2b1   : > { %v2160_v49 = vsel %vm1107_vm3, %v6695_v14, %v1961_v29  ;;  %v3243_v4 = vsel %vm585_vm0, %v3211_v53, %v6701_v47  ;;  %v6704_v29 = vld [vmem:[#allocation54_spill] sm:$0xff]  ;;  %v3218_v47 = vsel %vm1107_vm3, %v5688_v34, %v6714_v63 }
 0x2b2   : > { %v6720_v60 = vld [vmem:[#allocation46_spill] sm:$0xff] }
 0x2b3   : > { %4566 = vmatmul.mubr.msk.f32.vlgmr.msra.gmra.mrb[2].mxu1 %vm2203_vm7, %v3239_v42 }
 0x2b4   : > { %4568 = vmatprep.mubr.msk.f32.mxu1 %vm2203_vm7, %v3240_v5  ;;  %v2089_v9 = vpop.permute.xlu1 %2088  ;;  %v1963_v21 = vpop.permute.xlu0 %1962  ;;  %v6707_v5 = vld [vmem:[#allocation30_spill] sm:$0xff] }
 0x2b5   : > { %v2192_v16 = vsel %vm585_vm0, %v2160_v49, %v2089_v9  ;;  %v2161_v18 = vsel %vm1107_vm3, %v6704_v29, %v1963_v21  ;;  %v3246_v41 = vsel %vm585_vm0, %v3214_v56, %v6707_v5  ;;  %v3215_v49 = vsel %vm1107_vm3, %v5603_v1, %v6708_v61 }
 0x2b6   : > { %v6134_v11 = vpop.f32.mrb[42].mxu0  ;;  %4497 = vmatprep.mubr.msk.f32.mxu0 %vm2203_vm7, %v2192_v16  ;;  %v3216_v16 = vsel %vm1107_vm3, %v5636_v36, %v6709_v37  ;;  %v3247_v10 = vsel %vm585_vm0, %v3215_v49, %v6710_v19  ;;  %v3217_v1 = vsel %vm1107_vm3, %v5652_v6, %v6712_v0  ;;  %v6721_v49 = vld [vmem:[#allocation47_spill] sm:$0xff]  ;;  %v3226_v0 = vsel %vm1107_vm3, %v6680_v35, %v6034_v26 }
 0x2b7   : > { %v6144_v39 = vpop.f32.mrb[43].mxu0  ;;  %4569 = vmatmul.mubr.msk.f32.gmra.mrb[4].mxu1 %vm2203_vm7, %v3241_v22  ;;  %v3248_v22 = vsel %vm585_vm0, %v3216_v16, %v6711_v32  ;;  %v6722_v16 = vld [vmem:[#allocation65_spill] sm:$0xff]  ;;  %v3228_v26 = vsel %vm1107_vm3, %v6695_v14, %v6078_v59 }
 0x2b8   : > { %4571 = vmatprep.mubr.msk.f32.mxu1 %vm2203_vm7, %v3242_v13  ;;  %v6148_v55 = vpop.permute.xlu1 %3158  ;;  %v6150_v40 = vpop.permute.xlu0 %3032  ;;  %v6713_v13 = vld [vmem:[#allocation61_spill] sm:$0xff] }
 0x2bb   : > { %4572 = vmatmul.mubr.msk.f32.gmra.mrb[6].mxu1 %vm2203_vm7, %v3243_v4  ;;  %v6715_v4 = vld [vmem:[#allocation38_spill] sm:$0xff] }
 0x2bc   : > { %4574 = vmatprep.mubr.msk.f32.mxu1 %vm2203_vm7, %v3244_v8  ;;  %v6166_v42 = vpop.permute.xlu1 %3160  ;;  %v2091_v43 = vpop.permute.xlu0 %2090  ;;  %v3249_v6 = vsel %vm585_vm0, %v3217_v1, %v6715_v4  ;;  %v3250_v8 = vsel %vm585_vm0, %v3218_v47, %v6716_v28  ;;  %v3227_v1 = vsel %vm1107_vm3, %v6685_v7, %v6058_v27  ;;  %v3229_v27 = vsel %vm1107_vm3, %v6704_v29, %v6094_v17 }
 0x2bd   : > { %v2193_v30 = vsel %vm585_vm0, %v2161_v18, %v2091_v43  ;;  %v3261_v59 = vsel %vm585_vm0, %v3229_v27, %v6102_v12  ;;  %v3231_v29 = vsel %vm1107_vm3, %v6719_v52, %v6150_v40 }
 0x2be   : > { %4498 = vmatmul.mubr.msk.f32.gmra.mrb[58].mxu0 %vm2203_vm7, %v2193_v30  ;;  %v6718_v30 = vld [vmem:[#allocation42_spill] sm:$0xff]  ;;  %v3263_v12 = vsel %vm585_vm0, %v3231_v29, %v6166_v42 }
 0x2bf   : > { %4575 = vmatmul.mubr.msk.f32.gmra.mrb[8].mxu1 %vm2203_vm7, %v3245_v23  ;;  %v3251_v34 = vsel %vm585_vm0, %v3219_v31, %v6718_v30  ;;  %v2883_v31 = vld [vmem:[#allocation2 + $0x188] sm:$0xff] }
 0x2c0   : > { %4577 = vmatprep.mubr.msk.f32.mxu1 %vm2203_vm7, %v3246_v41  ;;  %v6182_v9 = vpop.permute.xlu1 %3034  ;;  %v1965_v21 = vpop.permute.xlu0 %1964 }
 0x2c1   : > { %v2162_v15 = vsel %vm1107_vm3, %v6713_v13, %v1965_v21 }
 0x2c3   : > { %4578 = vmatmul.mubr.msk.f32.gmra.mrb[10].mxu1 %vm2203_vm7, %v3247_v10 }
 0x2c4   : > { %4580 = vmatprep.mubr.msk.f32.mxu1 %vm2203_vm7, %v3248_v22  ;;  %v2093_v53 = vpop.permute.xlu1 %2092  ;;  %v1967_v46 = vpop.permute.xlu0 %1966 }
 0x2c5   : > { %v2194_v36 = vsel %vm585_vm0, %v2162_v15, %v2093_v53  ;;  %v2163_v56 = vsel %vm1107_vm3, %v6719_v52, %v1967_v46  ;;  %v3259_v15 = vsel %vm585_vm0, %v3227_v1, %v6066_v33 }
 0x2c6   : > { %4500 = vmatprep.mubr.msk.f32.mxu0 %vm2203_vm7, %v2194_v36 }
 0x2c7   : > { %4581 = vmatmul.mubr.msk.f32.gmra.mrb[12].mxu1 %vm2203_vm7, %v3249_v6 }
 0x2c8   : > { %4583 = vmatprep.mubr.msk.f32.mxu1 %vm2203_vm7, %v3250_v8  ;;  %v3163_v18 = vpop.permute.xlu1 %3162  ;;  %v3037_v43 = vpop.permute.xlu0 %3036  ;;  %v2884_v8 = vld [vmem:[#allocation2 + $0x198] sm:$0xff] }
 0x2cb   : > { %4584 = vmatmul.mubr.msk.f32.gmra.mrb[14].mxu1 %vm2203_vm7, %v3251_v34 }
 0x2cc   : > { %4586 = vmatprep.mubr.msk.f32.mxu1 %vm2203_vm7, %v6720_v60  ;;  %v3165_v23 = vpop.permute.xlu1 %3164  ;;  %v2095_v5 = vpop.permute.xlu0 %2094  ;;  %v2885_v60 = vld [vmem:[#allocation2 + $0x1a0] sm:$0xff] }
 0x2cd   : > { %v2195_v48 = vsel %vm585_vm0, %v2163_v56, %v2095_v5 }
 0x2ce   : > { %v6220_v41 = vpop.f32.mrb[44].mxu0  ;;  %4501 = vmatmul.mubr.msk.f32.gmra.mrb[60].mxu0 %vm2203_vm7, %v2195_v48 }
 0x2cf   : > { %v6223_v61 = vpop.f32.mrb[45].mxu0  ;;  %4587 = vmatmul.mubr.msk.f32.gmra.mrb[16].mxu1 %vm2203_vm7, %v6721_v49 }
 0x2d0   : > { %4589 = vmatprep.mubr.msk.f32.mxu1 %vm2203_vm7, %v5930_v2  ;;  %v3039_v21 = vpop.permute.xlu1 %3038  ;;  %v1969_v37 = vpop.permute.xlu0 %1968  ;;  %v3258_v2 = vsel %vm585_vm0, %v3226_v0, %v6056_v38  ;;  %v3260_v38 = vsel %vm585_vm0, %v3228_v26, %v6092_v45  ;;  %v3230_v45 = vsel %vm1107_vm3, %v6713_v13, %v6115_v44  ;;  %v3232_v44 = vsel %vm1107_vm3, %v6722_v16, %v6182_v9  ;;  %v6333_v26 = vld [vmem:[%s6569_s7] ss:$0 sm:$0xff] }
 0x2d1   : > { %v2164_v19 = vsel %vm1107_vm3, %v6722_v16, %v1969_v37  ;;  %v3262_v7 = vsel %vm585_vm0, %v3230_v45, %v6148_v55  ;;  %v3264_v13 = vsel %vm585_vm0, %v3232_v44, %v3163_v18  ;;  %v2882_v55 = vld [vmem:[#allocation2 + $0x180] sm:$0xff] }
 0x2d2   : > { %v3234_v9 = vsel %vm1107_vm3, %v2882_v55, %v3039_v21 }
 0x2d3   : > { %4590 = vmatmul.mubr.msk.f32.gmra.mrb[18].mxu1 %vm2203_vm7, %v5951_v24 }
 0x2d4   : > { %4592 = vmatprep.mubr.msk.f32.mxu1 %vm2203_vm7, %v6002_v54  ;;  %v2097_v10 = vpop.permute.xlu1 %2096  ;;  %v1971_v32 = vpop.permute.xlu0 %1970 }
 0x2d5   : > { %v2196_v22 = vsel %vm585_vm0, %v2164_v19, %v2097_v10 }
 0x2d6   : > { %4503 = vmatprep.mubr.msk.f32.mxu0 %vm2203_vm7, %v2196_v22 }
 0x2d7   : > { %4593 = vmatmul.mubr.msk.f32.gmra.mrb[20].mxu1 %vm2203_vm7, %v6021_v62  ;;  %v6723_v62 = vld [vmem:[#allocation64_spill] sm:$0xff] }
 0x2d8   : > { %4595 = vmatprep.mubr.msk.f32.mxu1 %vm2203_vm7, %v3258_v2  ;;  %v3167_v24 = vpop.permute.xlu1 %3166  ;;  %v3041_v54 = vpop.permute.xlu0 %3040  ;;  %v2165_v35 = vsel %vm1107_vm3, %v6723_v62, %v1971_v32  ;;  %v3233_v40 = vsel %vm1107_vm3, %v6723_v62, %v3037_v43 }
 0x2d9   : > { %v3265_v4 = vsel %vm585_vm0, %v3233_v40, %v3165_v23  ;;  %v3266_v28 = vsel %vm585_vm0, %v3234_v9, %v3167_v24  ;;  %v3235_v34 = vsel %vm1107_vm3, %v2883_v31, %v3041_v54 }
 0x2db   : > { %4596 = vmatmul.mubr.msk.f32.gmra.mrb[22].mxu1 %vm2203_vm7, %v3259_v15 }
 0x2dc   : > { %4598 = vmatprep.mubr.msk.f32.mxu1 %vm2203_vm7, %v3260_v38  ;;  %v3169_v53 = vpop.permute.xlu1 %3168  ;;  %v2099_v46 = vpop.permute.xlu0 %2098  ;;  %v6724_v38 = vld [vmem:[#allocation58_spill] sm:$0xff] }
 0x2dd   : > { %v2197_v33 = vsel %vm585_vm0, %v2165_v35, %v2099_v46  ;;  %v3267_v56 = vsel %vm585_vm0, %v3235_v34, %v3169_v53  ;;  %v6725_v53 = vld [vmem:[#allocation59_spill] sm:$0xff] }
 0x2de   : > { %4504 = vmatmul.mubr.msk.f32.gmra.mrb[62].mxu0 %vm2203_vm7, %v2197_v33 }
 0x2df   : > { %4599 = vmatmul.mubr.msk.f32.gmra.mrb[24].mxu1 %vm2203_vm7, %v3261_v59 }
 0x2e0   : > { %4601 = vmatprep.mubr.msk.f32.mxu1 %vm2203_vm7, %v3262_v7  ;;  %v3043_v14 = vpop.permute.xlu1 %3042  ;;  %v1973_v17 = vpop.permute.xlu0 %1972 }
 0x2e1   : > { %v2166_v36 = vsel %vm1107_vm3, %v2882_v55, %v1973_v17  ;;  %v3236_v18 = vsel %vm1107_vm3, %v2884_v8, %v3043_v14 }
 0x2e3   : > { %4602 = vmatmul.mubr.msk.f32.gmra.mrb[26].mxu1 %vm2203_vm7, %v3263_v12 }
 0x2e4   : > { %4604 = vmatprep.mubr.msk.f32.mxu1 %vm2203_vm7, %v3264_v13  ;;  %v2101_v63 = vpop.permute.xlu1 %2100  ;;  %v1975_v47 = vpop.permute.xlu0 %1974 }
 0x2e5   : > { %v2198_v42 = vsel %vm585_vm0, %v2166_v36, %v2101_v63  ;;  %v2167_v23 = vsel %vm1107_vm3, %v2883_v31, %v1975_v47 }
 0x2e6   : > { %v6290_v6 = vpop.f32.mrb[46].mxu0  ;;  %4506 = vmatprep.mubr.msk.f32.mxu0 %vm2203_vm7, %v2198_v42 }
 0x2e7   : > { %v6294_v50 = vpop.f32.mrb[47].mxu0  ;;  %4605 = vmatmul.mubr.msk.f32.gmra.mrb[28].mxu1 %vm2203_vm7, %v3265_v4 }
 0x2e8   : > { %4607 = vmatprep.mubr.msk.f32.mxu1 %vm2203_vm7, %v3266_v28  ;;  %v3171_v43 = vpop.permute.xlu1 %3170  ;;  %v3045_v30 = vpop.permute.xlu0 %3044 }
 0x2e9   : > { %v3268_v52 = vsel %vm585_vm0, %v3236_v18, %v3171_v43  ;;  %v3237_v5 = vsel %vm1107_vm3, %v2885_v60, %v3045_v30 }
 0x2eb   : > { %4608 = vmatmul.mubr.msk.f32.gmra.mrb[30].mxu1 %vm2203_vm7, %v3267_v56 }
 0x2ec   : > { %4610 = vmatprep.mubr.msk.f32.mxu1 %vm2203_vm7, %v3268_v52  ;;  %v3173_v48 = vpop.permute.xlu1 %3172  ;;  %v2103_v49 = vpop.permute.xlu0 %2102 }
 0x2ed   : > { %v3269_v21 = vsel %vm585_vm0, %v3237_v5, %v3173_v48  ;;  %v2199_v37 = vsel %vm585_vm0, %v2167_v23, %v2103_v49 }
 0x2ee   : > { %4507 = vmatmul.mubr.msk.f32.gmra.mrb[64].mxu0 %vm2203_vm7, %v2199_v37 }
 0x2ef   : > { %4611 = vmatmul.mubr.msk.f32.gmra.mrb[32].mxu1 %vm2203_vm7, %v3269_v21 }
 0x2fe   : > { %v6310_v16 = vpop.f32.mrb[48].mxu0 }
 0x2ff   : > { %v6312_v19 = vpop.f32.mrb[49].mxu0 }
 0x351   : > { %v6314_v10 = vpop.f32.mrb[50].mxu0 }
 0x352   : > { %v6316_v32 = vpop.f32.mrb[51].mxu0 }
 0x361   : > { %v6318_v22 = vpop.f32.mrb[52].mxu0 }
 0x362   : > { %v6320_v0 = vpop.f32.mrb[53].mxu0 }
 0x371   : > { %v6322_v2 = vpop.f32.mrb[54].mxu0 }
 0x372   : > { %v6324_v24 = vpop.f32.mrb[55].mxu0 }
 0x381   : > { %v6326_v54 = vpop.f32.mrb[56].mxu0 }
 0x382   : > { %v6328_v1 = vpop.f32.mrb[57].mxu0 }
 0x386   : > { %v4567_v15 = vpop.f32.mrb[2].mxu1 }
 0x387   : > { %v4631_v62 = vadd.f32 %v4567_v15, %v6724_v38  ;;  %v3438_v35 = vpop.f32.mrb[3].mxu1 }
 0x388   : > { %v4632_v46 = vadd.f32 %v3438_v35, %v6725_v53 }
 0x389   : > { %v3637_v27 = vadd.f32 %v4631_v62, %v6333_v26 }
 0x38a   : > { %v3636_v33 = vadd.f32 %v4632_v46, %v6333_v26  ;;  %v4570_v59 = vpop.f32.mrb[4].mxu1 }
 0x38b   : > { %v3669_v45 = vsel %vm585_vm0, %v3637_v27, 0.0  ;;  %v3740_v7 = vmul.f32 %v3637_v27, %v3637_v27  ;;  %3842 = vst.msk [vmem:[%s6340_s25 + $0x8] sm:$0xff] %vm585_vm0, %v3637_v27  ;;  %v4633_v14 = vadd.f32 %v4570_v59, %v5885_v3  ;;  %v3448_v17 = vpop.f32.mrb[5].mxu1 }
 0x38c   : > { %v3668_v29 = vsel %vm585_vm0, %v3636_v33, 0.0  ;;  %v3739_v12 = vmul.f32 %v3636_v33, %v3636_v33  ;;  %3841 = vst.msk [vmem:[%s6340_s25] sm:$0xff] %vm585_vm0, %v3636_v33  ;;  %v4634_v44 = vadd.f32 %v3448_v17, %v5889_v57 }
 0x38d   : > { %v3772_v13 = vsel %vm585_vm0, %v3740_v7, 0.0  ;;  %v3670_v55 = vadd.f32 %v3669_v45, %v3668_v29  ;;  %v3639_v36 = vadd.f32 %v4633_v14, %v6333_v26 }
 0x38e   : > { %v3771_v63 = vsel %vm585_vm0, %v3739_v12, 0.0  ;;  %v3638_v47 = vadd.f32 %v4634_v44, %v6333_v26  ;;  %v4573_v40 = vpop.f32.mrb[6].mxu1 }
 0x38f   : > { %v3773_v3 = vadd.f32 %v3772_v13, %v3771_v63  ;;  %v3742_v42 = vmul.f32 %v3639_v36, %v3639_v36  ;;  %3844 = vst.msk [vmem:[%s6340_s25 + $0x18] sm:$0xff] %vm585_vm0, %v3639_v36  ;;  %v4635_v4 = vadd.f32 %v4573_v40, %v5987_v51  ;;  %v3458_v9 = vpop.f32.mrb[7].mxu1  ;;  %v3673_v30 = vsel %vm585_vm0, %v3639_v36, 0.0 }
 0x390   : > { %v3671_v57 = vsel %vm585_vm0, %v3638_v47, 0.0  ;;  %v3741_v28 = vmul.f32 %v3638_v47, %v3638_v47  ;;  %3843 = vst.msk [vmem:[%s6340_s25 + $0x10] sm:$0xff] %vm585_vm0, %v3638_v47  ;;  %v4636_v8 = vadd.f32 %v3458_v9, %v5992_v25 }
 0x391   : > { %v3672_v31 = vadd.f32 %v3671_v57, %v3670_v55  ;;  %v3641_v18 = vadd.f32 %v4635_v4, %v6333_v26  ;;  %v6365_v43 = vpop.f32.mrb[58].mxu0  ;;  %v3776_v60 = vsel %vm585_vm0, %v3742_v42, 0.0 }
 0x392   : > { %v3774_v34 = vsel %vm585_vm0, %v3741_v28, 0.0  ;;  %v3640_v51 = vadd.f32 %v4636_v8, %v6333_v26  ;;  %v4576_v52 = vpop.f32.mrb[8].mxu1  ;;  %v6370_v56 = vpop.f32.mrb[59].mxu0 }
 0x393   : > { %v3775_v23 = vadd.f32 %v3774_v34, %v3773_v3  ;;  %v3744_v5 = vmul.f32 %v3641_v18, %v3641_v18  ;;  %3846 = vst.msk [vmem:[%s6340_s25 + $0x28] sm:$0xff] %vm585_vm0, %v3641_v18  ;;  %v3674_v25 = vadd.f32 %v3673_v30, %v3672_v31  ;;  %v3468_v48 = vpop.f32.mrb[9].mxu1  ;;  %v4637_v37 = vadd.f32 %v4576_v52, %v6069_v20 }
 0x394   : > { %v3675_v49 = vsel %vm585_vm0, %v3640_v51, 0.0  ;;  %v3743_v21 = vmul.f32 %v3640_v51, %v3640_v51  ;;  %3845 = vst.msk [vmem:[%s6340_s25 + $0x20] sm:$0xff] %vm585_vm0, %v3640_v51  ;;  %v4638_v15 = vadd.f32 %v3468_v48, %v6072_v58  ;;  %v3677_v35 = vsel %vm585_vm0, %v3641_v18, 0.0 }
 0x395   : > { %v3676_v38 = vadd.f32 %v3675_v49, %v3674_v25  ;;  %v3777_v62 = vadd.f32 %v3776_v60, %v3775_v23  ;;  %v3643_v46 = vadd.f32 %v4637_v37, %v6333_v26  ;;  %v3780_v20 = vsel %vm585_vm0, %v3744_v5, 0.0 }
 0x396   : > { %v3778_v53 = vsel %vm585_vm0, %v3743_v21, 0.0  ;;  %v3642_v27 = vadd.f32 %v4638_v15, %v6333_v26  ;;  %v4579_v33 = vpop.f32.mrb[10].mxu1 }
 0x397   : > { %v3779_v59 = vadd.f32 %v3778_v53, %v3777_v62  ;;  %v3678_v45 = vadd.f32 %v3677_v35, %v3676_v38  ;;  %v4639_v7 = vadd.f32 %v4579_v33, %v6134_v11  ;;  %v3478_v14 = vpop.f32.mrb[11].mxu1  ;;  %v3746_v58 = vmul.f32 %v3643_v46, %v3643_v46  ;;  %3848 = vst.msk [vmem:[%s6340_s25 + $0x38] sm:$0xff] %vm585_vm0, %v3643_v46 }
 0x398   : > { %v3679_v17 = vsel %vm585_vm0, %v3642_v27, 0.0  ;;  %v3745_v29 = vmul.f32 %v3642_v27, %v3642_v27  ;;  %3847 = vst.msk [vmem:[%s6340_s25 + $0x30] sm:$0xff] %vm585_vm0, %v3642_v27  ;;  %v4640_v55 = vadd.f32 %v3478_v14, %v6144_v39  ;;  %v3681_v63 = vsel %vm585_vm0, %v3643_v46, 0.0 }
 0x399   : > { %v3680_v12 = vadd.f32 %v3679_v17, %v3678_v45  ;;  %v3781_v44 = vadd.f32 %v3780_v20, %v3779_v59  ;;  %v3645_v13 = vadd.f32 %v4639_v7, %v6333_v26  ;;  %v3784_v47 = vsel %vm585_vm0, %v3746_v58, 0.0 }
 0x39a   : > { %v3782_v11 = vsel %vm585_vm0, %v3745_v29, 0.0  ;;  %v4582_v36 = vpop.f32.mrb[12].mxu1  ;;  %v3644_v3 = vadd.f32 %v4640_v55, %v6333_v26 }
 0x39b   : > { %v3783_v40 = vadd.f32 %v3782_v11, %v3781_v44  ;;  %3850 = vst.msk [vmem:[%s6340_s25 + $0x48] sm:$0xff] %vm585_vm0, %v3645_v13  ;;  %v3488_v42 = vpop.f32.mrb[13].mxu1  ;;  %v3748_v4 = vmul.f32 %v3645_v13, %v3645_v13  ;;  %v3682_v9 = vadd.f32 %v3681_v63, %v3680_v12  ;;  %v4641_v57 = vadd.f32 %v4582_v36, %v6220_v41 }
 0x39c   : > { %v4642_v39 = vadd.f32 %v3488_v42, %v6223_v61  ;;  %v3683_v28 = vsel %vm585_vm0, %v3644_v3, 0.0  ;;  %v3747_v8 = vmul.f32 %v3644_v3, %v3644_v3  ;;  %3849 = vst.msk [vmem:[%s6340_s25 + $0x40] sm:$0xff] %vm585_vm0, %v3644_v3  ;;  %v3685_v52 = vsel %vm585_vm0, %v3645_v13, 0.0 }
 0x39d   : > { %v3785_v31 = vadd.f32 %v3784_v47, %v3783_v40  ;;  %v3684_v18 = vadd.f32 %v3683_v28, %v3682_v9  ;;  %v3647_v30 = vadd.f32 %v4641_v57, %v6333_v26  ;;  %v3788_v23 = vsel %vm585_vm0, %v3748_v4, 0.0 }
 0x39e   : > { %v3646_v34 = vadd.f32 %v4642_v39, %v6333_v26  ;;  %v4585_v51 = vpop.f32.mrb[14].mxu1  ;;  %v3786_v41 = vsel %vm585_vm0, %v3747_v8, 0.0 }
 0x39f   : > { %v4643_v61 = vadd.f32 %v4585_v51, %v6290_v6  ;;  %v3498_v60 = vpop.f32.mrb[15].mxu1  ;;  %v3787_v5 = vadd.f32 %v3786_v41, %v3785_v31  ;;  %v3750_v25 = vmul.f32 %v3647_v30, %v3647_v30  ;;  %3852 = vst.msk [vmem:[%s6340_s25 + $0x58] sm:$0xff] %vm585_vm0, %v3647_v30  ;;  %v3686_v48 = vadd.f32 %v3685_v52, %v3684_v18 }
 0x3a0   : > { %3851 = vst.msk [vmem:[%s6340_s25 + $0x50] sm:$0xff] %vm585_vm0, %v3646_v34  ;;  %v3687_v49 = vsel %vm585_vm0, %v3646_v34, 0.0  ;;  %v3749_v21 = vmul.f32 %v3646_v34, %v3646_v34  ;;  %v4644_v15 = vadd.f32 %v3498_v60, %v6294_v50  ;;  %v3689_v46 = vsel %vm585_vm0, %v3647_v30, 0.0 }
 0x3a1   : > { %v3649_v37 = vadd.f32 %v4643_v61, %v6333_v26  ;;  %v6417_v38 = vpop.f32.mrb[60].mxu0  ;;  %v3688_v6 = vadd.f32 %v3687_v49, %v3686_v48  ;;  %v3789_v62 = vadd.f32 %v3788_v23, %v3787_v5  ;;  %v3792_v58 = vsel %vm585_vm0, %v3750_v25, 0.0 }
 0x3a2   : > { %v4588_v35 = vpop.f32.mrb[16].mxu1  ;;  %v6419_v53 = vpop.f32.mrb[61].mxu0  ;;  %v3790_v27 = vsel %vm585_vm0, %v3749_v21, 0.0  ;;  %v3648_v59 = vadd.f32 %v4644_v15, %v6333_v26 }
 0x3a3   : > { %v3752_v33 = vmul.f32 %v3649_v37, %v3649_v37  ;;  %3854 = vst.msk [vmem:[%s6340_s25 + $0x68] sm:$0xff] %vm585_vm0, %v3649_v37  ;;  %v3508_v45 = vpop.f32.mrb[17].mxu1  ;;  %v3791_v7 = vadd.f32 %v3790_v27, %v3789_v62  ;;  %v3690_v50 = vadd.f32 %v3689_v46, %v3688_v6  ;;  %v4645_v14 = vadd.f32 %v4588_v35, %v6310_v16 }
 0x3a4   : > { %v4646_v20 = vadd.f32 %v3508_v45, %v6312_v19  ;;  %v3691_v17 = vsel %vm585_vm0, %v3648_v59, 0.0  ;;  %v3751_v29 = vmul.f32 %v3648_v59, %v3648_v59  ;;  %3853 = vst.msk [vmem:[%s6340_s25 + $0x60] sm:$0xff] %vm585_vm0, %v3648_v59  ;;  %v3693_v16 = vsel %vm585_vm0, %v3649_v37, 0.0 }
 0x3a5   : > { %v3692_v12 = vadd.f32 %v3691_v17, %v3690_v50  ;;  %v3793_v44 = vadd.f32 %v3792_v58, %v3791_v7  ;;  %v3651_v13 = vadd.f32 %v4645_v14, %v6333_v26  ;;  %v3796_v47 = vsel %vm585_vm0, %v3752_v33, 0.0 }
 0x3a6   : > { %v3650_v55 = vadd.f32 %v4646_v20, %v6333_v26  ;;  %v4591_v11 = vpop.f32.mrb[18].mxu1  ;;  %v3794_v19 = vsel %vm585_vm0, %v3751_v29, 0.0 }
 0x3a7   : > { %v4647_v36 = vadd.f32 %v4591_v11, %v6314_v10  ;;  %v3518_v63 = vpop.f32.mrb[19].mxu1  ;;  %v3795_v40 = vadd.f32 %v3794_v19, %v3793_v44  ;;  %v3754_v3 = vmul.f32 %v3651_v13, %v3651_v13  ;;  %3856 = vst.msk [vmem:[%s6340_s25 + $0x78] sm:$0xff] %vm585_vm0, %v3651_v13  ;;  %v3694_v42 = vadd.f32 %v3693_v16, %v3692_v12 }
 0x3a8   : > { %3855 = vst.msk [vmem:[%s6340_s25 + $0x70] sm:$0xff] %vm585_vm0, %v3650_v55  ;;  %v3695_v4 = vsel %vm585_vm0, %v3650_v55, 0.0  ;;  %v3753_v9 = vmul.f32 %v3650_v55, %v3650_v55  ;;  %v4648_v39 = vadd.f32 %v3518_v63, %v6316_v32  ;;  %v3697_v31 = vsel %vm585_vm0, %v3651_v13, 0.0 }
 0x3a9   : > { %v3653_v57 = vadd.f32 %v4647_v36, %v6333_v26  ;;  %v3696_v28 = vadd.f32 %v3695_v4, %v3694_v42  ;;  %v3797_v10 = vadd.f32 %v3796_v47, %v3795_v40  ;;  %v3800_v60 = vsel %vm585_vm0, %v3754_v3, 0.0 }
 0x3aa   : > { %v4594_v8 = vpop.f32.mrb[20].mxu1  ;;  %v3798_v18 = vsel %vm585_vm0, %v3753_v9, 0.0  ;;  %v3652_v34 = vadd.f32 %v4648_v39, %v6333_v26 }
 0x3ab   : > { %v3756_v30 = vmul.f32 %v3653_v57, %v3653_v57  ;;  %3858 = vst.msk [vmem:[%s6340_s25 + $0x88] sm:$0xff] %vm585_vm0, %v3653_v57  ;;  %v3528_v51 = vpop.f32.mrb[21].mxu1  ;;  %v3799_v52 = vadd.f32 %v3798_v18, %v3797_v10  ;;  %v3698_v41 = vadd.f32 %v3697_v31, %v3696_v28  ;;  %v4649_v61 = vadd.f32 %v4594_v8, %v6318_v22 }
 0x3ac   : > { %v4650_v32 = vadd.f32 %v3528_v51, %v6320_v0  ;;  %v3699_v23 = vsel %vm585_vm0, %v3652_v34, 0.0  ;;  %v3755_v5 = vmul.f32 %v3652_v34, %v3652_v34  ;;  %3857 = vst.msk [vmem:[%s6340_s25 + $0x80] sm:$0xff] %vm585_vm0, %v3652_v34  ;;  %v3701_v22 = vsel %vm585_vm0, %v3653_v57, 0.0 }
 0x3ad   : > { %v3700_v25 = vadd.f32 %v3699_v23, %v3698_v41  ;;  %v3801_v48 = vadd.f32 %v3800_v60, %v3799_v52  ;;  %v3655_v49 = vadd.f32 %v4649_v61, %v6333_v26  ;;  %v3804_v62 = vsel %vm585_vm0, %v3756_v30, 0.0 }
 0x3ae   : > { %v3654_v21 = vadd.f32 %v4650_v32, %v6333_v26  ;;  %v4597_v37 = vpop.f32.mrb[22].mxu1  ;;  %v3802_v0 = vsel %vm585_vm0, %v3755_v5, 0.0 }
 0x3af   : > { %v4651_v15 = vadd.f32 %v4597_v37, %v6322_v2  ;;  %v3538_v6 = vpop.f32.mrb[23].mxu1  ;;  %v3803_v35 = vadd.f32 %v3802_v0, %v3801_v48  ;;  %v3758_v46 = vmul.f32 %v3655_v49, %v3655_v49  ;;  %3860 = vst.msk [vmem:[%s6340_s25 + $0x98] sm:$0xff] %vm585_vm0, %v3655_v49  ;;  %v3702_v27 = vadd.f32 %v3701_v22, %v3700_v25 }
 0x3b0   : > { %3859 = vst.msk [vmem:[%s6340_s25 + $0x90] sm:$0xff] %vm585_vm0, %v3654_v21  ;;  %v3703_v33 = vsel %vm585_vm0, %v3654_v21, 0.0  ;;  %v3757_v59 = vmul.f32 %v3654_v21, %v3654_v21  ;;  %v4652_v7 = vadd.f32 %v3538_v6, %v6324_v24  ;;  %v3705_v17 = vsel %vm585_vm0, %v3655_v49, 0.0 }
 0x3b1   : > { %v3657_v45 = vadd.f32 %v4651_v15, %v6333_v26  ;;  %v4505_v50 = vpop.f32.mrb[62].mxu0  ;;  %v3704_v2 = vadd.f32 %v3703_v33, %v3702_v27  ;;  %v3805_v14 = vadd.f32 %v3804_v62, %v3803_v35  ;;  %v3808_v19 = vsel %vm585_vm0, %v3758_v46, 0.0 }
 0x3b2   : > { %v4600_v20 = vpop.f32.mrb[24].mxu1  ;;  %v6469_v58 = vpop.f32.mrb[63].mxu0  ;;  %v3806_v29 = vsel %vm585_vm0, %v3757_v59, 0.0  ;;  %v3656_v44 = vadd.f32 %v4652_v7, %v6333_v26 }
 0x3b3   : > { %v3760_v12 = vmul.f32 %v3657_v45, %v3657_v45  ;;  %3862 = vst.msk [vmem:[%s6340_s25 + $0xa8] sm:$0xff] %vm585_vm0, %v3657_v45  ;;  %v3548_v13 = vpop.f32.mrb[25].mxu1  ;;  %v3807_v55 = vadd.f32 %v3806_v29, %v3805_v14  ;;  %v3706_v11 = vadd.f32 %v3705_v17, %v3704_v2  ;;  %v4653_v24 = vadd.f32 %v4600_v20, %v6326_v54 }
 0x3b4   : > { %v4654_v16 = vadd.f32 %v3548_v13, %v6328_v1  ;;  %v3707_v36 = vsel %vm585_vm0, %v3656_v44, 0.0  ;;  %v3759_v63 = vmul.f32 %v3656_v44, %v3656_v44  ;;  %3861 = vst.msk [vmem:[%s6340_s25 + $0xa0] sm:$0xff] %vm585_vm0, %v3656_v44  ;;  %v3709_v54 = vsel %vm585_vm0, %v3657_v45, 0.0 }
 0x3b5   : > { %v3708_v47 = vadd.f32 %v3707_v36, %v3706_v11  ;;  %v3809_v40 = vadd.f32 %v3808_v19, %v3807_v55  ;;  %v3659_v3 = vadd.f32 %v4653_v24, %v6333_v26  ;;  %v3812_v39 = vsel %vm585_vm0, %v3760_v12, 0.0 }
 0x3b6   : > { %v3658_v42 = vadd.f32 %v4654_v16, %v6333_v26  ;;  %v4603_v4 = vpop.f32.mrb[26].mxu1  ;;  %v3810_v1 = vsel %vm585_vm0, %v3759_v63, 0.0 }
 0x3b7   : > { %v4655_v9 = vadd.f32 %v4603_v4, %v6365_v43  ;;  %v3558_v57 = vpop.f32.mrb[27].mxu1  ;;  %v3811_v28 = vadd.f32 %v3810_v1, %v3809_v40  ;;  %v3762_v10 = vmul.f32 %v3659_v3, %v3659_v3  ;;  %3864 = vst.msk [vmem:[%s6340_s25 + $0xb8] sm:$0xff] %vm585_vm0, %v3659_v3  ;;  %v3710_v8 = vadd.f32 %v3709_v54, %v3708_v47 }
 0x3b8   : > { %3863 = vst.msk [vmem:[%s6340_s25 + $0xb0] sm:$0xff] %vm585_vm0, %v3658_v42  ;;  %v3711_v31 = vsel %vm585_vm0, %v3658_v42, 0.0  ;;  %v3761_v18 = vmul.f32 %v3658_v42, %v3658_v42  ;;  %v4656_v34 = vadd.f32 %v3558_v57, %v6370_v56  ;;  %v3713_v41 = vsel %vm585_vm0, %v3659_v3, 0.0 }
 0x3b9   : > { %v3661_v30 = vadd.f32 %v4655_v9, %v6333_v26  ;;  %v3712_v51 = vadd.f32 %v3711_v31, %v3710_v8  ;;  %v3813_v43 = vadd.f32 %v3812_v39, %v3811_v28  ;;  %v3816_v49 = vsel %vm585_vm0, %v3762_v10, 0.0 }
 0x3ba   : > { %v4606_v52 = vpop.f32.mrb[28].mxu1  ;;  %v3814_v61 = vsel %vm585_vm0, %v3761_v18, 0.0  ;;  %v3660_v60 = vadd.f32 %v4656_v34, %v6333_v26 }
 0x3bb   : > { %v3764_v32 = vmul.f32 %v3661_v30, %v3661_v30  ;;  %3866 = vst.msk [vmem:[%s6340_s25 + $0xc8] sm:$0xff] %vm585_vm0, %v3661_v30  ;;  %v3568_v23 = vpop.f32.mrb[29].mxu1  ;;  %v3815_v5 = vadd.f32 %v3814_v61, %v3813_v43  ;;  %v3714_v25 = vadd.f32 %v3713_v41, %v3712_v51  ;;  %v4657_v48 = vadd.f32 %v4606_v52, %v6417_v38 }
 0x3bc   : > { %v4658_v56 = vadd.f32 %v3568_v23, %v6419_v53  ;;  %v3715_v21 = vsel %vm585_vm0, %v3660_v60, 0.0  ;;  %v3763_v37 = vmul.f32 %v3660_v60, %v3660_v60  ;;  %3865 = vst.msk [vmem:[%s6340_s25 + $0xc0] sm:$0xff] %vm585_vm0, %v3660_v60  ;;  %v3717_v38 = vsel %vm585_vm0, %v3661_v30, 0.0 }
 0x3bd   : > { %v3716_v22 = vadd.f32 %v3715_v21, %v3714_v25  ;;  %v3817_v0 = vadd.f32 %v3816_v49, %v3815_v5  ;;  %v3663_v15 = vadd.f32 %v4657_v48, %v6333_v26  ;;  %v3820_v27 = vsel %vm585_vm0, %v3764_v32, 0.0 }
 0x3be   : > { %v3662_v6 = vadd.f32 %v4658_v56, %v6333_v26  ;;  %v4609_v62 = vpop.f32.mrb[30].mxu1  ;;  %v3818_v53 = vsel %vm585_vm0, %v3763_v37, 0.0 }
 0x3bf   : > { %v4659_v35 = vadd.f32 %v4609_v62, %v4505_v50  ;;  %v3578_v46 = vpop.f32.mrb[31].mxu1  ;;  %v3819_v33 = vadd.f32 %v3818_v53, %v3817_v0  ;;  %v3766_v59 = vmul.f32 %v3663_v15, %v3663_v15  ;;  %3868 = vst.msk [vmem:[%s6340_s25 + $0xd8] sm:$0xff] %vm585_vm0, %v3663_v15  ;;  %v3718_v45 = vadd.f32 %v3717_v38, %v3716_v22 }
 0x3c0   : > { %3867 = vst.msk [vmem:[%s6340_s25 + $0xd0] sm:$0xff] %vm585_vm0, %v3662_v6  ;;  %v3719_v7 = vsel %vm585_vm0, %v3662_v6, 0.0  ;;  %v3765_v2 = vmul.f32 %v3662_v6, %v3662_v6  ;;  %v4660_v20 = vadd.f32 %v3578_v46, %v6469_v58  ;;  %v3721_v13 = vsel %vm585_vm0, %v3663_v15, 0.0 }
 0x3c1   : > { %v3665_v14 = vadd.f32 %v4659_v35, %v6333_v26  ;;  %v4508_v17 = vpop.f32.mrb[64].mxu0  ;;  %v3720_v50 = vadd.f32 %v3719_v7, %v3718_v45  ;;  %v3821_v29 = vadd.f32 %v3820_v27, %v3819_v33  ;;  %v3824_v63 = vsel %vm585_vm0, %v3766_v59, 0.0 }
 0x3c2   : > { %v4612_v12 = vpop.f32.mrb[32].mxu1  ;;  %v2520_v44 = vpop.f32.mrb[65].mxu0  ;;  %v3822_v55 = vsel %vm585_vm0, %v3765_v2, 0.0  ;;  %v3664_v11 = vadd.f32 %v4660_v20, %v6333_v26 }
 0x3c3   : > { %3870 = vst.msk [vmem:[%s6340_s25 + $0xe8] sm:$0xff] %vm585_vm0, %v3665_v14  ;;  %v3588_v24 = vpop.f32.mrb[33].mxu1  ;;  %v3823_v16 = vadd.f32 %v3822_v55, %v3821_v29  ;;  %v3722_v19 = vadd.f32 %v3721_v13, %v3720_v50  ;;  %v4661_v36 = vadd.f32 %v4612_v12, %v4508_v17  ;;  %v3768_v47 = vmul.f32 %v3665_v14, %v3665_v14 }
 0x3c4   : > { %v4662_v58 = vadd.f32 %v3588_v24, %v2520_v44  ;;  %v3723_v40 = vsel %vm585_vm0, %v3664_v11, 0.0  ;;  %v3767_v3 = vmul.f32 %v3664_v11, %v3664_v11  ;;  %3869 = vst.msk [vmem:[%s6340_s25 + $0xe0] sm:$0xff] %vm585_vm0, %v3664_v11  ;;  %v3725_v9 = vsel %vm585_vm0, %v3665_v14, 0.0 }
 0x3c5   : > { %v3724_v42 = vadd.f32 %v3723_v40, %v3722_v19  ;;  %v3825_v4 = vadd.f32 %v3824_v63, %v3823_v16  ;;  %v3667_v54 = vadd.f32 %v4661_v36, %v6333_v26  ;;  %v3828_v10 = vsel %vm585_vm0, %v3768_v47, 0.0 }
 0x3c6   : > { %v3666_v1 = vadd.f32 %v4662_v58, %v6333_v26  ;;  %v3826_v57 = vsel %vm585_vm0, %v3767_v3, 0.0 }
 0x3c7   : > { %v3827_v39 = vadd.f32 %v3826_v57, %v3825_v4  ;;  %3872 = vst.msk [vmem:[%s6340_s25 + $0xf8] sm:$0xff] %vm585_vm0, %v3667_v54  ;;  %v3726_v28 = vadd.f32 %v3725_v9, %v3724_v42  ;;  %v3770_v8 = vmul.f32 %v3667_v54, %v3667_v54  ;;  %v3729_v34 = vsel %vm585_vm0, %v3667_v54, 0.0 }
 0x3c8   : > { %3871 = vst.msk [vmem:[%s6340_s25 + $0xf0] sm:$0xff] %vm585_vm0, %v3666_v1  ;;  %v3727_v31 = vsel %vm585_vm0, %v3666_v1, 0.0  ;;  %v3769_v18 = vmul.f32 %v3666_v1, %v3666_v1 }
 0x3c9   : > { %v3728_v26 = vadd.f32 %v3727_v31, %v3726_v28  ;;  %v3829_v30 = vadd.f32 %v3828_v10, %v3827_v39  ;;  %v3832_v41 = vsel %vm585_vm0, %v3770_v8, 0.0 }
 0x3ca   : > { %v3830_v51 = vsel %vm585_vm0, %v3769_v18, 0.0 }
 0x3cb   : > { %v3730_v43 = vadd.f32 %v3729_v34, %v3728_v26  ;;  %v3831_v52 = vadd.f32 %v3830_v51, %v3829_v30 }
 0x3cd   : > { %v3731_v61 = vrot.slane %v3730_v43, 4  ;;  %v3833_v32 = vadd.f32 %v3832_v41, %v3831_v52 }
 0x3cf   : > { %v3732_v60 = vadd.f32 %v3731_v61, %v3730_v43  ;;  %v3834_v23 = vrot.slane %v3833_v32, 4 }
 0x3d1   : > { %v3733_v5 = vrot.slane %v3732_v60, 2  ;;  %v3835_v25 = vadd.f32 %v3834_v23, %v3833_v32 }
 0x3d3   : > { %v3734_v48 = vadd.f32 %v3733_v5, %v3732_v60  ;;  %v3836_v56 = vrot.slane %v3835_v25, 2 }
 0x3d5   : > { %v3735_v49 = vrot.slane %v3734_v48, 1  ;;  %v3837_v21 = vadd.f32 %v3836_v56, %v3835_v25 }
 0x3d7   : > { %v3736_v37 = vadd.f32 %v3735_v49, %v3734_v48  ;;  %v3838_v22 = vrot.slane %v3837_v21, 1 }
 0x3d9   : > { %3738 = vst.msk [vmem:[%s514_s19] sm:$0x1] %vm3737_vm8, %v3736_v37  ;;  %v3839_v0 = vadd.f32 %v3838_v22, %v3837_v21 }
 0x3db   : > { %3840 = vst.msk [vmem:[%s514_s19 + $0x1] sm:$0x1] %vm3737_vm8, %v3839_v0 }
 0x3dc PF: > { %s20_s13 = sadd.s32 1, %s4780_s13   ;;  %s6726_s30 = smov %s4772_s11 }
 0x3dd   : > { %p17_p10 = scmp.ge.s32.totalorder %s20_s13, 6   ;;  %s6727_s10 = smov %s4776_s12 }
 0x3de   : > { %s6728_s11 = smov %s6731_s14  ;;  %s6729_s12 = smov %s6735_s15 }
 0x3df   :  { %19 = sbr.rel (!%p17_p10) target bundleno = 3 (0x3), region = 110 }

</bundles_post_ra>
